<compile_context>
chip_gen: v6e
topology: v6e:2x2x1
jax: 0.10.0
libtpu: 0.0.40
codegen_flags: <defaults>
</compile_context>

<pallas_src>
import functools
import math

import jax
import jax.numpy as jnp
from jax import lax
from jax.experimental import pallas as pl
from jax.experimental.pallas import tpu as pltpu


def _pick_batch_block(B, C, HWp, budget_bytes=8 << 20):
    """Largest divisor of B whose per-step VMEM footprint fits the budget.

    Footprint per image ~ (double-buffered in + out) + ~3 live f32 temporaries
    ~= 7 * C * HWp * 4 bytes (per the review).  Keep >=2 grid steps when B >= 2
    so v7x's two TensorCores both get work and pipelining stays alive.
    """
    per_img = 7 * C * HWp * 4
    cap = max(1, budget_bytes // per_img)
    if B >= 2:
        cap = min(cap, B // 2)
    cap = max(1, min(cap, B))
    for bb in range(cap, 0, -1):
        if B % bb == 0:
            return bb
    return 1


def _cbam_kernel(x_ref, w1t_ref, w2t_ref, wconv_ref, bconv_ref, o_ref, *,
                 H, W, HW, KS):
    """Fused CBAM forward for a block of Bblk images.

    x_ref    : (Bblk, C, HWp) VMEM -- channels on sublanes, pixels on lanes
    w1t_ref  : (C, C//r)      VMEM -- MLP conv1 weight, pre-transposed
    w2t_ref  : (C//r, C)      VMEM -- MLP conv2 weight, pre-transposed
    wconv_ref: (2*KS*KS,)     SMEM -- 7x7 spatial conv weight, flat [c, ky, kx]
    bconv_ref: (1,)           SMEM -- spatial conv bias
    o_ref    : (Bblk, C, HWp) VMEM
    """
    Bblk, C, HWp = x_ref.shape
    x = x_ref[...].astype(jnp.float32)                        # (Bblk, C, HWp)

    # ---------------- channel attention ----------------
    if HWp != HW:
        # pad lanes are zero: they don't perturb the sum, but must not win the max
        lane3 = lax.broadcasted_iota(jnp.int32, (1, 1, HWp), 2)
        x_for_max = jnp.where(lane3 < HW, x, -jnp.inf)
    else:
        x_for_max = x
    avg_c = jnp.sum(x, axis=2) * (1.0 / HW)                   # (Bblk, C) global avg pool
    max_c = jnp.max(x_for_max, axis=2)                        # (Bblk, C) global max pool
    pooled = jnp.concatenate([avg_c, max_c], axis=0)          # (2*Bblk, C)

    h = jnp.dot(pooled, w1t_ref[...], preferred_element_type=jnp.float32)  # (2*Bblk, Cr)
    h = jnp.maximum(h, 0.0)                                                # ReLU
    m = jnp.dot(h, w2t_ref[...], preferred_element_type=jnp.float32)       # (2*Bblk, C)
    ca = jax.nn.sigmoid(m[:Bblk] + m[Bblk:])                  # (Bblk, C)
    out1 = x * ca[:, :, None]                                 # (Bblk, C, HWp) channel-gated

    # ---------------- spatial attention ----------------
    s_avg = jnp.mean(out1, axis=1)                            # (Bblk, HWp) mean over channels
    s_max = jnp.max(out1, axis=1)                             # (Bblk, HWp) max  over channels

    # pixel coordinates of each lane (row-major flattening of HxW)
    lane = lax.broadcasted_iota(jnp.int32, (1, HWp), 1)
    if (W & (W - 1)) == 0:                                    # power-of-two width: bit ops
        row = lane >> (W.bit_length() - 1)
        col = lane & (W - 1)
    else:
        row = lane // W
        col = lane % W

    pad = KS // 2
    # Hoisted boundary masks: 7 row masks + 7 col masks instead of 49 recomputes.
    row_ok = [(row + (ky - pad) >= 0) & (row + (ky - pad) < H) for ky in range(KS)]
    col_ok = [(col + (kx - pad) >= 0) & (col + (kx - pad) < W) for kx in range(KS)]

    acc = jnp.zeros((Bblk, HWp), jnp.float32)
    for ky in range(KS):
        a = ky - pad
        for kx in range(KS):
            b = kx - pad
            t = ky * KS + kx
            # want shifted[:, p] == map[:, p + a*W + b]  (zero-padding via masks)
            shift = (-(a * W + b)) % HWp
            if shift == 0:
                sh_a, sh_m = s_avg, s_max
            else:
                sh_a = pltpu.roll(s_avg, shift, axis=1)       # XLU vrot (vext slot)
                sh_m = pltpu.roll(s_max, shift, axis=1)
            w_a = wconv_ref[t]                                # weight, avg channel (SMEM)
            w_m = wconv_ref[KS * KS + t]                      # weight, max channel (SMEM)
            tap = w_a * sh_a + w_m * sh_m                     # (Bblk, HWp)
            acc = acc + jnp.where(row_ok[ky] & col_ok[kx], tap, 0.0)

    sa = jax.nn.sigmoid(acc + bconv_ref[0])                   # (Bblk, HWp)
    o_ref[...] = (out1 * sa[:, None, :]).astype(o_ref.dtype)


def cbam_forward(x_nchw, w_mlp1, w_mlp2, w_conv, b_conv, *, batch_block=None):
    """Pallas CBAM forward.

    x_nchw : (B, C, H, W)           (f32 or bf16; compute is f32, IO keeps dtype)
    w_mlp1 : (C//ratio, C)  -- ChannelAttention MLP conv1 weight (PyTorch (out, in))
    w_mlp2 : (C, C//ratio)  -- ChannelAttention MLP conv2 weight
    w_conv : (2, 7, 7)      -- SpatialAttention 7x7 conv weight (in-ch order [avg, max])
    b_conv : (1,)           -- SpatialAttention conv bias
    """
    B, C, H, W = x_nchw.shape
    Cr = w_mlp1.shape[0]
    KS = w_conv.shape[-1]
    HW = H * W
    HWp = max(128, ((HW + 127) // 128) * 128)                 # lane-dense last dim

    x_flat = x_nchw.reshape(B, C, HW)                         # free, contiguous reshape
    if HWp != HW:
        x_flat = jnp.pad(x_flat, ((0, 0), (0, 0), (0, HWp - HW)))

    w1t = jnp.asarray(w_mlp1, jnp.float32).T                  # (C, Cr)
    w2t = jnp.asarray(w_mlp2, jnp.float32).T                  # (Cr, C)
    w_conv_flat = jnp.asarray(w_conv, jnp.float32).reshape(-1)   # (2*KS*KS,)
    b_conv = jnp.asarray(b_conv, jnp.float32).reshape(1)

    Bblk = batch_block if batch_block is not None else _pick_batch_block(B, C, HWp)
    assert B % Bblk == 0
    grid = (B // Bblk,)

    out = pl.pallas_call(
        functools.partial(_cbam_kernel, H=H, W=W, HW=HW, KS=KS),
        out_shape=jax.ShapeDtypeStruct((B, C, HWp), x_nchw.dtype),
        grid=grid,
        in_specs=[
            pl.BlockSpec((Bblk, C, HWp), lambda b: (b, 0, 0)),        # batched image tile
            pl.BlockSpec((C, Cr), lambda b: (0, 0)),                  # resident MLP weights
            pl.BlockSpec((Cr, C), lambda b: (0, 0)),
            pl.BlockSpec(memory_space=pltpu.MemorySpace.SMEM),        # conv weights (scalars)
            pl.BlockSpec(memory_space=pltpu.MemorySpace.SMEM),        # conv bias
        ],
        out_specs=pl.BlockSpec((Bblk, C, HWp), lambda b: (b, 0, 0)),  # lane-dense output
        compiler_params=pltpu.CompilerParams(
            dimension_semantics=("parallel",),                        # batch axis -> dual TC
            vmem_limit_bytes=32 * 1024 * 1024,                        # explicit, v7x-safe
        ),
    )(x_flat, w1t, w2t, w_conv_flat, b_conv)

    return out[..., :HW].reshape(B, C, H, W)


def cbam_reference(x, w_mlp1, w_mlp2, w_conv, b_conv):
    """Plain-JAX reference matching the PyTorch CBAM module."""
    avg = jnp.mean(x, axis=(2, 3))                            # (B, C)
    mx = jnp.max(x, axis=(2, 3))                              # (B, C)

    def mlp(v):
        return jnp.maximum(v @ w_mlp1.T, 0.0) @ w_mlp2.T

    ca = jax.nn.sigmoid(mlp(avg) + mlp(mx))                   # (B, C)
    out1 = x * ca[:, :, None, None]

    s_avg = jnp.mean(out1, axis=1, keepdims=True)             # (B, 1, H, W)
    s_max = jnp.max(out1, axis=1, keepdims=True)
    smap = jnp.concatenate([s_avg, s_max], axis=1)            # (B, 2, H, W)
    conv = lax.conv_general_dilated(
        smap, w_conv[None], window_strides=(1, 1),
        padding=((3, 3), (3, 3)),
        dimension_numbers=("NCHW", "OIHW", "NCHW"))           # (B, 1, H, W)
    sa = jax.nn.sigmoid(conv + b_conv[0])
    return sa * out1


if __name__ == "__main__":
    # channel must be >= ratio (=16) for the CBAM MLP; keep shapes small.
    B, C, H, W = 2, 64, 16, 16
    ratio = 16
    Cr = C // ratio

    key = jax.random.PRNGKey(0)
    kx, k1, k2, k3, k4 = jax.random.split(key, 5)
    x = jax.random.normal(kx, (B, C, H, W), dtype=jnp.float32)
    # Deterministic synthetic parameters (not a checkpoint load).
    w_mlp1 = jax.random.normal(k1, (Cr, C), jnp.float32) * (1.0 / math.sqrt(C))
    w_mlp2 = jax.random.normal(k2, (C, Cr), jnp.float32) * (1.0 / math.sqrt(Cr))
    w_conv = jax.random.normal(k3, (2, 7, 7), jnp.float32) * (1.0 / math.sqrt(2 * 49))
    b_conv = jax.random.normal(k4, (1,), jnp.float32) * 0.01

    y = cbam_forward(x, w_mlp1, w_mlp2, w_conv, b_conv)
    y = jax.block_until_ready(y)

    y_ref = cbam_reference(x, w_mlp1, w_mlp2, w_conv, b_conv)
    assert y.shape == (B, C, H, W)
    err = float(jnp.max(jnp.abs(y - y_ref)))
    assert jnp.allclose(y, y_ref, atol=5e-4, rtol=5e-4), err

    print("KERNEL_OK")
</pallas_src>

<mosaic_0001>
module attributes {stable_mosaic.version = 11 : i64} {
  func.func @_cbam_kernel(%arg0: i32, %arg1: memref<1x64x256xf32, #tpu.memory_space<vmem>>, %arg2: memref<64x4xf32, #tpu.memory_space<vmem>>, %arg3: memref<4x64xf32, #tpu.memory_space<vmem>>, %arg4: memref<98xf32, #tpu.memory_space<smem>>, %arg5: memref<1xf32, #tpu.memory_space<smem>>, %arg6: memref<1x64x256xf32, #tpu.memory_space<vmem>>) attributes {dimension_semantics = [#tpu.dimension_semantics<parallel>], iteration_bounds = array<i64: 2>, scalar_prefetch = 0 : i64, scratch_operands = 0 : i64, tpu.core_type = #tpu.core_type<tc>, window_params = [{transform_indices = @transform_0, window_bounds = array<i64: 1, 64, 256>}, {pipeline_mode = #tpu.pipeline_mode<synchronous>, transform_indices = @transform_1, window_bounds = array<i64: 64, 4>}, {pipeline_mode = #tpu.pipeline_mode<synchronous>, transform_indices = @transform_2, window_bounds = array<i64: 4, 64>}, {transform_indices = @transform_3, window_bounds = array<i64: 98>}, {transform_indices = @transform_4, window_bounds = array<i64: 1>}, {transform_indices = @transform_5, window_bounds = array<i64: 1, 64, 256>}]} {
    %c0 = arith.constant 0 : index
    %c0_0 = arith.constant 0 : index
    %c0_1 = arith.constant 0 : index
    %0 = vector.load %arg1[%c0, %c0_0, %c0_1] : memref<1x64x256xf32, #tpu.memory_space<vmem>>, vector<1x64x256xf32>
    %cst = arith.constant dense<0.000000e+00> : vector<1x64xf32>
    %1 = vector.multi_reduction <add>, %0, %cst [2] : vector<1x64x256xf32> to vector<1x64xf32>
    %cst_2 = arith.constant 3.906250e-03 : f32
    %2 = vector.broadcast %cst_2 : f32 to vector<1x64xf32>
    %3 = arith.mulf %1, %2 : vector<1x64xf32>
    %cst_3 = arith.constant dense<0xFF800000> : vector<1x64xf32>
    %4 = vector.multi_reduction <maximumf>, %0, %cst_3 [2] : vector<1x64x256xf32> to vector<1x64xf32>
    %5 = tpu.concatenate %3, %4 in 0 : vector<1x64xf32>, vector<1x64xf32> -> vector<2x64xf32>
    %c0_4 = arith.constant 0 : index
    %c0_5 = arith.constant 0 : index
    %6 = vector.load %arg2[%c0_4, %c0_5] : memref<64x4xf32, #tpu.memory_space<vmem>>, vector<64x4xf32>
    %cst_6 = arith.constant dense<0.000000e+00> : vector<2x4xf32>
    %7 = tpu.matmul %5, %6, %cst_6 {dimension_numbers = #tpu.dot_dimension_numbers<[1], [0], [0], [1], [0, 0, 1, 1], [], []>} : vector<2x64xf32>, vector<64x4xf32>, vector<2x4xf32> -> vector<2x4xf32>
    %cst_7 = arith.constant 0.000000e+00 : f32
    %8 = vector.broadcast %cst_7 : f32 to vector<2x4xf32>
    %9 = arith.maximumf %7, %8 : vector<2x4xf32>
    %c0_8 = arith.constant 0 : index
    %c0_9 = arith.constant 0 : index
    %10 = vector.load %arg3[%c0_8, %c0_9] : memref<4x64xf32, #tpu.memory_space<vmem>>, vector<4x64xf32>
    %cst_10 = arith.constant dense<0.000000e+00> : vector<2x64xf32>
    %11 = tpu.matmul %9, %10, %cst_10 {dimension_numbers = #tpu.dot_dimension_numbers<[1], [0], [0], [1], [0, 0, 1, 1], [], []>} : vector<2x4xf32>, vector<4x64xf32>, vector<2x64xf32> -> vector<2x64xf32>
    %12 = vector.extract_strided_slice %11 {offsets = [0, 0], sizes = [1, 64], strides = [1, 1]} : vector<2x64xf32> to vector<1x64xf32>
    %13 = vector.extract_strided_slice %11 {offsets = [1, 0], sizes = [1, 64], strides = [1, 1]} : vector<2x64xf32> to vector<1x64xf32>
    %14 = arith.addf %12, %13 : vector<1x64xf32>
    %15 = arith.negf %14 : vector<1x64xf32>
    %16 = math.exp %15 : vector<1x64xf32>
    %cst_11 = arith.constant 1.000000e+00 : f32
    %17 = vector.broadcast %cst_11 : f32 to vector<1x64xf32>
    %18 = arith.addf %17, %16 : vector<1x64xf32>
    %19 = arith.divf %17, %18 : vector<1x64xf32>
    %20 = vector.shape_cast %19 : vector<1x64xf32> to vector<1x64x1xf32>
    %21 = vector.broadcast %20 : vector<1x64x1xf32> to vector<1x64x256xf32>
    %22 = arith.mulf %0, %21 : vector<1x64x256xf32>
    %cst_12 = arith.constant dense<0.000000e+00> : vector<1x256xf32>
    %23 = vector.multi_reduction <add>, %22, %cst_12 [1] : vector<1x64x256xf32> to vector<1x256xf32>
    %cst_13 = arith.constant 6.400000e+01 : f32
    %24 = vector.broadcast %cst_13 : f32 to vector<1x256xf32>
    %25 = arith.divf %23, %24 : vector<1x256xf32>
    %cst_14 = arith.constant dense<0xFF800000> : vector<1x256xf32>
    %26 = vector.multi_reduction <maximumf>, %22, %cst_14 [1] : vector<1x64x256xf32> to vector<1x256xf32>
    %27 = tpu.iota {dimensions = array<i32: 1>} : vector<1x256xi32>
    %c4_i32 = arith.constant 4 : i32
    %28 = vector.broadcast %c4_i32 : i32 to vector<1x256xi32>
    %29 = arith.shrsi %27, %28 : vector<1x256xi32>
    %c15_i32 = arith.constant 15 : i32
    %30 = vector.broadcast %c15_i32 : i32 to vector<1x256xi32>
    %31 = arith.andi %27, %30 : vector<1x256xi32>
    %c-3_i32 = arith.constant -3 : i32
    %32 = vector.broadcast %c-3_i32 : i32 to vector<1x256xi32>
    %33 = arith.addi %29, %32 : vector<1x256xi32>
    %c0_i32 = arith.constant 0 : i32
    %34 = vector.broadcast %c0_i32 : i32 to vector<1x256xi32>
    %35 = arith.cmpi sge, %33, %34 : vector<1x256xi32>
    %c-3_i32_15 = arith.constant -3 : i32
    %36 = vector.broadcast %c-3_i32_15 : i32 to vector<1x256xi32>
    %37 = arith.addi %29, %36 : vector<1x256xi32>
    %c16_i32 = arith.constant 16 : i32
    %38 = vector.broadcast %c16_i32 : i32 to vector<1x256xi32>
    %39 = arith.cmpi slt, %37, %38 : vector<1x256xi32>
    %40 = arith.andi %35, %39 : vector<1x256xi1>
    %c-2_i32 = arith.constant -2 : i32
    %41 = vector.broadcast %c-2_i32 : i32 to vector<1x256xi32>
    %42 = arith.addi %29, %41 : vector<1x256xi32>
    %c0_i32_16 = arith.constant 0 : i32
    %43 = vector.broadcast %c0_i32_16 : i32 to vector<1x256xi32>
    %44 = arith.cmpi sge, %42, %43 : vector<1x256xi32>
    %c-2_i32_17 = arith.constant -2 : i32
    %45 = vector.broadcast %c-2_i32_17 : i32 to vector<1x256xi32>
    %46 = arith.addi %29, %45 : vector<1x256xi32>
    %c16_i32_18 = arith.constant 16 : i32
    %47 = vector.broadcast %c16_i32_18 : i32 to vector<1x256xi32>
    %48 = arith.cmpi slt, %46, %47 : vector<1x256xi32>
    %49 = arith.andi %44, %48 : vector<1x256xi1>
    %c-1_i32 = arith.constant -1 : i32
    %50 = vector.broadcast %c-1_i32 : i32 to vector<1x256xi32>
    %51 = arith.addi %29, %50 : vector<1x256xi32>
    %c0_i32_19 = arith.constant 0 : i32
    %52 = vector.broadcast %c0_i32_19 : i32 to vector<1x256xi32>
    %53 = arith.cmpi sge, %51, %52 : vector<1x256xi32>
    %c-1_i32_20 = arith.constant -1 : i32
    %54 = vector.broadcast %c-1_i32_20 : i32 to vector<1x256xi32>
    %55 = arith.addi %29, %54 : vector<1x256xi32>
    %c16_i32_21 = arith.constant 16 : i32
    %56 = vector.broadcast %c16_i32_21 : i32 to vector<1x256xi32>
    %57 = arith.cmpi slt, %55, %56 : vector<1x256xi32>
    %58 = arith.andi %53, %57 : vector<1x256xi1>
    %c0_i32_22 = arith.constant 0 : i32
    %59 = vector.broadcast %c0_i32_22 : i32 to vector<1x256xi32>
    %60 = arith.addi %29, %59 : vector<1x256xi32>
    %c0_i32_23 = arith.constant 0 : i32
    %61 = vector.broadcast %c0_i32_23 : i32 to vector<1x256xi32>
    %62 = arith.cmpi sge, %60, %61 : vector<1x256xi32>
    %c0_i32_24 = arith.constant 0 : i32
    %63 = vector.broadcast %c0_i32_24 : i32 to vector<1x256xi32>
    %64 = arith.addi %29, %63 : vector<1x256xi32>
    %c16_i32_25 = arith.constant 16 : i32
    %65 = vector.broadcast %c16_i32_25 : i32 to vector<1x256xi32>
    %66 = arith.cmpi slt, %64, %65 : vector<1x256xi32>
    %67 = arith.andi %62, %66 : vector<1x256xi1>
    %c1_i32 = arith.constant 1 : i32
    %68 = vector.broadcast %c1_i32 : i32 to vector<1x256xi32>
    %69 = arith.addi %29, %68 : vector<1x256xi32>
    %c0_i32_26 = arith.constant 0 : i32
    %70 = vector.broadcast %c0_i32_26 : i32 to vector<1x256xi32>
    %71 = arith.cmpi sge, %69, %70 : vector<1x256xi32>
    %c1_i32_27 = arith.constant 1 : i32
    %72 = vector.broadcast %c1_i32_27 : i32 to vector<1x256xi32>
    %73 = arith.addi %29, %72 : vector<1x256xi32>
    %c16_i32_28 = arith.constant 16 : i32
    %74 = vector.broadcast %c16_i32_28 : i32 to vector<1x256xi32>
    %75 = arith.cmpi slt, %73, %74 : vector<1x256xi32>
    %76 = arith.andi %71, %75 : vector<1x256xi1>
    %c2_i32 = arith.constant 2 : i32
    %77 = vector.broadcast %c2_i32 : i32 to vector<1x256xi32>
    %78 = arith.addi %29, %77 : vector<1x256xi32>
    %c0_i32_29 = arith.constant 0 : i32
    %79 = vector.broadcast %c0_i32_29 : i32 to vector<1x256xi32>
    %80 = arith.cmpi sge, %78, %79 : vector<1x256xi32>
    %c2_i32_30 = arith.constant 2 : i32
    %81 = vector.broadcast %c2_i32_30 : i32 to vector<1x256xi32>
    %82 = arith.addi %29, %81 : vector<1x256xi32>
    %c16_i32_31 = arith.constant 16 : i32
    %83 = vector.broadcast %c16_i32_31 : i32 to vector<1x256xi32>
    %84 = arith.cmpi slt, %82, %83 : vector<1x256xi32>
    %85 = arith.andi %80, %84 : vector<1x256xi1>
    %c3_i32 = arith.constant 3 : i32
    %86 = vector.broadcast %c3_i32 : i32 to vector<1x256xi32>
    %87 = arith.addi %29, %86 : vector<1x256xi32>
    %c0_i32_32 = arith.constant 0 : i32
    %88 = vector.broadcast %c0_i32_32 : i32 to vector<1x256xi32>
    %89 = arith.cmpi sge, %87, %88 : vector<1x256xi32>
    %c3_i32_33 = arith.constant 3 : i32
    %90 = vector.broadcast %c3_i32_33 : i32 to vector<1x256xi32>
    %91 = arith.addi %29, %90 : vector<1x256xi32>
    %c16_i32_34 = arith.constant 16 : i32
    %92 = vector.broadcast %c16_i32_34 : i32 to vector<1x256xi32>
    %93 = arith.cmpi slt, %91, %92 : vector<1x256xi32>
    %94 = arith.andi %89, %93 : vector<1x256xi1>
    %c-3_i32_35 = arith.constant -3 : i32
    %95 = vector.broadcast %c-3_i32_35 : i32 to vector<1x256xi32>
    %96 = arith.addi %31, %95 : vector<1x256xi32>
    %c0_i32_36 = arith.constant 0 : i32
    %97 = vector.broadcast %c0_i32_36 : i32 to vector<1x256xi32>
    %98 = arith.cmpi sge, %96, %97 : vector<1x256xi32>
    %c-3_i32_37 = arith.constant -3 : i32
    %99 = vector.broadcast %c-3_i32_37 : i32 to vector<1x256xi32>
    %100 = arith.addi %31, %99 : vector<1x256xi32>
    %c16_i32_38 = arith.constant 16 : i32
    %101 = vector.broadcast %c16_i32_38 : i32 to vector<1x256xi32>
    %102 = arith.cmpi slt, %100, %101 : vector<1x256xi32>
    %103 = arith.andi %98, %102 : vector<1x256xi1>
    %c-2_i32_39 = arith.constant -2 : i32
    %104 = vector.broadcast %c-2_i32_39 : i32 to vector<1x256xi32>
    %105 = arith.addi %31, %104 : vector<1x256xi32>
    %c0_i32_40 = arith.constant 0 : i32
    %106 = vector.broadcast %c0_i32_40 : i32 to vector<1x256xi32>
    %107 = arith.cmpi sge, %105, %106 : vector<1x256xi32>
    %c-2_i32_41 = arith.constant -2 : i32
    %108 = vector.broadcast %c-2_i32_41 : i32 to vector<1x256xi32>
    %109 = arith.addi %31, %108 : vector<1x256xi32>
    %c16_i32_42 = arith.constant 16 : i32
    %110 = vector.broadcast %c16_i32_42 : i32 to vector<1x256xi32>
    %111 = arith.cmpi slt, %109, %110 : vector<1x256xi32>
    %112 = arith.andi %107, %111 : vector<1x256xi1>
    %c-1_i32_43 = arith.constant -1 : i32
    %113 = vector.broadcast %c-1_i32_43 : i32 to vector<1x256xi32>
    %114 = arith.addi %31, %113 : vector<1x256xi32>
    %c0_i32_44 = arith.constant 0 : i32
    %115 = vector.broadcast %c0_i32_44 : i32 to vector<1x256xi32>
    %116 = arith.cmpi sge, %114, %115 : vector<1x256xi32>
    %c-1_i32_45 = arith.constant -1 : i32
    %117 = vector.broadcast %c-1_i32_45 : i32 to vector<1x256xi32>
    %118 = arith.addi %31, %117 : vector<1x256xi32>
    %c16_i32_46 = arith.constant 16 : i32
    %119 = vector.broadcast %c16_i32_46 : i32 to vector<1x256xi32>
    %120 = arith.cmpi slt, %118, %119 : vector<1x256xi32>
    %121 = arith.andi %116, %120 : vector<1x256xi1>
    %c0_i32_47 = arith.constant 0 : i32
    %122 = vector.broadcast %c0_i32_47 : i32 to vector<1x256xi32>
    %123 = arith.addi %31, %122 : vector<1x256xi32>
    %c0_i32_48 = arith.constant 0 : i32
    %124 = vector.broadcast %c0_i32_48 : i32 to vector<1x256xi32>
    %125 = arith.cmpi sge, %123, %124 : vector<1x256xi32>
    %c0_i32_49 = arith.constant 0 : i32
    %126 = vector.broadcast %c0_i32_49 : i32 to vector<1x256xi32>
    %127 = arith.addi %31, %126 : vector<1x256xi32>
    %c16_i32_50 = arith.constant 16 : i32
    %128 = vector.broadcast %c16_i32_50 : i32 to vector<1x256xi32>
    %129 = arith.cmpi slt, %127, %128 : vector<1x256xi32>
    %130 = arith.andi %125, %129 : vector<1x256xi1>
    %c1_i32_51 = arith.constant 1 : i32
    %131 = vector.broadcast %c1_i32_51 : i32 to vector<1x256xi32>
    %132 = arith.addi %31, %131 : vector<1x256xi32>
    %c0_i32_52 = arith.constant 0 : i32
    %133 = vector.broadcast %c0_i32_52 : i32 to vector<1x256xi32>
    %134 = arith.cmpi sge, %132, %133 : vector<1x256xi32>
    %c1_i32_53 = arith.constant 1 : i32
    %135 = vector.broadcast %c1_i32_53 : i32 to vector<1x256xi32>
    %136 = arith.addi %31, %135 : vector<1x256xi32>
    %c16_i32_54 = arith.constant 16 : i32
    %137 = vector.broadcast %c16_i32_54 : i32 to vector<1x256xi32>
    %138 = arith.cmpi slt, %136, %137 : vector<1x256xi32>
    %139 = arith.andi %134, %138 : vector<1x256xi1>
    %c2_i32_55 = arith.constant 2 : i32
    %140 = vector.broadcast %c2_i32_55 : i32 to vector<1x256xi32>
    %141 = arith.addi %31, %140 : vector<1x256xi32>
    %c0_i32_56 = arith.constant 0 : i32
    %142 = vector.broadcast %c0_i32_56 : i32 to vector<1x256xi32>
    %143 = arith.cmpi sge, %141, %142 : vector<1x256xi32>
    %c2_i32_57 = arith.constant 2 : i32
    %144 = vector.broadcast %c2_i32_57 : i32 to vector<1x256xi32>
    %145 = arith.addi %31, %144 : vector<1x256xi32>
    %c16_i32_58 = arith.constant 16 : i32
    %146 = vector.broadcast %c16_i32_58 : i32 to vector<1x256xi32>
    %147 = arith.cmpi slt, %145, %146 : vector<1x256xi32>
    %148 = arith.andi %143, %147 : vector<1x256xi1>
    %c3_i32_59 = arith.constant 3 : i32
    %149 = vector.broadcast %c3_i32_59 : i32 to vector<1x256xi32>
    %150 = arith.addi %31, %149 : vector<1x256xi32>
    %c0_i32_60 = arith.constant 0 : i32
    %151 = vector.broadcast %c0_i32_60 : i32 to vector<1x256xi32>
    %152 = arith.cmpi sge, %150, %151 : vector<1x256xi32>
    %c3_i32_61 = arith.constant 3 : i32
    %153 = vector.broadcast %c3_i32_61 : i32 to vector<1x256xi32>
    %154 = arith.addi %31, %153 : vector<1x256xi32>
    %c16_i32_62 = arith.constant 16 : i32
    %155 = vector.broadcast %c16_i32_62 : i32 to vector<1x256xi32>
    %156 = arith.cmpi slt, %154, %155 : vector<1x256xi32>
    %157 = arith.andi %152, %156 : vector<1x256xi1>
    %cst_63 = arith.constant 0.000000e+00 : f32
    %158 = vector.broadcast %cst_63 : f32 to vector<1x256xf32>
    %c51_i32 = arith.constant 51 : i32
    %159 = tpu.dynamic_rotate %25 by %c51_i32 dim 1 : vector<1x256xf32>, i32 -> vector<1x256xf32>
    %c51_i32_64 = arith.constant 51 : i32
    %160 = tpu.dynamic_rotate %26 by %c51_i32_64 dim 1 : vector<1x256xf32>, i32 -> vector<1x256xf32>
    %c0_65 = arith.constant 0 : index
    %161 = memref.load %arg4[%c0_65] : memref<98xf32, #tpu.memory_space<smem>>
    %c49 = arith.constant 49 : index
    %162 = memref.load %arg4[%c49] : memref<98xf32, #tpu.memory_space<smem>>
    %163 = vector.broadcast %161 : f32 to vector<1x256xf32>
    %164 = arith.mulf %163, %159 : vector<1x256xf32>
    %165 = vector.broadcast %162 : f32 to vector<1x256xf32>
    %166 = arith.mulf %165, %160 : vector<1x256xf32>
    %167 = arith.addf %164, %166 : vector<1x256xf32>
    %168 = arith.andi %40, %103 : vector<1x256xi1>
    %cst_66 = arith.constant 0.000000e+00 : f32
    %169 = vector.broadcast %cst_66 : f32 to vector<1x256xf32>
    %170 = arith.select %168, %167, %169 : vector<1x256xi1>, vector<1x256xf32>
    %171 = arith.addf %158, %170 : vector<1x256xf32>
    %c50_i32 = arith.constant 50 : i32
    %172 = tpu.dynamic_rotate %25 by %c50_i32 dim 1 : vector<1x256xf32>, i32 -> vector<1x256xf32>
    %c50_i32_67 = arith.constant 50 : i32
    %173 = tpu.dynamic_rotate %26 by %c50_i32_67 dim 1 : vector<1x256xf32>, i32 -> vector<1x256xf32>
    %c1 = arith.constant 1 : index
    %174 = memref.load %arg4[%c1] : memref<98xf32, #tpu.memory_space<smem>>
    %c50 = arith.constant 50 : index
    %175 = memref.load %arg4[%c50] : memref<98xf32, #tpu.memory_space<smem>>
    %176 = vector.broadcast %174 : f32 to vector<1x256xf32>
    %177 = arith.mulf %176, %172 : vector<1x256xf32>
    %178 = vector.broadcast %175 : f32 to vector<1x256xf32>
    %179 = arith.mulf %178, %173 : vector<1x256xf32>
    %180 = arith.addf %177, %179 : vector<1x256xf32>
    %181 = arith.andi %40, %112 : vector<1x256xi1>
    %cst_68 = arith.constant 0.000000e+00 : f32
    %182 = vector.broadcast %cst_68 : f32 to vector<1x256xf32>
    %183 = arith.select %181, %180, %182 : vector<1x256xi1>, vector<1x256xf32>
    %184 = arith.addf %171, %183 : vector<1x256xf32>
    %c49_i32 = arith.constant 49 : i32
    %185 = tpu.dynamic_rotate %25 by %c49_i32 dim 1 : vector<1x256xf32>, i32 -> vector<1x256xf32>
    %c49_i32_69 = arith.constant 49 : i32
    %186 = tpu.dynamic_rotate %26 by %c49_i32_69 dim 1 : vector<1x256xf32>, i32 -> vector<1x256xf32>
    %c2 = arith.constant 2 : index
    %187 = memref.load %arg4[%c2] : memref<98xf32, #tpu.memory_space<smem>>
    %c51 = arith.constant 51 : index
    %188 = memref.load %arg4[%c51] : memref<98xf32, #tpu.memory_space<smem>>
    %189 = vector.broadcast %187 : f32 to vector<1x256xf32>
    %190 = arith.mulf %189, %185 : vector<1x256xf32>
    %191 = vector.broadcast %188 : f32 to vector<1x256xf32>
    %192 = arith.mulf %191, %186 : vector<1x256xf32>
    %193 = arith.addf %190, %192 : vector<1x256xf32>
    %194 = arith.andi %40, %121 : vector<1x256xi1>
    %cst_70 = arith.constant 0.000000e+00 : f32
    %195 = vector.broadcast %cst_70 : f32 to vector<1x256xf32>
    %196 = arith.select %194, %193, %195 : vector<1x256xi1>, vector<1x256xf32>
    %197 = arith.addf %184, %196 : vector<1x256xf32>
    %c48_i32 = arith.constant 48 : i32
    %198 = tpu.dynamic_rotate %25 by %c48_i32 dim 1 : vector<1x256xf32>, i32 -> vector<1x256xf32>
    %c48_i32_71 = arith.constant 48 : i32
    %199 = tpu.dynamic_rotate %26 by %c48_i32_71 dim 1 : vector<1x256xf32>, i32 -> vector<1x256xf32>
    %c3 = arith.constant 3 : index
    %200 = memref.load %arg4[%c3] : memref<98xf32, #tpu.memory_space<smem>>
    %c52 = arith.constant 52 : index
    %201 = memref.load %arg4[%c52] : memref<98xf32, #tpu.memory_space<smem>>
    %202 = vector.broadcast %200 : f32 to vector<1x256xf32>
    %203 = arith.mulf %202, %198 : vector<1x256xf32>
    %204 = vector.broadcast %201 : f32 to vector<1x256xf32>
    %205 = arith.mulf %204, %199 : vector<1x256xf32>
    %206 = arith.addf %203, %205 : vector<1x256xf32>
    %207 = arith.andi %40, %130 : vector<1x256xi1>
    %cst_72 = arith.constant 0.000000e+00 : f32
    %208 = vector.broadcast %cst_72 : f32 to vector<1x256xf32>
    %209 = arith.select %207, %206, %208 : vector<1x256xi1>, vector<1x256xf32>
    %210 = arith.addf %197, %209 : vector<1x256xf32>
    %c47_i32 = arith.constant 47 : i32
    %211 = tpu.dynamic_rotate %25 by %c47_i32 dim 1 : vector<1x256xf32>, i32 -> vector<1x256xf32>
    %c47_i32_73 = arith.constant 47 : i32
    %212 = tpu.dynamic_rotate %26 by %c47_i32_73 dim 1 : vector<1x256xf32>, i32 -> vector<1x256xf32>
    %c4 = arith.constant 4 : index
    %213 = memref.load %arg4[%c4] : memref<98xf32, #tpu.memory_space<smem>>
    %c53 = arith.constant 53 : index
    %214 = memref.load %arg4[%c53] : memref<98xf32, #tpu.memory_space<smem>>
    %215 = vector.broadcast %213 : f32 to vector<1x256xf32>
    %216 = arith.mulf %215, %211 : vector<1x256xf32>
    %217 = vector.broadcast %214 : f32 to vector<1x256xf32>
    %218 = arith.mulf %217, %212 : vector<1x256xf32>
    %219 = arith.addf %216, %218 : vector<1x256xf32>
    %220 = arith.andi %40, %139 : vector<1x256xi1>
    %cst_74 = arith.constant 0.000000e+00 : f32
    %221 = vector.broadcast %cst_74 : f32 to vector<1x256xf32>
    %222 = arith.select %220, %219, %221 : vector<1x256xi1>, vector<1x256xf32>
    %223 = arith.addf %210, %222 : vector<1x256xf32>
    %c46_i32 = arith.constant 46 : i32
    %224 = tpu.dynamic_rotate %25 by %c46_i32 dim 1 : vector<1x256xf32>, i32 -> vector<1x256xf32>
    %c46_i32_75 = arith.constant 46 : i32
    %225 = tpu.dynamic_rotate %26 by %c46_i32_75 dim 1 : vector<1x256xf32>, i32 -> vector<1x256xf32>
    %c5 = arith.constant 5 : index
    %226 = memref.load %arg4[%c5] : memref<98xf32, #tpu.memory_space<smem>>
    %c54 = arith.constant 54 : index
    %227 = memref.load %arg4[%c54] : memref<98xf32, #tpu.memory_space<smem>>
    %228 = vector.broadcast %226 : f32 to vector<1x256xf32>
    %229 = arith.mulf %228, %224 : vector<1x256xf32>
    %230 = vector.broadcast %227 : f32 to vector<1x256xf32>
    %231 = arith.mulf %230, %225 : vector<1x256xf32>
    %232 = arith.addf %229, %231 : vector<1x256xf32>
    %233 = arith.andi %40, %148 : vector<1x256xi1>
    %cst_76 = arith.constant 0.000000e+00 : f32
    %234 = vector.broadcast %cst_76 : f32 to vector<1x256xf32>
    %235 = arith.select %233, %232, %234 : vector<1x256xi1>, vector<1x256xf32>
    %236 = arith.addf %223, %235 : vector<1x256xf32>
    %c45_i32 = arith.constant 45 : i32
    %237 = tpu.dynamic_rotate %25 by %c45_i32 dim 1 : vector<1x256xf32>, i32 -> vector<1x256xf32>
    %c45_i32_77 = arith.constant 45 : i32
    %238 = tpu.dynamic_rotate %26 by %c45_i32_77 dim 1 : vector<1x256xf32>, i32 -> vector<1x256xf32>
    %c6 = arith.constant 6 : index
    %239 = memref.load %arg4[%c6] : memref<98xf32, #tpu.memory_space<smem>>
    %c55 = arith.constant 55 : index
    %240 = memref.load %arg4[%c55] : memref<98xf32, #tpu.memory_space<smem>>
    %241 = vector.broadcast %239 : f32 to vector<1x256xf32>
    %242 = arith.mulf %241, %237 : vector<1x256xf32>
    %243 = vector.broadcast %240 : f32 to vector<1x256xf32>
    %244 = arith.mulf %243, %238 : vector<1x256xf32>
    %245 = arith.addf %242, %244 : vector<1x256xf32>
    %246 = arith.andi %40, %157 : vector<1x256xi1>
    %cst_78 = arith.constant 0.000000e+00 : f32
    %247 = vector.broadcast %cst_78 : f32 to vector<1x256xf32>
    %248 = arith.select %246, %245, %247 : vector<1x256xi1>, vector<1x256xf32>
    %249 = arith.addf %236, %248 : vector<1x256xf32>
    %c35_i32 = arith.constant 35 : i32
    %250 = tpu.dynamic_rotate %25 by %c35_i32 dim 1 : vector<1x256xf32>, i32 -> vector<1x256xf32>
    %c35_i32_79 = arith.constant 35 : i32
    %251 = tpu.dynamic_rotate %26 by %c35_i32_79 dim 1 : vector<1x256xf32>, i32 -> vector<1x256xf32>
    %c7 = arith.constant 7 : index
    %252 = memref.load %arg4[%c7] : memref<98xf32, #tpu.memory_space<smem>>
    %c56 = arith.constant 56 : index
    %253 = memref.load %arg4[%c56] : memref<98xf32, #tpu.memory_space<smem>>
    %254 = vector.broadcast %252 : f32 to vector<1x256xf32>
    %255 = arith.mulf %254, %250 : vector<1x256xf32>
    %256 = vector.broadcast %253 : f32 to vector<1x256xf32>
    %257 = arith.mulf %256, %251 : vector<1x256xf32>
    %258 = arith.addf %255, %257 : vector<1x256xf32>
    %259 = arith.andi %49, %103 : vector<1x256xi1>
    %cst_80 = arith.constant 0.000000e+00 : f32
    %260 = vector.broadcast %cst_80 : f32 to vector<1x256xf32>
    %261 = arith.select %259, %258, %260 : vector<1x256xi1>, vector<1x256xf32>
    %262 = arith.addf %249, %261 : vector<1x256xf32>
    %c34_i32 = arith.constant 34 : i32
    %263 = tpu.dynamic_rotate %25 by %c34_i32 dim 1 : vector<1x256xf32>, i32 -> vector<1x256xf32>
    %c34_i32_81 = arith.constant 34 : i32
    %264 = tpu.dynamic_rotate %26 by %c34_i32_81 dim 1 : vector<1x256xf32>, i32 -> vector<1x256xf32>
    %c8 = arith.constant 8 : index
    %265 = memref.load %arg4[%c8] : memref<98xf32, #tpu.memory_space<smem>>
    %c57 = arith.constant 57 : index
    %266 = memref.load %arg4[%c57] : memref<98xf32, #tpu.memory_space<smem>>
    %267 = vector.broadcast %265 : f32 to vector<1x256xf32>
    %268 = arith.mulf %267, %263 : vector<1x256xf32>
    %269 = vector.broadcast %266 : f32 to vector<1x256xf32>
    %270 = arith.mulf %269, %264 : vector<1x256xf32>
    %271 = arith.addf %268, %270 : vector<1x256xf32>
    %272 = arith.andi %49, %112 : vector<1x256xi1>
    %cst_82 = arith.constant 0.000000e+00 : f32
    %273 = vector.broadcast %cst_82 : f32 to vector<1x256xf32>
    %274 = arith.select %272, %271, %273 : vector<1x256xi1>, vector<1x256xf32>
    %275 = arith.addf %262, %274 : vector<1x256xf32>
    %c33_i32 = arith.constant 33 : i32
    %276 = tpu.dynamic_rotate %25 by %c33_i32 dim 1 : vector<1x256xf32>, i32 -> vector<1x256xf32>
    %c33_i32_83 = arith.constant 33 : i32
    %277 = tpu.dynamic_rotate %26 by %c33_i32_83 dim 1 : vector<1x256xf32>, i32 -> vector<1x256xf32>
    %c9 = arith.constant 9 : index
    %278 = memref.load %arg4[%c9] : memref<98xf32, #tpu.memory_space<smem>>
    %c58 = arith.constant 58 : index
    %279 = memref.load %arg4[%c58] : memref<98xf32, #tpu.memory_space<smem>>
    %280 = vector.broadcast %278 : f32 to vector<1x256xf32>
    %281 = arith.mulf %280, %276 : vector<1x256xf32>
    %282 = vector.broadcast %279 : f32 to vector<1x256xf32>
    %283 = arith.mulf %282, %277 : vector<1x256xf32>
    %284 = arith.addf %281, %283 : vector<1x256xf32>
    %285 = arith.andi %49, %121 : vector<1x256xi1>
    %cst_84 = arith.constant 0.000000e+00 : f32
    %286 = vector.broadcast %cst_84 : f32 to vector<1x256xf32>
    %287 = arith.select %285, %284, %286 : vector<1x256xi1>, vector<1x256xf32>
    %288 = arith.addf %275, %287 : vector<1x256xf32>
    %c32_i32 = arith.constant 32 : i32
    %289 = tpu.dynamic_rotate %25 by %c32_i32 dim 1 : vector<1x256xf32>, i32 -> vector<1x256xf32>
    %c32_i32_85 = arith.constant 32 : i32
    %290 = tpu.dynamic_rotate %26 by %c32_i32_85 dim 1 : vector<1x256xf32>, i32 -> vector<1x256xf32>
    %c10 = arith.constant 10 : index
    %291 = memref.load %arg4[%c10] : memref<98xf32, #tpu.memory_space<smem>>
    %c59 = arith.constant 59 : index
    %292 = memref.load %arg4[%c59] : memref<98xf32, #tpu.memory_space<smem>>
    %293 = vector.broadcast %291 : f32 to vector<1x256xf32>
    %294 = arith.mulf %293, %289 : vector<1x256xf32>
    %295 = vector.broadcast %292 : f32 to vector<1x256xf32>
    %296 = arith.mulf %295, %290 : vector<1x256xf32>
    %297 = arith.addf %294, %296 : vector<1x256xf32>
    %298 = arith.andi %49, %130 : vector<1x256xi1>
    %cst_86 = arith.constant 0.000000e+00 : f32
    %299 = vector.broadcast %cst_86 : f32 to vector<1x256xf32>
    %300 = arith.select %298, %297, %299 : vector<1x256xi1>, vector<1x256xf32>
    %301 = arith.addf %288, %300 : vector<1x256xf32>
    %c31_i32 = arith.constant 31 : i32
    %302 = tpu.dynamic_rotate %25 by %c31_i32 dim 1 : vector<1x256xf32>, i32 -> vector<1x256xf32>
    %c31_i32_87 = arith.constant 31 : i32
    %303 = tpu.dynamic_rotate %26 by %c31_i32_87 dim 1 : vector<1x256xf32>, i32 -> vector<1x256xf32>
    %c11 = arith.constant 11 : index
    %304 = memref.load %arg4[%c11] : memref<98xf32, #tpu.memory_space<smem>>
    %c60 = arith.constant 60 : index
    %305 = memref.load %arg4[%c60] : memref<98xf32, #tpu.memory_space<smem>>
    %306 = vector.broadcast %304 : f32 to vector<1x256xf32>
    %307 = arith.mulf %306, %302 : vector<1x256xf32>
    %308 = vector.broadcast %305 : f32 to vector<1x256xf32>
    %309 = arith.mulf %308, %303 : vector<1x256xf32>
    %310 = arith.addf %307, %309 : vector<1x256xf32>
    %311 = arith.andi %49, %139 : vector<1x256xi1>
    %cst_88 = arith.constant 0.000000e+00 : f32
    %312 = vector.broadcast %cst_88 : f32 to vector<1x256xf32>
    %313 = arith.select %311, %310, %312 : vector<1x256xi1>, vector<1x256xf32>
    %314 = arith.addf %301, %313 : vector<1x256xf32>
    %c30_i32 = arith.constant 30 : i32
    %315 = tpu.dynamic_rotate %25 by %c30_i32 dim 1 : vector<1x256xf32>, i32 -> vector<1x256xf32>
    %c30_i32_89 = arith.constant 30 : i32
    %316 = tpu.dynamic_rotate %26 by %c30_i32_89 dim 1 : vector<1x256xf32>, i32 -> vector<1x256xf32>
    %c12 = arith.constant 12 : index
    %317 = memref.load %arg4[%c12] : memref<98xf32, #tpu.memory_space<smem>>
    %c61 = arith.constant 61 : index
    %318 = memref.load %arg4[%c61] : memref<98xf32, #tpu.memory_space<smem>>
    %319 = vector.broadcast %317 : f32 to vector<1x256xf32>
    %320 = arith.mulf %319, %315 : vector<1x256xf32>
    %321 = vector.broadcast %318 : f32 to vector<1x256xf32>
    %322 = arith.mulf %321, %316 : vector<1x256xf32>
    %323 = arith.addf %320, %322 : vector<1x256xf32>
    %324 = arith.andi %49, %148 : vector<1x256xi1>
    %cst_90 = arith.constant 0.000000e+00 : f32
    %325 = vector.broadcast %cst_90 : f32 to vector<1x256xf32>
    %326 = arith.select %324, %323, %325 : vector<1x256xi1>, vector<1x256xf32>
    %327 = arith.addf %314, %326 : vector<1x256xf32>
    %c29_i32 = arith.constant 29 : i32
    %328 = tpu.dynamic_rotate %25 by %c29_i32 dim 1 : vector<1x256xf32>, i32 -> vector<1x256xf32>
    %c29_i32_91 = arith.constant 29 : i32
    %329 = tpu.dynamic_rotate %26 by %c29_i32_91 dim 1 : vector<1x256xf32>, i32 -> vector<1x256xf32>
    %c13 = arith.constant 13 : index
    %330 = memref.load %arg4[%c13] : memref<98xf32, #tpu.memory_space<smem>>
    %c62 = arith.constant 62 : index
    %331 = memref.load %arg4[%c62] : memref<98xf32, #tpu.memory_space<smem>>
    %332 = vector.broadcast %330 : f32 to vector<1x256xf32>
    %333 = arith.mulf %332, %328 : vector<1x256xf32>
    %334 = vector.broadcast %331 : f32 to vector<1x256xf32>
    %335 = arith.mulf %334, %329 : vector<1x256xf32>
    %336 = arith.addf %333, %335 : vector<1x256xf32>
    %337 = arith.andi %49, %157 : vector<1x256xi1>
    %cst_92 = arith.constant 0.000000e+00 : f32
    %338 = vector.broadcast %cst_92 : f32 to vector<1x256xf32>
    %339 = arith.select %337, %336, %338 : vector<1x256xi1>, vector<1x256xf32>
    %340 = arith.addf %327, %339 : vector<1x256xf32>
    %c19_i32 = arith.constant 19 : i32
    %341 = tpu.dynamic_rotate %25 by %c19_i32 dim 1 : vector<1x256xf32>, i32 -> vector<1x256xf32>
    %c19_i32_93 = arith.constant 19 : i32
    %342 = tpu.dynamic_rotate %26 by %c19_i32_93 dim 1 : vector<1x256xf32>, i32 -> vector<1x256xf32>
    %c14 = arith.constant 14 : index
    %343 = memref.load %arg4[%c14] : memref<98xf32, #tpu.memory_space<smem>>
    %c63 = arith.constant 63 : index
    %344 = memref.load %arg4[%c63] : memref<98xf32, #tpu.memory_space<smem>>
    %345 = vector.broadcast %343 : f32 to vector<1x256xf32>
    %346 = arith.mulf %345, %341 : vector<1x256xf32>
    %347 = vector.broadcast %344 : f32 to vector<1x256xf32>
    %348 = arith.mulf %347, %342 : vector<1x256xf32>
    %349 = arith.addf %346, %348 : vector<1x256xf32>
    %350 = arith.andi %58, %103 : vector<1x256xi1>
    %cst_94 = arith.constant 0.000000e+00 : f32
    %351 = vector.broadcast %cst_94 : f32 to vector<1x256xf32>
    %352 = arith.select %350, %349, %351 : vector<1x256xi1>, vector<1x256xf32>
    %353 = arith.addf %340, %352 : vector<1x256xf32>
    %c18_i32 = arith.constant 18 : i32
    %354 = tpu.dynamic_rotate %25 by %c18_i32 dim 1 : vector<1x256xf32>, i32 -> vector<1x256xf32>
    %c18_i32_95 = arith.constant 18 : i32
    %355 = tpu.dynamic_rotate %26 by %c18_i32_95 dim 1 : vector<1x256xf32>, i32 -> vector<1x256xf32>
    %c15 = arith.constant 15 : index
    %356 = memref.load %arg4[%c15] : memref<98xf32, #tpu.memory_space<smem>>
    %c64 = arith.constant 64 : index
    %357 = memref.load %arg4[%c64] : memref<98xf32, #tpu.memory_space<smem>>
    %358 = vector.broadcast %356 : f32 to vector<1x256xf32>
    %359 = arith.mulf %358, %354 : vector<1x256xf32>
    %360 = vector.broadcast %357 : f32 to vector<1x256xf32>
    %361 = arith.mulf %360, %355 : vector<1x256xf32>
    %362 = arith.addf %359, %361 : vector<1x256xf32>
    %363 = arith.andi %58, %112 : vector<1x256xi1>
    %cst_96 = arith.constant 0.000000e+00 : f32
    %364 = vector.broadcast %cst_96 : f32 to vector<1x256xf32>
    %365 = arith.select %363, %362, %364 : vector<1x256xi1>, vector<1x256xf32>
    %366 = arith.addf %353, %365 : vector<1x256xf32>
    %c17_i32 = arith.constant 17 : i32
    %367 = tpu.dynamic_rotate %25 by %c17_i32 dim 1 : vector<1x256xf32>, i32 -> vector<1x256xf32>
    %c17_i32_97 = arith.constant 17 : i32
    %368 = tpu.dynamic_rotate %26 by %c17_i32_97 dim 1 : vector<1x256xf32>, i32 -> vector<1x256xf32>
    %c16 = arith.constant 16 : index
    %369 = memref.load %arg4[%c16] : memref<98xf32, #tpu.memory_space<smem>>
    %c65 = arith.constant 65 : index
    %370 = memref.load %arg4[%c65] : memref<98xf32, #tpu.memory_space<smem>>
    %371 = vector.broadcast %369 : f32 to vector<1x256xf32>
    %372 = arith.mulf %371, %367 : vector<1x256xf32>
    %373 = vector.broadcast %370 : f32 to vector<1x256xf32>
    %374 = arith.mulf %373, %368 : vector<1x256xf32>
    %375 = arith.addf %372, %374 : vector<1x256xf32>
    %376 = arith.andi %58, %121 : vector<1x256xi1>
    %cst_98 = arith.constant 0.000000e+00 : f32
    %377 = vector.broadcast %cst_98 : f32 to vector<1x256xf32>
    %378 = arith.select %376, %375, %377 : vector<1x256xi1>, vector<1x256xf32>
    %379 = arith.addf %366, %378 : vector<1x256xf32>
    %c16_i32_99 = arith.constant 16 : i32
    %380 = tpu.dynamic_rotate %25 by %c16_i32_99 dim 1 : vector<1x256xf32>, i32 -> vector<1x256xf32>
    %c16_i32_100 = arith.constant 16 : i32
    %381 = tpu.dynamic_rotate %26 by %c16_i32_100 dim 1 : vector<1x256xf32>, i32 -> vector<1x256xf32>
    %c17 = arith.constant 17 : index
    %382 = memref.load %arg4[%c17] : memref<98xf32, #tpu.memory_space<smem>>
    %c66 = arith.constant 66 : index
    %383 = memref.load %arg4[%c66] : memref<98xf32, #tpu.memory_space<smem>>
    %384 = vector.broadcast %382 : f32 to vector<1x256xf32>
    %385 = arith.mulf %384, %380 : vector<1x256xf32>
    %386 = vector.broadcast %383 : f32 to vector<1x256xf32>
    %387 = arith.mulf %386, %381 : vector<1x256xf32>
    %388 = arith.addf %385, %387 : vector<1x256xf32>
    %389 = arith.andi %58, %130 : vector<1x256xi1>
    %cst_101 = arith.constant 0.000000e+00 : f32
    %390 = vector.broadcast %cst_101 : f32 to vector<1x256xf32>
    %391 = arith.select %389, %388, %390 : vector<1x256xi1>, vector<1x256xf32>
    %392 = arith.addf %379, %391 : vector<1x256xf32>
    %c15_i32_102 = arith.constant 15 : i32
    %393 = tpu.dynamic_rotate %25 by %c15_i32_102 dim 1 : vector<1x256xf32>, i32 -> vector<1x256xf32>
    %c15_i32_103 = arith.constant 15 : i32
    %394 = tpu.dynamic_rotate %26 by %c15_i32_103 dim 1 : vector<1x256xf32>, i32 -> vector<1x256xf32>
    %c18 = arith.constant 18 : index
    %395 = memref.load %arg4[%c18] : memref<98xf32, #tpu.memory_space<smem>>
    %c67 = arith.constant 67 : index
    %396 = memref.load %arg4[%c67] : memref<98xf32, #tpu.memory_space<smem>>
    %397 = vector.broadcast %395 : f32 to vector<1x256xf32>
    %398 = arith.mulf %397, %393 : vector<1x256xf32>
    %399 = vector.broadcast %396 : f32 to vector<1x256xf32>
    %400 = arith.mulf %399, %394 : vector<1x256xf32>
    %401 = arith.addf %398, %400 : vector<1x256xf32>
    %402 = arith.andi %58, %139 : vector<1x256xi1>
    %cst_104 = arith.constant 0.000000e+00 : f32
    %403 = vector.broadcast %cst_104 : f32 to vector<1x256xf32>
    %404 = arith.select %402, %401, %403 : vector<1x256xi1>, vector<1x256xf32>
    %405 = arith.addf %392, %404 : vector<1x256xf32>
    %c14_i32 = arith.constant 14 : i32
    %406 = tpu.dynamic_rotate %25 by %c14_i32 dim 1 : vector<1x256xf32>, i32 -> vector<1x256xf32>
    %c14_i32_105 = arith.constant 14 : i32
    %407 = tpu.dynamic_rotate %26 by %c14_i32_105 dim 1 : vector<1x256xf32>, i32 -> vector<1x256xf32>
    %c19 = arith.constant 19 : index
    %408 = memref.load %arg4[%c19] : memref<98xf32, #tpu.memory_space<smem>>
    %c68 = arith.constant 68 : index
    %409 = memref.load %arg4[%c68] : memref<98xf32, #tpu.memory_space<smem>>
    %410 = vector.broadcast %408 : f32 to vector<1x256xf32>
    %411 = arith.mulf %410, %406 : vector<1x256xf32>
    %412 = vector.broadcast %409 : f32 to vector<1x256xf32>
    %413 = arith.mulf %412, %407 : vector<1x256xf32>
    %414 = arith.addf %411, %413 : vector<1x256xf32>
    %415 = arith.andi %58, %148 : vector<1x256xi1>
    %cst_106 = arith.constant 0.000000e+00 : f32
    %416 = vector.broadcast %cst_106 : f32 to vector<1x256xf32>
    %417 = arith.select %415, %414, %416 : vector<1x256xi1>, vector<1x256xf32>
    %418 = arith.addf %405, %417 : vector<1x256xf32>
    %c13_i32 = arith.constant 13 : i32
    %419 = tpu.dynamic_rotate %25 by %c13_i32 dim 1 : vector<1x256xf32>, i32 -> vector<1x256xf32>
    %c13_i32_107 = arith.constant 13 : i32
    %420 = tpu.dynamic_rotate %26 by %c13_i32_107 dim 1 : vector<1x256xf32>, i32 -> vector<1x256xf32>
    %c20 = arith.constant 20 : index
    %421 = memref.load %arg4[%c20] : memref<98xf32, #tpu.memory_space<smem>>
    %c69 = arith.constant 69 : index
    %422 = memref.load %arg4[%c69] : memref<98xf32, #tpu.memory_space<smem>>
    %423 = vector.broadcast %421 : f32 to vector<1x256xf32>
    %424 = arith.mulf %423, %419 : vector<1x256xf32>
    %425 = vector.broadcast %422 : f32 to vector<1x256xf32>
    %426 = arith.mulf %425, %420 : vector<1x256xf32>
    %427 = arith.addf %424, %426 : vector<1x256xf32>
    %428 = arith.andi %58, %157 : vector<1x256xi1>
    %cst_108 = arith.constant 0.000000e+00 : f32
    %429 = vector.broadcast %cst_108 : f32 to vector<1x256xf32>
    %430 = arith.select %428, %427, %429 : vector<1x256xi1>, vector<1x256xf32>
    %431 = arith.addf %418, %430 : vector<1x256xf32>
    %c3_i32_109 = arith.constant 3 : i32
    %432 = tpu.dynamic_rotate %25 by %c3_i32_109 dim 1 : vector<1x256xf32>, i32 -> vector<1x256xf32>
    %c3_i32_110 = arith.constant 3 : i32
    %433 = tpu.dynamic_rotate %26 by %c3_i32_110 dim 1 : vector<1x256xf32>, i32 -> vector<1x256xf32>
    %c21 = arith.constant 21 : index
    %434 = memref.load %arg4[%c21] : memref<98xf32, #tpu.memory_space<smem>>
    %c70 = arith.constant 70 : index
    %435 = memref.load %arg4[%c70] : memref<98xf32, #tpu.memory_space<smem>>
    %436 = vector.broadcast %434 : f32 to vector<1x256xf32>
    %437 = arith.mulf %436, %432 : vector<1x256xf32>
    %438 = vector.broadcast %435 : f32 to vector<1x256xf32>
    %439 = arith.mulf %438, %433 : vector<1x256xf32>
    %440 = arith.addf %437, %439 : vector<1x256xf32>
    %441 = arith.andi %67, %103 : vector<1x256xi1>
    %cst_111 = arith.constant 0.000000e+00 : f32
    %442 = vector.broadcast %cst_111 : f32 to vector<1x256xf32>
    %443 = arith.select %441, %440, %442 : vector<1x256xi1>, vector<1x256xf32>
    %444 = arith.addf %431, %443 : vector<1x256xf32>
    %c2_i32_112 = arith.constant 2 : i32
    %445 = tpu.dynamic_rotate %25 by %c2_i32_112 dim 1 : vector<1x256xf32>, i32 -> vector<1x256xf32>
    %c2_i32_113 = arith.constant 2 : i32
    %446 = tpu.dynamic_rotate %26 by %c2_i32_113 dim 1 : vector<1x256xf32>, i32 -> vector<1x256xf32>
    %c22 = arith.constant 22 : index
    %447 = memref.load %arg4[%c22] : memref<98xf32, #tpu.memory_space<smem>>
    %c71 = arith.constant 71 : index
    %448 = memref.load %arg4[%c71] : memref<98xf32, #tpu.memory_space<smem>>
    %449 = vector.broadcast %447 : f32 to vector<1x256xf32>
    %450 = arith.mulf %449, %445 : vector<1x256xf32>
    %451 = vector.broadcast %448 : f32 to vector<1x256xf32>
    %452 = arith.mulf %451, %446 : vector<1x256xf32>
    %453 = arith.addf %450, %452 : vector<1x256xf32>
    %454 = arith.andi %67, %112 : vector<1x256xi1>
    %cst_114 = arith.constant 0.000000e+00 : f32
    %455 = vector.broadcast %cst_114 : f32 to vector<1x256xf32>
    %456 = arith.select %454, %453, %455 : vector<1x256xi1>, vector<1x256xf32>
    %457 = arith.addf %444, %456 : vector<1x256xf32>
    %c1_i32_115 = arith.constant 1 : i32
    %458 = tpu.dynamic_rotate %25 by %c1_i32_115 dim 1 : vector<1x256xf32>, i32 -> vector<1x256xf32>
    %c1_i32_116 = arith.constant 1 : i32
    %459 = tpu.dynamic_rotate %26 by %c1_i32_116 dim 1 : vector<1x256xf32>, i32 -> vector<1x256xf32>
    %c23 = arith.constant 23 : index
    %460 = memref.load %arg4[%c23] : memref<98xf32, #tpu.memory_space<smem>>
    %c72 = arith.constant 72 : index
    %461 = memref.load %arg4[%c72] : memref<98xf32, #tpu.memory_space<smem>>
    %462 = vector.broadcast %460 : f32 to vector<1x256xf32>
    %463 = arith.mulf %462, %458 : vector<1x256xf32>
    %464 = vector.broadcast %461 : f32 to vector<1x256xf32>
    %465 = arith.mulf %464, %459 : vector<1x256xf32>
    %466 = arith.addf %463, %465 : vector<1x256xf32>
    %467 = arith.andi %67, %121 : vector<1x256xi1>
    %cst_117 = arith.constant 0.000000e+00 : f32
    %468 = vector.broadcast %cst_117 : f32 to vector<1x256xf32>
    %469 = arith.select %467, %466, %468 : vector<1x256xi1>, vector<1x256xf32>
    %470 = arith.addf %457, %469 : vector<1x256xf32>
    %c24 = arith.constant 24 : index
    %471 = memref.load %arg4[%c24] : memref<98xf32, #tpu.memory_space<smem>>
    %c73 = arith.constant 73 : index
    %472 = memref.load %arg4[%c73] : memref<98xf32, #tpu.memory_space<smem>>
    %473 = vector.broadcast %471 : f32 to vector<1x256xf32>
    %474 = arith.mulf %473, %25 : vector<1x256xf32>
    %475 = vector.broadcast %472 : f32 to vector<1x256xf32>
    %476 = arith.mulf %475, %26 : vector<1x256xf32>
    %477 = arith.addf %474, %476 : vector<1x256xf32>
    %478 = arith.andi %67, %130 : vector<1x256xi1>
    %cst_118 = arith.constant 0.000000e+00 : f32
    %479 = vector.broadcast %cst_118 : f32 to vector<1x256xf32>
    %480 = arith.select %478, %477, %479 : vector<1x256xi1>, vector<1x256xf32>
    %481 = arith.addf %470, %480 : vector<1x256xf32>
    %c255_i32 = arith.constant 255 : i32
    %482 = tpu.dynamic_rotate %25 by %c255_i32 dim 1 : vector<1x256xf32>, i32 -> vector<1x256xf32>
    %c255_i32_119 = arith.constant 255 : i32
    %483 = tpu.dynamic_rotate %26 by %c255_i32_119 dim 1 : vector<1x256xf32>, i32 -> vector<1x256xf32>
    %c25 = arith.constant 25 : index
    %484 = memref.load %arg4[%c25] : memref<98xf32, #tpu.memory_space<smem>>
    %c74 = arith.constant 74 : index
    %485 = memref.load %arg4[%c74] : memref<98xf32, #tpu.memory_space<smem>>
    %486 = vector.broadcast %484 : f32 to vector<1x256xf32>
    %487 = arith.mulf %486, %482 : vector<1x256xf32>
    %488 = vector.broadcast %485 : f32 to vector<1x256xf32>
    %489 = arith.mulf %488, %483 : vector<1x256xf32>
    %490 = arith.addf %487, %489 : vector<1x256xf32>
    %491 = arith.andi %67, %139 : vector<1x256xi1>
    %cst_120 = arith.constant 0.000000e+00 : f32
    %492 = vector.broadcast %cst_120 : f32 to vector<1x256xf32>
    %493 = arith.select %491, %490, %492 : vector<1x256xi1>, vector<1x256xf32>
    %494 = arith.addf %481, %493 : vector<1x256xf32>
    %c254_i32 = arith.constant 254 : i32
    %495 = tpu.dynamic_rotate %25 by %c254_i32 dim 1 : vector<1x256xf32>, i32 -> vector<1x256xf32>
    %c254_i32_121 = arith.constant 254 : i32
    %496 = tpu.dynamic_rotate %26 by %c254_i32_121 dim 1 : vector<1x256xf32>, i32 -> vector<1x256xf32>
    %c26 = arith.constant 26 : index
    %497 = memref.load %arg4[%c26] : memref<98xf32, #tpu.memory_space<smem>>
    %c75 = arith.constant 75 : index
    %498 = memref.load %arg4[%c75] : memref<98xf32, #tpu.memory_space<smem>>
    %499 = vector.broadcast %497 : f32 to vector<1x256xf32>
    %500 = arith.mulf %499, %495 : vector<1x256xf32>
    %501 = vector.broadcast %498 : f32 to vector<1x256xf32>
    %502 = arith.mulf %501, %496 : vector<1x256xf32>
    %503 = arith.addf %500, %502 : vector<1x256xf32>
    %504 = arith.andi %67, %148 : vector<1x256xi1>
    %cst_122 = arith.constant 0.000000e+00 : f32
    %505 = vector.broadcast %cst_122 : f32 to vector<1x256xf32>
    %506 = arith.select %504, %503, %505 : vector<1x256xi1>, vector<1x256xf32>
    %507 = arith.addf %494, %506 : vector<1x256xf32>
    %c253_i32 = arith.constant 253 : i32
    %508 = tpu.dynamic_rotate %25 by %c253_i32 dim 1 : vector<1x256xf32>, i32 -> vector<1x256xf32>
    %c253_i32_123 = arith.constant 253 : i32
    %509 = tpu.dynamic_rotate %26 by %c253_i32_123 dim 1 : vector<1x256xf32>, i32 -> vector<1x256xf32>
    %c27 = arith.constant 27 : index
    %510 = memref.load %arg4[%c27] : memref<98xf32, #tpu.memory_space<smem>>
    %c76 = arith.constant 76 : index
    %511 = memref.load %arg4[%c76] : memref<98xf32, #tpu.memory_space<smem>>
    %512 = vector.broadcast %510 : f32 to vector<1x256xf32>
    %513 = arith.mulf %512, %508 : vector<1x256xf32>
    %514 = vector.broadcast %511 : f32 to vector<1x256xf32>
    %515 = arith.mulf %514, %509 : vector<1x256xf32>
    %516 = arith.addf %513, %515 : vector<1x256xf32>
    %517 = arith.andi %67, %157 : vector<1x256xi1>
    %cst_124 = arith.constant 0.000000e+00 : f32
    %518 = vector.broadcast %cst_124 : f32 to vector<1x256xf32>
    %519 = arith.select %517, %516, %518 : vector<1x256xi1>, vector<1x256xf32>
    %520 = arith.addf %507, %519 : vector<1x256xf32>
    %c243_i32 = arith.constant 243 : i32
    %521 = tpu.dynamic_rotate %25 by %c243_i32 dim 1 : vector<1x256xf32>, i32 -> vector<1x256xf32>
    %c243_i32_125 = arith.constant 243 : i32
    %522 = tpu.dynamic_rotate %26 by %c243_i32_125 dim 1 : vector<1x256xf32>, i32 -> vector<1x256xf32>
    %c28 = arith.constant 28 : index
    %523 = memref.load %arg4[%c28] : memref<98xf32, #tpu.memory_space<smem>>
    %c77 = arith.constant 77 : index
    %524 = memref.load %arg4[%c77] : memref<98xf32, #tpu.memory_space<smem>>
    %525 = vector.broadcast %523 : f32 to vector<1x256xf32>
    %526 = arith.mulf %525, %521 : vector<1x256xf32>
    %527 = vector.broadcast %524 : f32 to vector<1x256xf32>
    %528 = arith.mulf %527, %522 : vector<1x256xf32>
    %529 = arith.addf %526, %528 : vector<1x256xf32>
    %530 = arith.andi %76, %103 : vector<1x256xi1>
    %cst_126 = arith.constant 0.000000e+00 : f32
    %531 = vector.broadcast %cst_126 : f32 to vector<1x256xf32>
    %532 = arith.select %530, %529, %531 : vector<1x256xi1>, vector<1x256xf32>
    %533 = arith.addf %520, %532 : vector<1x256xf32>
    %c242_i32 = arith.constant 242 : i32
    %534 = tpu.dynamic_rotate %25 by %c242_i32 dim 1 : vector<1x256xf32>, i32 -> vector<1x256xf32>
    %c242_i32_127 = arith.constant 242 : i32
    %535 = tpu.dynamic_rotate %26 by %c242_i32_127 dim 1 : vector<1x256xf32>, i32 -> vector<1x256xf32>
    %c29 = arith.constant 29 : index
    %536 = memref.load %arg4[%c29] : memref<98xf32, #tpu.memory_space<smem>>
    %c78 = arith.constant 78 : index
    %537 = memref.load %arg4[%c78] : memref<98xf32, #tpu.memory_space<smem>>
    %538 = vector.broadcast %536 : f32 to vector<1x256xf32>
    %539 = arith.mulf %538, %534 : vector<1x256xf32>
    %540 = vector.broadcast %537 : f32 to vector<1x256xf32>
    %541 = arith.mulf %540, %535 : vector<1x256xf32>
    %542 = arith.addf %539, %541 : vector<1x256xf32>
    %543 = arith.andi %76, %112 : vector<1x256xi1>
    %cst_128 = arith.constant 0.000000e+00 : f32
    %544 = vector.broadcast %cst_128 : f32 to vector<1x256xf32>
    %545 = arith.select %543, %542, %544 : vector<1x256xi1>, vector<1x256xf32>
    %546 = arith.addf %533, %545 : vector<1x256xf32>
    %c241_i32 = arith.constant 241 : i32
    %547 = tpu.dynamic_rotate %25 by %c241_i32 dim 1 : vector<1x256xf32>, i32 -> vector<1x256xf32>
    %c241_i32_129 = arith.constant 241 : i32
    %548 = tpu.dynamic_rotate %26 by %c241_i32_129 dim 1 : vector<1x256xf32>, i32 -> vector<1x256xf32>
    %c30 = arith.constant 30 : index
    %549 = memref.load %arg4[%c30] : memref<98xf32, #tpu.memory_space<smem>>
    %c79 = arith.constant 79 : index
    %550 = memref.load %arg4[%c79] : memref<98xf32, #tpu.memory_space<smem>>
    %551 = vector.broadcast %549 : f32 to vector<1x256xf32>
    %552 = arith.mulf %551, %547 : vector<1x256xf32>
    %553 = vector.broadcast %550 : f32 to vector<1x256xf32>
    %554 = arith.mulf %553, %548 : vector<1x256xf32>
    %555 = arith.addf %552, %554 : vector<1x256xf32>
    %556 = arith.andi %76, %121 : vector<1x256xi1>
    %cst_130 = arith.constant 0.000000e+00 : f32
    %557 = vector.broadcast %cst_130 : f32 to vector<1x256xf32>
    %558 = arith.select %556, %555, %557 : vector<1x256xi1>, vector<1x256xf32>
    %559 = arith.addf %546, %558 : vector<1x256xf32>
    %c240_i32 = arith.constant 240 : i32
    %560 = tpu.dynamic_rotate %25 by %c240_i32 dim 1 : vector<1x256xf32>, i32 -> vector<1x256xf32>
    %c240_i32_131 = arith.constant 240 : i32
    %561 = tpu.dynamic_rotate %26 by %c240_i32_131 dim 1 : vector<1x256xf32>, i32 -> vector<1x256xf32>
    %c31 = arith.constant 31 : index
    %562 = memref.load %arg4[%c31] : memref<98xf32, #tpu.memory_space<smem>>
    %c80 = arith.constant 80 : index
    %563 = memref.load %arg4[%c80] : memref<98xf32, #tpu.memory_space<smem>>
    %564 = vector.broadcast %562 : f32 to vector<1x256xf32>
    %565 = arith.mulf %564, %560 : vector<1x256xf32>
    %566 = vector.broadcast %563 : f32 to vector<1x256xf32>
    %567 = arith.mulf %566, %561 : vector<1x256xf32>
    %568 = arith.addf %565, %567 : vector<1x256xf32>
    %569 = arith.andi %76, %130 : vector<1x256xi1>
    %cst_132 = arith.constant 0.000000e+00 : f32
    %570 = vector.broadcast %cst_132 : f32 to vector<1x256xf32>
    %571 = arith.select %569, %568, %570 : vector<1x256xi1>, vector<1x256xf32>
    %572 = arith.addf %559, %571 : vector<1x256xf32>
    %c239_i32 = arith.constant 239 : i32
    %573 = tpu.dynamic_rotate %25 by %c239_i32 dim 1 : vector<1x256xf32>, i32 -> vector<1x256xf32>
    %c239_i32_133 = arith.constant 239 : i32
    %574 = tpu.dynamic_rotate %26 by %c239_i32_133 dim 1 : vector<1x256xf32>, i32 -> vector<1x256xf32>
    %c32 = arith.constant 32 : index
    %575 = memref.load %arg4[%c32] : memref<98xf32, #tpu.memory_space<smem>>
    %c81 = arith.constant 81 : index
    %576 = memref.load %arg4[%c81] : memref<98xf32, #tpu.memory_space<smem>>
    %577 = vector.broadcast %575 : f32 to vector<1x256xf32>
    %578 = arith.mulf %577, %573 : vector<1x256xf32>
    %579 = vector.broadcast %576 : f32 to vector<1x256xf32>
    %580 = arith.mulf %579, %574 : vector<1x256xf32>
    %581 = arith.addf %578, %580 : vector<1x256xf32>
    %582 = arith.andi %76, %139 : vector<1x256xi1>
    %cst_134 = arith.constant 0.000000e+00 : f32
    %583 = vector.broadcast %cst_134 : f32 to vector<1x256xf32>
    %584 = arith.select %582, %581, %583 : vector<1x256xi1>, vector<1x256xf32>
    %585 = arith.addf %572, %584 : vector<1x256xf32>
    %c238_i32 = arith.constant 238 : i32
    %586 = tpu.dynamic_rotate %25 by %c238_i32 dim 1 : vector<1x256xf32>, i32 -> vector<1x256xf32>
    %c238_i32_135 = arith.constant 238 : i32
    %587 = tpu.dynamic_rotate %26 by %c238_i32_135 dim 1 : vector<1x256xf32>, i32 -> vector<1x256xf32>
    %c33 = arith.constant 33 : index
    %588 = memref.load %arg4[%c33] : memref<98xf32, #tpu.memory_space<smem>>
    %c82 = arith.constant 82 : index
    %589 = memref.load %arg4[%c82] : memref<98xf32, #tpu.memory_space<smem>>
    %590 = vector.broadcast %588 : f32 to vector<1x256xf32>
    %591 = arith.mulf %590, %586 : vector<1x256xf32>
    %592 = vector.broadcast %589 : f32 to vector<1x256xf32>
    %593 = arith.mulf %592, %587 : vector<1x256xf32>
    %594 = arith.addf %591, %593 : vector<1x256xf32>
    %595 = arith.andi %76, %148 : vector<1x256xi1>
    %cst_136 = arith.constant 0.000000e+00 : f32
    %596 = vector.broadcast %cst_136 : f32 to vector<1x256xf32>
    %597 = arith.select %595, %594, %596 : vector<1x256xi1>, vector<1x256xf32>
    %598 = arith.addf %585, %597 : vector<1x256xf32>
    %c237_i32 = arith.constant 237 : i32
    %599 = tpu.dynamic_rotate %25 by %c237_i32 dim 1 : vector<1x256xf32>, i32 -> vector<1x256xf32>
    %c237_i32_137 = arith.constant 237 : i32
    %600 = tpu.dynamic_rotate %26 by %c237_i32_137 dim 1 : vector<1x256xf32>, i32 -> vector<1x256xf32>
    %c34 = arith.constant 34 : index
    %601 = memref.load %arg4[%c34] : memref<98xf32, #tpu.memory_space<smem>>
    %c83 = arith.constant 83 : index
    %602 = memref.load %arg4[%c83] : memref<98xf32, #tpu.memory_space<smem>>
    %603 = vector.broadcast %601 : f32 to vector<1x256xf32>
    %604 = arith.mulf %603, %599 : vector<1x256xf32>
    %605 = vector.broadcast %602 : f32 to vector<1x256xf32>
    %606 = arith.mulf %605, %600 : vector<1x256xf32>
    %607 = arith.addf %604, %606 : vector<1x256xf32>
    %608 = arith.andi %76, %157 : vector<1x256xi1>
    %cst_138 = arith.constant 0.000000e+00 : f32
    %609 = vector.broadcast %cst_138 : f32 to vector<1x256xf32>
    %610 = arith.select %608, %607, %609 : vector<1x256xi1>, vector<1x256xf32>
    %611 = arith.addf %598, %610 : vector<1x256xf32>
    %c227_i32 = arith.constant 227 : i32
    %612 = tpu.dynamic_rotate %25 by %c227_i32 dim 1 : vector<1x256xf32>, i32 -> vector<1x256xf32>
    %c227_i32_139 = arith.constant 227 : i32
    %613 = tpu.dynamic_rotate %26 by %c227_i32_139 dim 1 : vector<1x256xf32>, i32 -> vector<1x256xf32>
    %c35 = arith.constant 35 : index
    %614 = memref.load %arg4[%c35] : memref<98xf32, #tpu.memory_space<smem>>
    %c84 = arith.constant 84 : index
    %615 = memref.load %arg4[%c84] : memref<98xf32, #tpu.memory_space<smem>>
    %616 = vector.broadcast %614 : f32 to vector<1x256xf32>
    %617 = arith.mulf %616, %612 : vector<1x256xf32>
    %618 = vector.broadcast %615 : f32 to vector<1x256xf32>
    %619 = arith.mulf %618, %613 : vector<1x256xf32>
    %620 = arith.addf %617, %619 : vector<1x256xf32>
    %621 = arith.andi %85, %103 : vector<1x256xi1>
    %cst_140 = arith.constant 0.000000e+00 : f32
    %622 = vector.broadcast %cst_140 : f32 to vector<1x256xf32>
    %623 = arith.select %621, %620, %622 : vector<1x256xi1>, vector<1x256xf32>
    %624 = arith.addf %611, %623 : vector<1x256xf32>
    %c226_i32 = arith.constant 226 : i32
    %625 = tpu.dynamic_rotate %25 by %c226_i32 dim 1 : vector<1x256xf32>, i32 -> vector<1x256xf32>
    %c226_i32_141 = arith.constant 226 : i32
    %626 = tpu.dynamic_rotate %26 by %c226_i32_141 dim 1 : vector<1x256xf32>, i32 -> vector<1x256xf32>
    %c36 = arith.constant 36 : index
    %627 = memref.load %arg4[%c36] : memref<98xf32, #tpu.memory_space<smem>>
    %c85 = arith.constant 85 : index
    %628 = memref.load %arg4[%c85] : memref<98xf32, #tpu.memory_space<smem>>
    %629 = vector.broadcast %627 : f32 to vector<1x256xf32>
    %630 = arith.mulf %629, %625 : vector<1x256xf32>
    %631 = vector.broadcast %628 : f32 to vector<1x256xf32>
    %632 = arith.mulf %631, %626 : vector<1x256xf32>
    %633 = arith.addf %630, %632 : vector<1x256xf32>
    %634 = arith.andi %85, %112 : vector<1x256xi1>
    %cst_142 = arith.constant 0.000000e+00 : f32
    %635 = vector.broadcast %cst_142 : f32 to vector<1x256xf32>
    %636 = arith.select %634, %633, %635 : vector<1x256xi1>, vector<1x256xf32>
    %637 = arith.addf %624, %636 : vector<1x256xf32>
    %c225_i32 = arith.constant 225 : i32
    %638 = tpu.dynamic_rotate %25 by %c225_i32 dim 1 : vector<1x256xf32>, i32 -> vector<1x256xf32>
    %c225_i32_143 = arith.constant 225 : i32
    %639 = tpu.dynamic_rotate %26 by %c225_i32_143 dim 1 : vector<1x256xf32>, i32 -> vector<1x256xf32>
    %c37 = arith.constant 37 : index
    %640 = memref.load %arg4[%c37] : memref<98xf32, #tpu.memory_space<smem>>
    %c86 = arith.constant 86 : index
    %641 = memref.load %arg4[%c86] : memref<98xf32, #tpu.memory_space<smem>>
    %642 = vector.broadcast %640 : f32 to vector<1x256xf32>
    %643 = arith.mulf %642, %638 : vector<1x256xf32>
    %644 = vector.broadcast %641 : f32 to vector<1x256xf32>
    %645 = arith.mulf %644, %639 : vector<1x256xf32>
    %646 = arith.addf %643, %645 : vector<1x256xf32>
    %647 = arith.andi %85, %121 : vector<1x256xi1>
    %cst_144 = arith.constant 0.000000e+00 : f32
    %648 = vector.broadcast %cst_144 : f32 to vector<1x256xf32>
    %649 = arith.select %647, %646, %648 : vector<1x256xi1>, vector<1x256xf32>
    %650 = arith.addf %637, %649 : vector<1x256xf32>
    %c224_i32 = arith.constant 224 : i32
    %651 = tpu.dynamic_rotate %25 by %c224_i32 dim 1 : vector<1x256xf32>, i32 -> vector<1x256xf32>
    %c224_i32_145 = arith.constant 224 : i32
    %652 = tpu.dynamic_rotate %26 by %c224_i32_145 dim 1 : vector<1x256xf32>, i32 -> vector<1x256xf32>
    %c38 = arith.constant 38 : index
    %653 = memref.load %arg4[%c38] : memref<98xf32, #tpu.memory_space<smem>>
    %c87 = arith.constant 87 : index
    %654 = memref.load %arg4[%c87] : memref<98xf32, #tpu.memory_space<smem>>
    %655 = vector.broadcast %653 : f32 to vector<1x256xf32>
    %656 = arith.mulf %655, %651 : vector<1x256xf32>
    %657 = vector.broadcast %654 : f32 to vector<1x256xf32>
    %658 = arith.mulf %657, %652 : vector<1x256xf32>
    %659 = arith.addf %656, %658 : vector<1x256xf32>
    %660 = arith.andi %85, %130 : vector<1x256xi1>
    %cst_146 = arith.constant 0.000000e+00 : f32
    %661 = vector.broadcast %cst_146 : f32 to vector<1x256xf32>
    %662 = arith.select %660, %659, %661 : vector<1x256xi1>, vector<1x256xf32>
    %663 = arith.addf %650, %662 : vector<1x256xf32>
    %c223_i32 = arith.constant 223 : i32
    %664 = tpu.dynamic_rotate %25 by %c223_i32 dim 1 : vector<1x256xf32>, i32 -> vector<1x256xf32>
    %c223_i32_147 = arith.constant 223 : i32
    %665 = tpu.dynamic_rotate %26 by %c223_i32_147 dim 1 : vector<1x256xf32>, i32 -> vector<1x256xf32>
    %c39 = arith.constant 39 : index
    %666 = memref.load %arg4[%c39] : memref<98xf32, #tpu.memory_space<smem>>
    %c88 = arith.constant 88 : index
    %667 = memref.load %arg4[%c88] : memref<98xf32, #tpu.memory_space<smem>>
    %668 = vector.broadcast %666 : f32 to vector<1x256xf32>
    %669 = arith.mulf %668, %664 : vector<1x256xf32>
    %670 = vector.broadcast %667 : f32 to vector<1x256xf32>
    %671 = arith.mulf %670, %665 : vector<1x256xf32>
    %672 = arith.addf %669, %671 : vector<1x256xf32>
    %673 = arith.andi %85, %139 : vector<1x256xi1>
    %cst_148 = arith.constant 0.000000e+00 : f32
    %674 = vector.broadcast %cst_148 : f32 to vector<1x256xf32>
    %675 = arith.select %673, %672, %674 : vector<1x256xi1>, vector<1x256xf32>
    %676 = arith.addf %663, %675 : vector<1x256xf32>
    %c222_i32 = arith.constant 222 : i32
    %677 = tpu.dynamic_rotate %25 by %c222_i32 dim 1 : vector<1x256xf32>, i32 -> vector<1x256xf32>
    %c222_i32_149 = arith.constant 222 : i32
    %678 = tpu.dynamic_rotate %26 by %c222_i32_149 dim 1 : vector<1x256xf32>, i32 -> vector<1x256xf32>
    %c40 = arith.constant 40 : index
    %679 = memref.load %arg4[%c40] : memref<98xf32, #tpu.memory_space<smem>>
    %c89 = arith.constant 89 : index
    %680 = memref.load %arg4[%c89] : memref<98xf32, #tpu.memory_space<smem>>
    %681 = vector.broadcast %679 : f32 to vector<1x256xf32>
    %682 = arith.mulf %681, %677 : vector<1x256xf32>
    %683 = vector.broadcast %680 : f32 to vector<1x256xf32>
    %684 = arith.mulf %683, %678 : vector<1x256xf32>
    %685 = arith.addf %682, %684 : vector<1x256xf32>
    %686 = arith.andi %85, %148 : vector<1x256xi1>
    %cst_150 = arith.constant 0.000000e+00 : f32
    %687 = vector.broadcast %cst_150 : f32 to vector<1x256xf32>
    %688 = arith.select %686, %685, %687 : vector<1x256xi1>, vector<1x256xf32>
    %689 = arith.addf %676, %688 : vector<1x256xf32>
    %c221_i32 = arith.constant 221 : i32
    %690 = tpu.dynamic_rotate %25 by %c221_i32 dim 1 : vector<1x256xf32>, i32 -> vector<1x256xf32>
    %c221_i32_151 = arith.constant 221 : i32
    %691 = tpu.dynamic_rotate %26 by %c221_i32_151 dim 1 : vector<1x256xf32>, i32 -> vector<1x256xf32>
    %c41 = arith.constant 41 : index
    %692 = memref.load %arg4[%c41] : memref<98xf32, #tpu.memory_space<smem>>
    %c90 = arith.constant 90 : index
    %693 = memref.load %arg4[%c90] : memref<98xf32, #tpu.memory_space<smem>>
    %694 = vector.broadcast %692 : f32 to vector<1x256xf32>
    %695 = arith.mulf %694, %690 : vector<1x256xf32>
    %696 = vector.broadcast %693 : f32 to vector<1x256xf32>
    %697 = arith.mulf %696, %691 : vector<1x256xf32>
    %698 = arith.addf %695, %697 : vector<1x256xf32>
    %699 = arith.andi %85, %157 : vector<1x256xi1>
    %cst_152 = arith.constant 0.000000e+00 : f32
    %700 = vector.broadcast %cst_152 : f32 to vector<1x256xf32>
    %701 = arith.select %699, %698, %700 : vector<1x256xi1>, vector<1x256xf32>
    %702 = arith.addf %689, %701 : vector<1x256xf32>
    %c211_i32 = arith.constant 211 : i32
    %703 = tpu.dynamic_rotate %25 by %c211_i32 dim 1 : vector<1x256xf32>, i32 -> vector<1x256xf32>
    %c211_i32_153 = arith.constant 211 : i32
    %704 = tpu.dynamic_rotate %26 by %c211_i32_153 dim 1 : vector<1x256xf32>, i32 -> vector<1x256xf32>
    %c42 = arith.constant 42 : index
    %705 = memref.load %arg4[%c42] : memref<98xf32, #tpu.memory_space<smem>>
    %c91 = arith.constant 91 : index
    %706 = memref.load %arg4[%c91] : memref<98xf32, #tpu.memory_space<smem>>
    %707 = vector.broadcast %705 : f32 to vector<1x256xf32>
    %708 = arith.mulf %707, %703 : vector<1x256xf32>
    %709 = vector.broadcast %706 : f32 to vector<1x256xf32>
    %710 = arith.mulf %709, %704 : vector<1x256xf32>
    %711 = arith.addf %708, %710 : vector<1x256xf32>
    %712 = arith.andi %94, %103 : vector<1x256xi1>
    %cst_154 = arith.constant 0.000000e+00 : f32
    %713 = vector.broadcast %cst_154 : f32 to vector<1x256xf32>
    %714 = arith.select %712, %711, %713 : vector<1x256xi1>, vector<1x256xf32>
    %715 = arith.addf %702, %714 : vector<1x256xf32>
    %c210_i32 = arith.constant 210 : i32
    %716 = tpu.dynamic_rotate %25 by %c210_i32 dim 1 : vector<1x256xf32>, i32 -> vector<1x256xf32>
    %c210_i32_155 = arith.constant 210 : i32
    %717 = tpu.dynamic_rotate %26 by %c210_i32_155 dim 1 : vector<1x256xf32>, i32 -> vector<1x256xf32>
    %c43 = arith.constant 43 : index
    %718 = memref.load %arg4[%c43] : memref<98xf32, #tpu.memory_space<smem>>
    %c92 = arith.constant 92 : index
    %719 = memref.load %arg4[%c92] : memref<98xf32, #tpu.memory_space<smem>>
    %720 = vector.broadcast %718 : f32 to vector<1x256xf32>
    %721 = arith.mulf %720, %716 : vector<1x256xf32>
    %722 = vector.broadcast %719 : f32 to vector<1x256xf32>
    %723 = arith.mulf %722, %717 : vector<1x256xf32>
    %724 = arith.addf %721, %723 : vector<1x256xf32>
    %725 = arith.andi %94, %112 : vector<1x256xi1>
    %cst_156 = arith.constant 0.000000e+00 : f32
    %726 = vector.broadcast %cst_156 : f32 to vector<1x256xf32>
    %727 = arith.select %725, %724, %726 : vector<1x256xi1>, vector<1x256xf32>
    %728 = arith.addf %715, %727 : vector<1x256xf32>
    %c209_i32 = arith.constant 209 : i32
    %729 = tpu.dynamic_rotate %25 by %c209_i32 dim 1 : vector<1x256xf32>, i32 -> vector<1x256xf32>
    %c209_i32_157 = arith.constant 209 : i32
    %730 = tpu.dynamic_rotate %26 by %c209_i32_157 dim 1 : vector<1x256xf32>, i32 -> vector<1x256xf32>
    %c44 = arith.constant 44 : index
    %731 = memref.load %arg4[%c44] : memref<98xf32, #tpu.memory_space<smem>>
    %c93 = arith.constant 93 : index
    %732 = memref.load %arg4[%c93] : memref<98xf32, #tpu.memory_space<smem>>
    %733 = vector.broadcast %731 : f32 to vector<1x256xf32>
    %734 = arith.mulf %733, %729 : vector<1x256xf32>
    %735 = vector.broadcast %732 : f32 to vector<1x256xf32>
    %736 = arith.mulf %735, %730 : vector<1x256xf32>
    %737 = arith.addf %734, %736 : vector<1x256xf32>
    %738 = arith.andi %94, %121 : vector<1x256xi1>
    %cst_158 = arith.constant 0.000000e+00 : f32
    %739 = vector.broadcast %cst_158 : f32 to vector<1x256xf32>
    %740 = arith.select %738, %737, %739 : vector<1x256xi1>, vector<1x256xf32>
    %741 = arith.addf %728, %740 : vector<1x256xf32>
    %c208_i32 = arith.constant 208 : i32
    %742 = tpu.dynamic_rotate %25 by %c208_i32 dim 1 : vector<1x256xf32>, i32 -> vector<1x256xf32>
    %c208_i32_159 = arith.constant 208 : i32
    %743 = tpu.dynamic_rotate %26 by %c208_i32_159 dim 1 : vector<1x256xf32>, i32 -> vector<1x256xf32>
    %c45 = arith.constant 45 : index
    %744 = memref.load %arg4[%c45] : memref<98xf32, #tpu.memory_space<smem>>
    %c94 = arith.constant 94 : index
    %745 = memref.load %arg4[%c94] : memref<98xf32, #tpu.memory_space<smem>>
    %746 = vector.broadcast %744 : f32 to vector<1x256xf32>
    %747 = arith.mulf %746, %742 : vector<1x256xf32>
    %748 = vector.broadcast %745 : f32 to vector<1x256xf32>
    %749 = arith.mulf %748, %743 : vector<1x256xf32>
    %750 = arith.addf %747, %749 : vector<1x256xf32>
    %751 = arith.andi %94, %130 : vector<1x256xi1>
    %cst_160 = arith.constant 0.000000e+00 : f32
    %752 = vector.broadcast %cst_160 : f32 to vector<1x256xf32>
    %753 = arith.select %751, %750, %752 : vector<1x256xi1>, vector<1x256xf32>
    %754 = arith.addf %741, %753 : vector<1x256xf32>
    %c207_i32 = arith.constant 207 : i32
    %755 = tpu.dynamic_rotate %25 by %c207_i32 dim 1 : vector<1x256xf32>, i32 -> vector<1x256xf32>
    %c207_i32_161 = arith.constant 207 : i32
    %756 = tpu.dynamic_rotate %26 by %c207_i32_161 dim 1 : vector<1x256xf32>, i32 -> vector<1x256xf32>
    %c46 = arith.constant 46 : index
    %757 = memref.load %arg4[%c46] : memref<98xf32, #tpu.memory_space<smem>>
    %c95 = arith.constant 95 : index
    %758 = memref.load %arg4[%c95] : memref<98xf32, #tpu.memory_space<smem>>
    %759 = vector.broadcast %757 : f32 to vector<1x256xf32>
    %760 = arith.mulf %759, %755 : vector<1x256xf32>
    %761 = vector.broadcast %758 : f32 to vector<1x256xf32>
    %762 = arith.mulf %761, %756 : vector<1x256xf32>
    %763 = arith.addf %760, %762 : vector<1x256xf32>
    %764 = arith.andi %94, %139 : vector<1x256xi1>
    %cst_162 = arith.constant 0.000000e+00 : f32
    %765 = vector.broadcast %cst_162 : f32 to vector<1x256xf32>
    %766 = arith.select %764, %763, %765 : vector<1x256xi1>, vector<1x256xf32>
    %767 = arith.addf %754, %766 : vector<1x256xf32>
    %c206_i32 = arith.constant 206 : i32
    %768 = tpu.dynamic_rotate %25 by %c206_i32 dim 1 : vector<1x256xf32>, i32 -> vector<1x256xf32>
    %c206_i32_163 = arith.constant 206 : i32
    %769 = tpu.dynamic_rotate %26 by %c206_i32_163 dim 1 : vector<1x256xf32>, i32 -> vector<1x256xf32>
    %c47 = arith.constant 47 : index
    %770 = memref.load %arg4[%c47] : memref<98xf32, #tpu.memory_space<smem>>
    %c96 = arith.constant 96 : index
    %771 = memref.load %arg4[%c96] : memref<98xf32, #tpu.memory_space<smem>>
    %772 = vector.broadcast %770 : f32 to vector<1x256xf32>
    %773 = arith.mulf %772, %768 : vector<1x256xf32>
    %774 = vector.broadcast %771 : f32 to vector<1x256xf32>
    %775 = arith.mulf %774, %769 : vector<1x256xf32>
    %776 = arith.addf %773, %775 : vector<1x256xf32>
    %777 = arith.andi %94, %148 : vector<1x256xi1>
    %cst_164 = arith.constant 0.000000e+00 : f32
    %778 = vector.broadcast %cst_164 : f32 to vector<1x256xf32>
    %779 = arith.select %777, %776, %778 : vector<1x256xi1>, vector<1x256xf32>
    %780 = arith.addf %767, %779 : vector<1x256xf32>
    %c205_i32 = arith.constant 205 : i32
    %781 = tpu.dynamic_rotate %25 by %c205_i32 dim 1 : vector<1x256xf32>, i32 -> vector<1x256xf32>
    %c205_i32_165 = arith.constant 205 : i32
    %782 = tpu.dynamic_rotate %26 by %c205_i32_165 dim 1 : vector<1x256xf32>, i32 -> vector<1x256xf32>
    %c48 = arith.constant 48 : index
    %783 = memref.load %arg4[%c48] : memref<98xf32, #tpu.memory_space<smem>>
    %c97 = arith.constant 97 : index
    %784 = memref.load %arg4[%c97] : memref<98xf32, #tpu.memory_space<smem>>
    %785 = vector.broadcast %783 : f32 to vector<1x256xf32>
    %786 = arith.mulf %785, %781 : vector<1x256xf32>
    %787 = vector.broadcast %784 : f32 to vector<1x256xf32>
    %788 = arith.mulf %787, %782 : vector<1x256xf32>
    %789 = arith.addf %786, %788 : vector<1x256xf32>
    %790 = arith.andi %94, %157 : vector<1x256xi1>
    %cst_166 = arith.constant 0.000000e+00 : f32
    %791 = vector.broadcast %cst_166 : f32 to vector<1x256xf32>
    %792 = arith.select %790, %789, %791 : vector<1x256xi1>, vector<1x256xf32>
    %793 = arith.addf %780, %792 : vector<1x256xf32>
    %c0_167 = arith.constant 0 : index
    %794 = memref.load %arg5[%c0_167] : memref<1xf32, #tpu.memory_space<smem>>
    %795 = vector.broadcast %794 : f32 to vector<1x256xf32>
    %796 = arith.addf %793, %795 : vector<1x256xf32>
    %797 = arith.negf %796 : vector<1x256xf32>
    %798 = math.exp %797 : vector<1x256xf32>
    %cst_168 = arith.constant 1.000000e+00 : f32
    %799 = vector.broadcast %cst_168 : f32 to vector<1x256xf32>
    %800 = arith.addf %799, %798 : vector<1x256xf32>
    %801 = arith.divf %799, %800 : vector<1x256xf32>
    %802 = vector.shape_cast %801 : vector<1x256xf32> to vector<1x1x256xf32>
    %803 = vector.broadcast %802 : vector<1x1x256xf32> to vector<1x64x256xf32>
    %804 = arith.mulf %22, %803 : vector<1x64x256xf32>
    %c0_169 = arith.constant 0 : index
    %c0_170 = arith.constant 0 : index
    %c0_171 = arith.constant 0 : index
    %805 = vector.load %arg6[%c0_169, %c0_170, %c0_171] : memref<1x64x256xf32, #tpu.memory_space<vmem>>, vector<1x64x256xf32>
    tpu.vector_store %arg6[%c0_169, %c0_170, %c0_171], %804 {strides = array<i32>} : memref<1x64x256xf32, #tpu.memory_space<vmem>>, vector<1x64x256xf32>,
    return
  }
  func.func @transform_0(%arg0: i32) -> (i32, i32, i32) {
    %c0_i32 = arith.constant 0 : i32
    %c0_i32_0 = arith.constant 0 : i32
    %c0_i32_1 = arith.constant 0 : i32
    return %arg0, %c0_i32, %c0_i32_0 : i32, i32, i32
  }
  func.func @transform_1(%arg0: i32) -> (i32, i32) {
    %c0_i32 = arith.constant 0 : i32
    %c0_i32_0 = arith.constant 0 : i32
    %c0_i32_1 = arith.constant 0 : i32
    return %c0_i32, %c0_i32_0 : i32, i32
  }
  func.func @transform_2(%arg0: i32) -> (i32, i32) {
    %c0_i32 = arith.constant 0 : i32
    %c0_i32_0 = arith.constant 0 : i32
    %c0_i32_1 = arith.constant 0 : i32
    return %c0_i32, %c0_i32_0 : i32, i32
  }
  func.func @transform_3(%arg0: i32) -> i32 {
    %c0_i32 = arith.constant 0 : i32
    %c0_i32_0 = arith.constant 0 : i32
    return %c0_i32 : i32
  }
  func.func @transform_4(%arg0: i32) -> i32 {
    %c0_i32 = arith.constant 0 : i32
    %c0_i32_0 = arith.constant 0 : i32
    return %c0_i32 : i32
  }
  func.func @transform_5(%arg0: i32) -> (i32, i32, i32) {
    %c0_i32 = arith.constant 0 : i32
    %c0_i32_0 = arith.constant 0 : i32
    %c0_i32_1 = arith.constant 0 : i32
    return %arg0, %c0_i32, %c0_i32_0 : i32, i32, i32
  }
}

</mosaic_0001>

<bundles_post_ra>
// kernel: tpu_custom_call.1
= control target key start
LH: loop header
LB: loop body
LE: loop exit
PB: predicated region body
PF: predicated region fallthrough
CT: control target
= control target key end

     0   :  { %s6549_s0 = inlined_call_operand.hbm [shape: f32[2,64,256], index: 0, kind: input, shape index: {}]   ;;  %s6550_s1 = inlined_call_operand.vmem [shape: f32[64,4], index: 1, kind: input, shape index: {}]   ;;  %s6551_s2 = inlined_call_operand.vmem [shape: f32[4,64], index: 2, kind: input, shape index: {}]   ;;  %s6552_s3 = inlined_call_operand.vmem [shape: f32[98], index: 3, kind: input, shape index: {}]   ;;  %s6553_s4 = inlined_call_operand.<no memory space> [shape: f32[1], index: 4, kind: input, shape index: {}]   ;;  %s6554_s5 = inlined_call_operand.hbm [shape: f32[2,64,256], index: 5, kind: output, shape index: {}]  }
   0x1   :  { %6775 = sst [smem:[#allocation106_spill]] %s6549_s0 }
   0x2   :  { %6776 = sst [smem:[#allocation107_spill]] %s6550_s1 }
   0x3   :  { %6777 = sst [smem:[#allocation108_spill]] %s6551_s2 }
   0x4   :  { %6778 = sst [smem:[#allocation109_spill]] %s6552_s3 }
   0x5   :  { %6779 = sst [smem:[#allocation110_spill]] %s6554_s5 }
   0x6   :  { %10 = sst [smem:[#allocation2]] %s6553_s4 }
   0x7   :  { %11 = vsyncpa [#allocation4], 0 }
   0x8   :  { %13 = vsyncpa [#allocation4 + $0x1], 0 }
   0x9   :  { %14 = vsyncpa [#allocation6], 0 }
   0xa   :  { %15 = vsyncpa [#allocation5], 0 }
   0xb   :  { %17 = vsyncpa [#allocation5 + $0x1], 0  ;;  %s2878_s20 = smov 0   ;;  %s2880_s21 = smov 0  }
   0xc   :  { %s2882_s22 = smov 0   ;;  %s2884_s23 = smov 0  }
   0xd LB: > { %6780 = sst [smem:[#allocation12_spill]] %s2775_s20  ;;  %s2899_s4 = sadd.s32 4294967295, %s2787_s23   ;;  %s2787_s23 = sphi %s2884_s23, %s7559_s23   ;;  %s2783_s22 = sphi %s2882_s22, %s7562_s22   ;;  %s2779_s21 = sphi %s2880_s21, %s7561_s21   ;;  %s2775_s20 = sphi %s2878_s20, %s7560_s20  }
   0xe   : > { %6781 = sst [smem:[#allocation13_spill]] %s2779_s21  ;;  %s2398_s24 = sadd.s32 4294967294, %s2787_s23  }
   0xf   : > { %6782 = sst [smem:[#allocation14_spill]] %s2783_s22  ;;  %s2903_s25 = sadd.s32 1, %s2787_s23  }
  0x10   : > { %6783 = sst [smem:[#allocation15_spill]] %s2787_s23  ;;  %s30_s26 = sadd.s32 1, %s2783_s22 }
  0x11   : > { %6784 = sst [smem:[#allocation16_spill]] %s2899_s4  ;;  %s27_s27 = ssub.s32 %s2787_s23, %s2903_s25 }
  0x12   : > { %6785 = sst [smem:[#allocation17_spill]] %s2903_s25  ;;  %p37_p0 = scmp.ne.s32.totalorder %s2783_s22, %s2779_s21 }
  0x13   : > { %p28_p1 = scmp.eq.s32.totalorder %s27_s27, 0  ;;  %p38_p2 = scmp.eq.s32.totalorder %s2787_s23, 0 }
  0x14   : > { %p43_p3 = scmp.ne.s32.totalorder %s2779_s21, %s2775_s20  ;;  %p6556_p4 = scmp.eq.s32.totalorder %s2899_s4, 0 }
  0x15   : > { %s2915_s28 = scalar_select %p28_p1, %s2783_s22, %s30_s26  }
  0x16   : > { %p2917_p5 = por %p38_p2, %p37_p0  ;;  %p2923_p6 = por %p6556_p4, %p43_p3 }
  0x17   : > { %6786 = sst [smem:[#allocation18_spill]] %s2915_s28  ;;  %p151_p7 = scmp.eq.s32.totalorder %s2899_s4, 1 }
  0x18   : > { %s6788_s30 = scalar_select %p2923_p6, 1, 0 }
  0x19   : > { %p157_p8 = scmp.eq.s32.totalorder %s2398_s24, 1  ;;  %p2399_p9 = scmp.ge.s32.totalorder %s2787_s23, 1 }
  0x1a   : > { %p164_p10 = scmp.lt.s32.totalorder %s2787_s23, 3  ;;  %p2930_p11 = por %p151_p7, %p37_p0 }
  0x1b   : > { %p2934_p12 = por %p157_p8, %p43_p3  ;;  %s6794_s3 = sld [smem:[#allocation109_spill]] }
  0x1c   : > { %s6789_s6 = scalar_select %p2930_p11, 1, 0 }
  0x1d   : > { %s6791_s7 = scalar_select %p2934_p12, 1, 0 }
  0x1e   : > { %6790 = sst [smem:[#allocation19_spill]] %s6789_s6  ;;  %p2938_p13 = pnand %p2399_p9, %p164_p10 }
  0x1f   : > { %6792 = sst [smem:[#allocation20_spill]] %s6791_s7  ;;  %p2575_p2 = scmp.lt.s32.totalorder %s2787_s23, 2 }
  0x20   : > { %s6793_s8 = scalar_select %p2938_p13, 1, 0 }
  0x21   : > { %s183_s11 = sshll.u32 %s6794_s3, 4  ;;  %p2562_p1 = pneg %p2938_p13  ;;  %s184_s11 = int_to_ptr.vmem [resolvable:$true] %s183_s11 }
  0x22   : > { %s197_s13 = sand.u32 1, %s2783_s22   ;;  %p2958_p3 = pnand %p2575_p2, %p2917_p5 }
  0x23   : > { %p2951_p7 = pnand %p2562_p1, %p6556_p4  ;;  %s2402_s15 = sshll.u32 %s197_s13, 7 }
  0x24   : > { %s2676_s16 = scalar_lea.vmem %s184_s11, 16  ;;  %p2684_p12 = scmp.lt.s32.totalorder %s184_s11, %s184_s11 }
  0x25   : > { %p2677_p8 = scmp.ne.s32.totalorder %s184_s11, %s2676_s16  ;;  %p2678_p9 = pneg %p2951_p7 }
  0x26   : > { %p2685_p11 = scmp.lt.s32.totalorder %s2676_s16, %s2676_s16 }
  0x27   : > { %p2679_p10 = pnand %p2678_p9, %p2677_p8 }
  0x28   : > { %p2686_p1 = por %p2685_p11, %p2684_p12 }
  0x29   : > { %p2680_p0 = pneg %p2679_p10 }
  0x2b   : > { %p2687_p4 = pnand %p2686_p1, %p2680_p0 }
  0x2d   : > { %2690 = shalt.err (!%p2687_p4)
}
  0x2e   : > { %s2789_s17 = smov [#allocation7]   ;;  %s2517_s18 = sshll.u32 %s2787_s23, 11 }
  0x2f   : > { %2565 = dma.vmem_to_smem (!%p2951_p7), %s184_s11, 16, %s2789_s17, [#allocation6]  }
  0x30   : > { %s201_s19 = scalar_lea.vmem [#allocation3], %s2402_s15  ;;  %s6797_s0 = sld [smem:[#allocation106_spill]] }
  0x31   : > { %s208_s24 = sshll.u32 %s201_s19, 4  ;;  %s2974_s9 = scalar_lea.sflag [#allocation4], %s197_s13  ;;  %s2972_s24 = int_to_ptr.vmem [resolvable:$true] %s208_s24 }
  0x32   : > { %p2693_p5 = pneg %p2958_p3 }
  0x36   : > { %s2970_s29 = scalar_lea.hbm %s6797_s0, %s2517_s18  ;;  %s2696_s15 = scalar_lea.hbm %s6797_s0, 4096 }
  0x37   : > { %s2691_s10 = scalar_lea.hbm %s2970_s29, 2048  ;;  %p2697_p0 = scmp.lt.s32.totalorder %s2970_s29, %s6797_s0 }
  0x38   : > { %p2692_p4 = scmp.ne.s32.totalorder %s2970_s29, %s2691_s10  ;;  %p2698_p2 = scmp.lt.s32.totalorder %s2696_s15, %s2691_s10 }
  0x3a   : > { %p2694_p11 = pnand %p2693_p5, %p2692_p4  ;;  %p2699_p7 = por %p2698_p2, %p2697_p0 }
  0x3c   : > { %p2695_p12 = pneg %p2694_p11 }
  0x3e   : > { %p2700_p8 = pnand %p2699_p7, %p2695_p12 }
  0x40   : > { %2703 = shalt.err (!%p2700_p8)
}
  0x41   : > { %s2704_s13 = scalar_lea.vmem %s2972_s24, 2048  ;;  %s2790_s18 = smov [#allocation3]  }
  0x42   : > { %p2705_p9 = scmp.ne.s32.totalorder %s2972_s24, %s2704_s13  ;;  %s2709_s19 = sshll.u32 %s2790_s18, 4  ;;  %s2710_s19 = int_to_ptr.vmem [resolvable:$false] %s2709_s19 }
  0x43   : > { %s2711_s26 = scalar_lea.vmem %s2710_s19, 4096  ;;  %p2712_p4 = scmp.lt.s32.totalorder %s2972_s24, %s2710_s19 }
  0x44   : > { %p2707_p10 = pnand %p2705_p9, %p2693_p5  ;;  %p2713_p11 = scmp.lt.s32.totalorder %s2711_s26, %s2704_s13 }
  0x46   : > { %p2708_p1 = pneg %p2707_p10  ;;  %p2714_p6 = por %p2713_p11, %p2712_p4 }
  0x48   : > { %p2715_p13 = pnand %p2714_p6, %p2708_p1 }
  0x4a   : > { %2718 = shalt.err (!%p2715_p13)
}
  0x4b   : > { %s2791_s27 = smov 256   ;;  %s2792_s10 = smov 16  }
  0x4c   : > { %2569 = dma.hbm_to_vmem [thread:$0]  (!%p2958_p3), %s2970_s29, 2048, %s2972_s24, %s2974_s9, %s2791_s27, %s2791_s27, %s2792_s10  }
  0x4d   : > { %p6798_p5 = scmp.ne.s32.totalorder %s6793_s8, 0 }
  0x4f   : > { %220 = sbr.rel (%p6798_p5) target bundleno = 1457 (0x5b1), region = 40 }
  0x54   : > { %s2998_s11 = sand.u32 1, %s2779_s21   ;;  %p6800_p6 = scmp.ne.s32.totalorder %s6788_s30, 0 }
  0x55   : > { %6799 = sst [smem:[#allocation21_spill]] %s2998_s11  ;;  %s6559_s12 = sshll.u32 %s2998_s11, 7 }
  0x56   : > { %s223_s15 = scalar_lea.sflag [#allocation4], %s2998_s11  ;;  %s3004_s16 = scalar_lea.vmem [#allocation3], %s6559_s12 }
  0x57   : > { %2762 = dma.done.wait (%p6800_p6), %s223_s15, 2048  }
  0x58   : > { %2764 = vsyncadd (%p6800_p6), %s223_s15, 4294965248  ;;  %p6801_p13 = scmp.eq.s32.totalorder %s2899_s4, 0 }
  0x5a   : > { %2766 = dma.done.wait (%p6801_p13), [#allocation6], 16   ;;  %p6802_p3 = pmov %p6801_p13 }
  0x5c   : > { %2768 = vsyncadd (%p6802_p3), [#allocation6], 4294967280 }
  0x5d   : > { %235 = sfence }
  0x5e   : > { %v3015_v0 = vld [vmem:[%s3004_s16 + $0x20] sm:$0xff]  ;;  %v3018_v1 = vld [vmem:[%s3004_s16 + $0x28] sm:$0xff]  ;;  %v3029_v5 = vld [vmem:[%s3004_s16 + $0x30] sm:$0xff]  ;;  %v2793_v32 = vmov 0.0   ;;  %s6803_s1 = sld [smem:[#allocation107_spill]]  ;;  %vm2794_vm0 = vmmov 0   ;;  %v338_v44 = vlaneseq }
  0x5f   : > { %v3021_v2 = vld [vmem:[%s3004_s16] sm:$0xff]  ;;  %v280_v3 = vadd.f32 %v3018_v1, %v3015_v0  ;;  %v3026_v4 = vld [vmem:[%s3004_s16 + $0x8] sm:$0xff]  ;;  %v3032_v6 = vld [vmem:[%s3004_s16 + $0x38] sm:$0xff]  ;;  %v312_v16 = vmax.f32 %v3015_v0, %v3018_v1  ;;  %2530 = vmatprep.subr.mxu0 %v2793_v32  ;;  %2549 = vmatprep.subr.mxu1 %v2793_v32  ;;  %vm349_vm1 = vcmask 130112   ;;  %vm356_vm2 = vcmask 195712   ;;  %s6804_s2 = sld [smem:[#allocation108_spill]] }
  0x60   : > { %v274_v7 = vadd.f32 %v3026_v4, %v3021_v2  ;;  %v3037_v8 = vld [vmem:[%s3004_s16 + $0x10] sm:$0xff]  ;;  %v3040_v9 = vld [vmem:[%s3004_s16 + $0x18] sm:$0xff]  ;;  %v283_v10 = vadd.f32 %v3032_v6, %v3029_v5  ;;  %v306_v13 = vmax.f32 %v3021_v2, %v3026_v4  ;;  %v3051_v14 = vld [vmem:[%s3004_s16 + $0x40] sm:$0xff]  ;;  %v315_v20 = vmax.f32 %v3029_v5, %v3032_v6  ;;  %2546 = vmatprep.mubr.msk.f32.mxu0 %vm2794_vm0, %v2793_v32  ;;  %s2795_s24 = smov 51   ;;  %s2796_s29 = smov 50  }
  0x61   : > { %281 = vadd.xlane.f32.xlu1 %v280_v3  ;;  %v277_v11 = vadd.f32 %v3040_v9, %v3037_v8  ;;  %v309_v12 = vmax.f32 %v3037_v8, %v3040_v9  ;;  %v3054_v15 = vld [vmem:[%s3004_s16 + $0x48] sm:$0xff]  ;;  %v3061_v18 = vld [vmem:[%s3004_s16 + $0x50] sm:$0xff]  ;;  %v3064_v19 = vld [vmem:[%s3004_s16 + $0x58] sm:$0xff]  ;;  %2551 = vmatprep.mubr.msk.f32.mxu1 %vm2794_vm0, %v2793_v32  ;;  %v3118_v47 = vand.u32 127, %v338_v44  ;;  %v3121_v51 = vshrl.u32 %v338_v44, 7  ;;  %s2797_s9 = smov 49  }
  0x62   : > { %275 = vadd.xlane.f32.xlu0 %v274_v7  ;;  %v286_v17 = vadd.f32 %v3054_v15, %v3051_v14  ;;  %v289_v21 = vadd.f32 %v3064_v19, %v3061_v18  ;;  %v3071_v22 = vld [vmem:[%s3004_s16 + $0x60] sm:$0xff]  ;;  %v3074_v23 = vld [vmem:[%s3004_s16 + $0x68] sm:$0xff]  ;;  %v318_v24 = vmax.f32 %v3051_v14, %v3054_v15  ;;  %v3081_v26 = vld [vmem:[%s3004_s16 + $0x70] sm:$0xff]  ;;  %v321_v28 = vmax.f32 %v3061_v18, %v3064_v19  ;;  %s2798_s17 = smov 48   ;;  %s2799_s13 = smov 47  }
  0x63   : > { %v292_v25 = vadd.f32 %v3074_v23, %v3071_v22  ;;  %v3084_v27 = vld [vmem:[%s3004_s16 + $0x78] sm:$0xff]  ;;  %v324_v31 = vmax.f32 %v3071_v22, %v3074_v23  ;;  %v344_v49 = vadd.s32 4294967288, %v3118_v47  ;;  %v351_v55 = vadd.s32 4294967280, %v3118_v47  ;;  %s2800_s18 = smov 46   ;;  %s2801_s19 = smov 45  }
  0x64   : > { %v295_v29 = vadd.f32 %v3084_v27, %v3081_v26  ;;  %v327_v30 = vmax.f32 %v3081_v26, %v3084_v27  ;;  %v451_v33 = vld [vmem:[%s6803_s1 + $0x38] sm:$0xff]  ;;  %v450_v34 = vld [vmem:[%s6803_s1 + $0x30] sm:$0xff]  ;;  %v449_v35 = vld [vmem:[%s6803_s1 + $0x28] sm:$0xff]  ;;  %v342_v57 = vsub.s32 %v3118_v47, %v3121_v51  ;;  %v358_v59 = vadd.s32 4294967272, %v3118_v47  ;;  %s2802_s26 = smov 35   ;;  %s2803_s27 = smov 34  }
  0x65   : > { %284 = vadd.xlane.f32.xlu1 %v283_v10  ;;  %2531 = vmatpush3.msra.mxu0 %v451_v33  ;;  %v448_v36 = vld [vmem:[%s6803_s1 + $0x20] sm:$0xff]  ;;  %v447_v37 = vld [vmem:[%s6803_s1 + $0x18] sm:$0xff]  ;;  %v446_v38 = vld [vmem:[%s6803_s1 + $0x10] sm:$0xff]  ;;  %v347_v53 = vsub.s32 %v344_v49, %v3121_v51  ;;  %v365_v61 = vadd.s32 4294967264, %v3118_v47  ;;  %v372_v62 = vadd.s32 4294967256, %v3118_v47  ;;  %v354_v3 = vsub.s32 %v351_v55, %v3121_v51  ;;  %s2804_s10 = smov 33  }
  0x66   : > { %278 = vadd.xlane.f32.xlu0 %v277_v11  ;;  %2532 = vmatprep.subr.mxu0 %v2793_v32  ;;  %v445_v39 = vld [vmem:[%s6803_s1 + $0x8] sm:$0xff]  ;;  %v444_v40 = vld [vmem:[%s6803_s1] sm:$0xff]  ;;  %v379_v11 = vadd.s32 4294967248, %v3118_v47  ;;  %vm363_vm3 = vcmask 261312   ;;  %vm370_vm4 = vcmask 326912   ;;  %vm377_vm5 = vcmask 392512  }
  0x67   : > { %2533 = vmatpush3.msra.mxu0 %v450_v34  ;;  %vm384_vm6 = vcmask 458112   ;;  %vm391_vm7 = vcmask 523712   ;;  %vm442_vm8 = vcmask 1040384   ;;  %vm452_vm9 = vcmask 523264   ;;  %s2805_s15 = smov 32   ;;  %s2806_s16 = smov 31  }
  0x68   : > { %2534 = vmatprep.subr.mxu0 %v2793_v32  ;;  %v382_v34 = vsub.s32 %v379_v11, %v3121_v51  ;;  %vm532_vm10 = vcmask 1043456   ;;  %vm528_vm11 = vcmask 31744   ;;  %s6560_s30 = smov 30   ;;  %s6562_s8 = smov 29   ;;  %vm839_vm12 = vcmp.lt.s32.totalorder %v3118_v47, 51 }
  0x69   : > { %310 = vmax.xlane.f32.xlu1 %v309_v12  ;;  %2535 = vmatpush3.msra.mxu0 %v449_v35  ;;  %s6564_s14 = smov 19   ;;  %s6566_s12 = smov 18   ;;  %vm868_vm13 = vcmp.lt.s32.totalorder %v3118_v47, 50  ;;  %vm897_vm14 = vcmp.lt.s32.totalorder %v3118_v47, 49  ;;  %vm926_vm15 = vcmp.lt.s32.totalorder %v3118_v47, 48  ;;  %vm955_vm0 = vcmp.lt.s32.totalorder %v3118_v47, 47 }
  0x6a   : > { %307 = vmax.xlane.f32.xlu0 %v306_v13  ;;  %2536 = vmatprep.subr.mxu0 %v2793_v32  ;;  %v361_v13 = vsub.s32 %v358_v59, %v3121_v51  ;;  %s3735_s0 = sld [smem:[#allocation7 + $0x3d]]  ;;  %s7008_s28 = smov 82  }
  0x6b   : > { %2537 = vmatpush3.msra.mxu0 %v448_v36  ;;  %s4449_s1 = sld [smem:[#allocation7 + $0x4b]]  ;;  %s7041_s20 = smov 79  }
  0x6c   : > { %2538 = vmatprep.subr.mxu0 %v2793_v32  ;;  %s4502_s3 = sld [smem:[#allocation7 + $0x4f]]  ;;  %s7045_s11 = smov 78  }
  0x6d   : > { %313 = vmax.xlane.f32.xlu1 %v312_v16  ;;  %2539 = vmatpush3.msra.mxu0 %v447_v37  ;;  %s4542_s22 = sld [smem:[#allocation7 + $0x10]] }
  0x6e   : > { %287 = vadd.xlane.f32.xlu0 %v286_v17  ;;  %2540 = vmatprep.subr.mxu0 %v2793_v32  ;;  %s4548_s21 = sld [smem:[#allocation7 + $0x51]] }
  0x6f   : > { %2541 = vmatpush3.msra.mxu0 %v446_v38  ;;  %s4590_s25 = sld [smem:[#allocation7 + $0x54]] }
  0x70   : > { %2542 = vmatprep.subr.mxu0 %v2793_v32  ;;  %s4605_s23 = sld [smem:[#allocation7 + $0x55]] }
  0x71   : > { %316 = vmax.xlane.f32.xlu1 %v315_v20  ;;  %2543 = vmatpush3.msra.mxu0 %v445_v39  ;;  %v386_v20 = vadd.s32 4294967240, %v3118_v47  ;;  %s4666_s7 = sld [smem:[#allocation7 + $0x59]] }
  0x72   : > { %290 = vadd.xlane.f32.xlu0 %v289_v21  ;;  %2544 = vmatprep.subr.mxu0 %v2793_v32  ;;  %v368_v21 = vsub.s32 %v365_v61, %v3121_v51  ;;  %s4722_s6 = sld [smem:[#allocation7 + $0x5e]] }
  0x73   : > { %2545 = vmatpush3.msra.mxu0 %v444_v40  ;;  %v389_v39 = vsub.s32 %v386_v20, %v3121_v51  ;;  %s4726_s5 = sld [smem:[#allocation7 + $0x5f]] }
  0x74   : > { %s4739_s4 = sld [smem:[#allocation7 + $0x60]] }
  0x75   : > { %319 = vmax.xlane.f32.xlu1 %v318_v24 }
  0x76   : > { %293 = vadd.xlane.f32.xlu0 %v292_v25  ;;  %v375_v25 = vsub.s32 %v372_v62, %v3121_v51 }
  0x79   : > { %322 = vmax.xlane.f32.xlu1 %v321_v28 }
  0x7a   : > { %296 = vadd.xlane.f32.xlu0 %v295_v29 }
  0x7d   : > { %328 = vmax.xlane.f32.xlu1 %v327_v30 }
  0x7e   : > { %325 = vmax.xlane.f32.xlu0 %v324_v31 }
  0xea   : > { %v282_v41 = vpop.xlane.xlu1 %281 }
  0xeb   : > { %v276_v42 = vpop.xlane.xlu0 %275  ;;  %v300_v7 = vmul.f32 0.00390625, %v282_v41 }
  0xec   : > { %v298_v58 = vmul.f32 0.00390625, %v276_v42 }
  0xed   : > { %v355_v32 = vrot.slane %v300_v7, %v354_v3 }
  0xee   : > { %v285_v43 = vpop.xlane.xlu1 %284  ;;  %v343_v12 = vrot.slane %v298_v58, %v342_v57 }
  0xef   : > { %v279_v45 = vpop.xlane.xlu0 %278  ;;  %v301_v16 = vmul.f32 0.00390625, %v285_v43 }
  0xf0   : > { %v299_v54 = vmul.f32 0.00390625, %v279_v45 }
  0xf1   : > { %v362_v37 = vrot.slane %v301_v16, %v361_v13 }
  0xf2   : > { %v311_v46 = vpop.xlane.xlu1 %310  ;;  %v348_v63 = vrot.slane %v299_v54, %v347_v53 }
  0xf3   : > { %v308_v48 = vpop.xlane.xlu0 %307  ;;  %v409_v29 = vrot.slane %v311_v46, %v347_v53 }
  0xf4   : > { %v350_v28 = vsel %vm349_vm1, %v348_v63, %v343_v12  ;;  %v405_v30 = vrot.slane %v308_v48, %v342_v57  ;;  %v527_v12 = vld [vmem:[%s6804_s2] sm:$0xf]  ;;  %s4500_s2 = sld [smem:[#allocation7 + $0x4e]] }
  0xf5   : > { %v357_v41 = vsel %vm356_vm2, %v355_v32, %v350_v28  ;;  %2550 = vmatpush3.msk.msra.mxu1 %vm532_vm10, %v527_v12 }
  0xf6   : > { %v314_v50 = vpop.xlane.xlu1 %313  ;;  %v410_v45 = vsel %vm349_vm1, %v409_v29, %v405_v30  ;;  %v364_v53 = vsel %vm363_vm3, %v362_v37, %v357_v41  ;;  %vm984_vm1 = vcmp.lt.s32.totalorder %v3118_v47, 46 }
  0xf7   : > { %v288_v52 = vpop.xlane.xlu0 %287  ;;  %v414_v33 = vrot.slane %v314_v50, %v354_v3 }
  0xf8   : > { %v302_v24 = vmul.f32 0.00390625, %v288_v52 }
  0xf9   : > { %v415_v49 = vsel %vm356_vm2, %v414_v33, %v410_v45  ;;  %vm1013_vm2 = vcmp.lt.s32.totalorder %v3118_v47, 45 }
  0xfa   : > { %v317_v56 = vpop.xlane.xlu1 %316  ;;  %v369_v42 = vrot.slane %v302_v24, %v368_v21 }
  0xfb   : > { %v291_v60 = vpop.xlane.xlu0 %290  ;;  %v419_v38 = vrot.slane %v317_v56, %v361_v13 }
  0xfc   : > { %v303_v31 = vmul.f32 0.00390625, %v291_v60  ;;  %v371_v58 = vsel %vm370_vm4, %v369_v42, %v364_v53 }
  0xfd   : > { %v420_v54 = vsel %vm363_vm3, %v419_v38, %v415_v49 }
  0xfe   : > { %v320_v10 = vpop.xlane.xlu1 %319  ;;  %v376_v46 = vrot.slane %v303_v31, %v375_v25  ;;  %v3148_v31 = vsub.s32 0, %v3121_v51 }
  0xff   : > { %v294_v17 = vpop.xlane.xlu0 %293  ;;  %v424_v43 = vrot.slane %v320_v10, %v368_v21 }
 0x100   : > { %v304_v35 = vmul.f32 0.00390625, %v294_v17  ;;  %v378_v61 = vsel %vm377_vm5, %v376_v46, %v371_v58  ;;  %6805 = vst [vmem:[#allocation22_spill] sm:$0xff] %v3148_v31 }
 0x101   : > { %v425_v59 = vsel %vm370_vm4, %v424_v43, %v420_v54 }
 0x102   : > { %v323_v36 = vpop.xlane.xlu1 %322  ;;  %v383_v50 = vrot.slane %v304_v35, %v382_v34 }
 0x103   : > { %v297_v40 = vpop.xlane.xlu0 %296  ;;  %v429_v48 = vrot.slane %v323_v36, %v375_v25 }
 0x104   : > { %v305_v44 = vmul.f32 0.00390625, %v297_v40  ;;  %v385_v3 = vsel %vm384_vm6, %v383_v50, %v378_v61 }
 0x105   : > { %v430_v62 = vsel %vm377_vm5, %v429_v48, %v425_v59 }
 0x106   : > { %v329_v52 = vpop.xlane.xlu1 %328  ;;  %v390_v55 = vrot.slane %v305_v44, %v389_v39 }
 0x107   : > { %v326_v56 = vpop.xlane.xlu0 %325  ;;  %v439_v57 = vrot.slane %v329_v52, %v389_v39 }
 0x108   : > { %v434_v60 = vrot.slane %v326_v56, %v382_v34  ;;  %v392_v7 = vsel %vm391_vm7, %v390_v55, %v385_v3 }
 0x10a   : > { %v435_v63 = vsel %vm384_vm6, %v434_v60, %v430_v62 }
 0x10b   : > { %v440_v10 = vsel %vm391_vm7, %v439_v57, %v435_v63  ;;  %vm1042_vm7 = vcmp.lt.s32.totalorder %v3118_v47, 35 }
 0x10c   : > { %v443_v11 = vsel %vm442_vm8, %v392_v7, %v440_v10 }
 0x10d   : > { %2547 = vmatmul.mubr.msk.f32.vlgmr.msra.gmra.mxu0 %vm452_vm9, %v443_v11 }
 0x1cd   : > { %v522_v13 = vpop.f32.mrf.mxu0 }
 0x1ce   : > { %v526_v16 = vmax.f32 %v522_v13, 0.0 }
 0x1cf   : > { %v2548_v17 = vpop.f32.mrf.mxu0 }
 0x1d0   : > { %2552 = vmatmul.mubr.msk.f32.vlgmr.msra.gmra.mxu1 %vm528_vm11, %v526_v16 }
 0x290   : > { %v602_v20 = vpop.f32.mrf.mxu1 }
 0x291   : > { %v607_v21 = vrot.slane %v602_v20, 1 }
 0x292   : > { %v2553_v24 = vpop.f32.mrf.mxu1 }
 0x293   : > { %v609_v25 = vadd.f32 %v607_v21, %v602_v20 }
 0x295   : > { %v2412_v28 = vmul.f32 -1.442695, %v609_v25 }
 0x297   : > { %2664 = vpow2.f32 %v2412_v28 }
 0x2a4   : > { %v2665_v29 = vpop.eup %2664 }
 0x2a5   : > { %v613_v30 = vadd.f32 1.0, %v2665_v29 }
 0x2a7   : > { %2666 = vrcp.f32 %v613_v30 }
 0x2b4   : > { %v2667_v32 = vpop.eup %2666 }
 0x2b5   : > { %v619_v33 = vrot.slane %v2667_v32, %v3148_v31 }
 0x2b7   : > { %625 = vbcast.lane.b32.xlu1 %v619_v33, 264  ;;  %621 = vbcast.lane.b32.xlu0 %v619_v33, 256 }
 0x2bb   : > { %629 = vbcast.lane.b32.xlu1 %v619_v33, 272  ;;  %637 = vbcast.lane.b32.xlu0 %v619_v33, 288 }
 0x2bf   : > { %633 = vbcast.lane.b32.xlu1 %v619_v33, 280  ;;  %645 = vbcast.lane.b32.xlu0 %v619_v33, 304 }
 0x2c3   : > { %641 = vbcast.lane.b32.xlu1 %v619_v33, 296 }
 0x2c7   : > { %649 = vbcast.lane.b32.xlu1 %v619_v33, 312 }
 0x329   : > { %v626_v34 = vpop.permute.xlu1 %625  ;;  %v622_v35 = vpop.permute.xlu0 %621 }
 0x32a   : > { %v3158_v39 = vmul.f32 %v622_v35, %v3021_v2  ;;  %v3161_v40 = vmul.f32 %v622_v35, %v3026_v4  ;;  %v3180_v46 = vmul.f32 %v626_v34, %v3037_v8  ;;  %v3183_v48 = vmul.f32 %v626_v34, %v3040_v9 }
 0x32c   : > { %6808 = vst [vmem:[#allocation25_spill] sm:$0xff] %v3158_v39  ;;  %6809 = vst [vmem:[#allocation26_spill] sm:$0xff] %v3161_v40  ;;  %v667_v34 = vadd.f32 %v3180_v46, %v3158_v39  ;;  %v680_v35 = vadd.f32 %v3183_v48, %v3161_v40 }
 0x32d   : > { %v630_v36 = vpop.permute.xlu1 %629  ;;  %v638_v38 = vpop.permute.xlu0 %637  ;;  %6814 = vst [vmem:[#allocation31_spill] sm:$0xff] %v3180_v46  ;;  %6815 = vst [vmem:[#allocation32_spill] sm:$0xff] %v3183_v48 }
 0x32e   : > { %v3152_v37 = vmul.f32 %v630_v36, %v3015_v0  ;;  %v3155_v51 = vmul.f32 %v630_v36, %v3018_v1  ;;  %v3174_v44 = vmul.f32 %v638_v38, %v3051_v14  ;;  %v3177_v2 = vmul.f32 %v638_v38, %v3054_v15 }
 0x330   : > { %6806 = vst [vmem:[#allocation23_spill] sm:$0xff] %v3152_v37  ;;  %6807 = vst [vmem:[#allocation24_spill] sm:$0xff] %v3155_v51  ;;  %v696_v42 = vmax.f32 %v3158_v39, %v3152_v37  ;;  %v709_v43 = vmax.f32 %v3161_v40, %v3155_v51 }
 0x331   : > { %v634_v41 = vpop.permute.xlu1 %633  ;;  %6812 = vst [vmem:[#allocation29_spill] sm:$0xff] %v3174_v44  ;;  %6813 = vst [vmem:[#allocation30_spill] sm:$0xff] %v3177_v2  ;;  %v646_v4 = vpop.permute.xlu0 %645 }
 0x332   : > { %v3168_v0 = vmul.f32 %v634_v41, %v3029_v5  ;;  %v3171_v1 = vmul.f32 %v634_v41, %v3032_v6  ;;  %v698_v14 = vmax.f32 %v696_v42, %v3174_v44  ;;  %v711_v49 = vmax.f32 %v709_v43, %v3177_v2 }
 0x333   : > { %v3198_v50 = vmul.f32 %v646_v4, %v3071_v22  ;;  %v3201_v9 = vmul.f32 %v646_v4, %v3074_v23  ;;  %v668_v41 = vadd.f32 %v667_v34, %v3152_v37  ;;  %v681_v42 = vadd.f32 %v680_v35, %v3155_v51 }
 0x334   : > { %6810 = vst [vmem:[#allocation27_spill] sm:$0xff] %v3168_v0  ;;  %6811 = vst [vmem:[#allocation28_spill] sm:$0xff] %v3171_v1  ;;  %v697_v15 = vmax.f32 %v3180_v46, %v3168_v0  ;;  %v710_v8 = vmax.f32 %v3183_v48, %v3171_v1 }
 0x335   : > { %v642_v45 = vpop.permute.xlu1 %641  ;;  %6818 = vst [vmem:[#allocation35_spill] sm:$0xff] %v3198_v50  ;;  %6819 = vst [vmem:[#allocation36_spill] sm:$0xff] %v3201_v9  ;;  %v700_v55 = vmax.f32 %v698_v14, %v3198_v50  ;;  %v713_v56 = vmax.f32 %v711_v49, %v3201_v9  ;;  %v669_v43 = vadd.f32 %v668_v41, %v3168_v0 }
 0x336   : > { %v3186_v5 = vmul.f32 %v642_v45, %v3061_v18  ;;  %v3189_v6 = vmul.f32 %v642_v45, %v3064_v19  ;;  %v682_v4 = vadd.f32 %v681_v42, %v3171_v1 }
 0x337   : > { %v670_v49 = vadd.f32 %v669_v43, %v3174_v44 }
 0x338   : > { %6816 = vst [vmem:[#allocation33_spill] sm:$0xff] %v3186_v5  ;;  %6817 = vst [vmem:[#allocation34_spill] sm:$0xff] %v3189_v6  ;;  %v699_v19 = vmax.f32 %v697_v15, %v3186_v5  ;;  %v712_v52 = vmax.f32 %v710_v8, %v3189_v6  ;;  %v683_v15 = vadd.f32 %v682_v4, %v3177_v2 }
 0x339   : > { %v650_v18 = vpop.permute.xlu1 %649 }
 0x33a   : > { %v3206_v53 = vmul.f32 %v650_v18, %v3081_v26  ;;  %v3209_v54 = vmul.f32 %v650_v18, %v3084_v27 }
 0x33c   : > { %6820 = vst [vmem:[#allocation37_spill] sm:$0xff] %v3206_v53  ;;  %6821 = vst [vmem:[#allocation38_spill] sm:$0xff] %v3209_v54  ;;  %v701_v22 = vmax.f32 %v699_v19, %v3206_v53  ;;  %v714_v23 = vmax.f32 %v712_v52, %v3209_v54  ;;  %v671_v19 = vadd.f32 %v670_v49, %v3186_v5 }
 0x33d   : > { %v684_v52 = vadd.f32 %v683_v15, %v3189_v6 }
 0x33e   : > { %v702_v57 = vmax.f32 %v700_v55, %v701_v22  ;;  %v715_v58 = vmax.f32 %v713_v56, %v714_v23  ;;  %v672_v22 = vadd.f32 %v671_v19, %v3198_v50 }
 0x33f   : > { %v685_v23 = vadd.f32 %v684_v52, %v3201_v9 }
 0x340   : > { %v703_v59 = vrot.slane %v702_v57, 4  ;;  %v716_v60 = vrot.slane %v715_v58, 4 }
 0x342   : > { %v704_v61 = vmax.f32 %v702_v57, %v703_v59  ;;  %v717_v62 = vmax.f32 %v715_v58, %v716_v60  ;;  %v673_v59 = vadd.f32 %v672_v22, %v3206_v53  ;;  %v686_v60 = vadd.f32 %v685_v23, %v3209_v54 }
 0x344   : > { %v705_v63 = vrot.slane %v704_v61, 2  ;;  %v718_v26 = vrot.slane %v717_v62, 2 }
 0x346   : > { %v706_v3 = vmax.f32 %v704_v61, %v705_v63  ;;  %v719_v7 = vmax.f32 %v717_v62, %v718_v26  ;;  %v674_v63 = vrot.slane %v673_v59, 4  ;;  %v687_v26 = vrot.slane %v686_v60, 4 }
 0x348   : > { %v707_v27 = vrot.slane %v706_v3, 1  ;;  %v720_v10 = vrot.slane %v719_v7, 1 }
 0x34a   : > { %v3215_v11 = vmax.f32 %v706_v3, %v707_v27  ;;  %v3217_v12 = vmax.f32 %v719_v7, %v720_v10  ;;  %v675_v27 = vadd.f32 %v674_v63, %v673_v59  ;;  %v688_v10 = vadd.f32 %v687_v26, %v686_v60 }
 0x34c   : > { %6822 = vst [vmem:[#allocation39_spill] sm:$0xff] %v3215_v11  ;;  %6823 = vst [vmem:[#allocation40_spill] sm:$0xff] %v3217_v12  ;;  %844 = vrot.lane.b32.xlu1 %v3217_v12, %s2795_s24  ;;  %842 = vrot.lane.b32.xlu0 %v3215_v11, %s2795_s24  ;;  %v676_v41 = vrot.slane %v675_v27, 2  ;;  %v689_v42 = vrot.slane %v688_v10, 2 }
 0x34e   : > { %v677_v49 = vadd.f32 %v676_v41, %v675_v27  ;;  %v690_v15 = vadd.f32 %v689_v42, %v688_v10 }
 0x350   : > { %873 = vrot.lane.b32.xlu1 %v3217_v12, %s2796_s29  ;;  %871 = vrot.lane.b32.xlu0 %v3215_v11, %s2796_s29  ;;  %v678_v22 = vrot.slane %v677_v49, 1  ;;  %v691_v23 = vrot.slane %v690_v15, 1 }
 0x352   : > { %v679_v63 = vadd.f32 %v678_v22, %v677_v49  ;;  %v692_v26 = vadd.f32 %v691_v23, %v690_v15 }
 0x354   : > { %902 = vrot.lane.b32.xlu1 %v3217_v12, %s2797_s9  ;;  %900 = vrot.lane.b32.xlu0 %v3215_v11, %s2797_s9  ;;  %v3495_v41 = vmul.f32 0.015625, %v679_v63  ;;  %v3497_v42 = vmul.f32 0.015625, %v692_v26 }
 0x358   : > { %931 = vrot.lane.b32.xlu1 %v3217_v12, %s2798_s17  ;;  %929 = vrot.lane.b32.xlu0 %v3215_v11, %s2798_s17 }
 0x35c   : > { %960 = vrot.lane.b32.xlu1 %v3217_v12, %s2799_s13  ;;  %958 = vrot.lane.b32.xlu0 %v3215_v11, %s2799_s13 }
 0x360   : > { %989 = vrot.lane.b32.xlu1 %v3217_v12, %s2800_s18  ;;  %987 = vrot.lane.b32.xlu0 %v3215_v11, %s2800_s18 }
 0x364   : > { %1018 = vrot.lane.b32.xlu1 %v3217_v12, %s2801_s19  ;;  %1016 = vrot.lane.b32.xlu0 %v3215_v11, %s2801_s19 }
 0x368   : > { %1047 = vrot.lane.b32.xlu1 %v3217_v12, %s2802_s26  ;;  %1045 = vrot.lane.b32.xlu0 %v3215_v11, %s2802_s26 }
 0x36c   : > { %1076 = vrot.lane.b32.xlu1 %v3217_v12, %s2803_s27  ;;  %1074 = vrot.lane.b32.xlu0 %v3215_v11, %s2803_s27 }
 0x370   : > { %1105 = vrot.lane.b32.xlu1 %v3217_v12, %s2804_s10  ;;  %1103 = vrot.lane.b32.xlu0 %v3215_v11, %s2804_s10 }
 0x374   : > { %1134 = vrot.lane.b32.xlu1 %v3217_v12, %s2805_s15  ;;  %1132 = vrot.lane.b32.xlu0 %v3215_v11, %s2805_s15 }
 0x378   : > { %1163 = vrot.lane.b32.xlu1 %v3217_v12, %s2806_s16  ;;  %1161 = vrot.lane.b32.xlu0 %v3215_v11, %s2806_s16 }
 0x37c   : > { %1192 = vrot.lane.b32.xlu1 %v3217_v12, %s6560_s30  ;;  %1190 = vrot.lane.b32.xlu0 %v3215_v11, %s6560_s30  ;;  %s6568_s30 = smov 17  }
 0x380   : > { %1221 = vrot.lane.b32.xlu1 %v3217_v12, %s6562_s8  ;;  %1219 = vrot.lane.b32.xlu0 %v3215_v11, %s6562_s8  ;;  %s6570_s8 = smov 16  }
 0x384   : > { %1250 = vrot.lane.b32.xlu1 %v3217_v12, %s6564_s14  ;;  %1248 = vrot.lane.b32.xlu0 %v3215_v11, %s6564_s14  ;;  %s6572_s14 = smov 15  }
 0x388   : > { %1279 = vrot.lane.b32.xlu1 %v3217_v12, %s6566_s12  ;;  %1277 = vrot.lane.b32.xlu0 %v3215_v11, %s6566_s12  ;;  %s6574_s12 = smov 14  }
 0x38c   : > { %1308 = vrot.lane.b32.xlu1 %v3217_v12, %s6568_s30  ;;  %1306 = vrot.lane.b32.xlu0 %v3215_v11, %s6568_s30  ;;  %s6576_s30 = smov 13  }
 0x390   : > { %1337 = vrot.lane.b32.xlu1 %v3217_v12, %s6570_s8  ;;  %1335 = vrot.lane.b32.xlu0 %v3215_v11, %s6570_s8  ;;  %s6578_s8 = smov 3  }
 0x394   : > { %1366 = vrot.lane.b32.xlu1 %v3217_v12, %s6572_s14  ;;  %1364 = vrot.lane.b32.xlu0 %v3215_v11, %s6572_s14  ;;  %s6580_s14 = smov 2  }
 0x398   : > { %1395 = vrot.lane.b32.xlu1 %v3217_v12, %s6574_s12  ;;  %1393 = vrot.lane.b32.xlu0 %v3215_v11, %s6574_s12  ;;  %s6582_s12 = smov 1  }
 0x39c   : > { %1424 = vrot.lane.b32.xlu1 %v3217_v12, %s6576_s30  ;;  %1422 = vrot.lane.b32.xlu0 %v3215_v11, %s6576_s30  ;;  %s6584_s30 = smov 127  }
 0x3a0   : > { %1453 = vrot.lane.b32.xlu1 %v3217_v12, %s6578_s8  ;;  %1451 = vrot.lane.b32.xlu0 %v3215_v11, %s6578_s8  ;;  %s6586_s8 = smov 126  }
 0x3a4   : > { %1482 = vrot.lane.b32.xlu1 %v3217_v12, %s6580_s14  ;;  %1480 = vrot.lane.b32.xlu0 %v3215_v11, %s6580_s14  ;;  %s6678_s14 = smov 125  }
 0x3a8   : > { %1511 = vrot.lane.b32.xlu1 %v3217_v12, %s6582_s12  ;;  %1509 = vrot.lane.b32.xlu0 %v3215_v11, %s6582_s12  ;;  %s6588_s12 = smov 115  }
 0x3ac   : > { %1556 = vrot.lane.b32.xlu1 %v3217_v12, %s6584_s30  ;;  %1554 = vrot.lane.b32.xlu0 %v3215_v11, %s6584_s30  ;;  %s6590_s30 = smov 114  }
 0x3b0   : > { %1585 = vrot.lane.b32.xlu1 %v3217_v12, %s6586_s8  ;;  %1583 = vrot.lane.b32.xlu0 %v3215_v11, %s6586_s8  ;;  %s6592_s8 = smov 113  }
 0x3b4   : > { %1614 = vrot.lane.b32.xlu1 %v3217_v12, %s6678_s14  ;;  %1612 = vrot.lane.b32.xlu0 %v3215_v11, %s6678_s14  ;;  %s3732_s14 = sld [smem:[#allocation7 + $0x3c]] }
 0x3b8   : > { %1643 = vrot.lane.b32.xlu1 %v3217_v12, %s6588_s12  ;;  %1641 = vrot.lane.b32.xlu0 %v3215_v11, %s6588_s12  ;;  %s6594_s12 = smov 112  }
 0x3bc   : > { %1672 = vrot.lane.b32.xlu1 %v3217_v12, %s6590_s30  ;;  %1670 = vrot.lane.b32.xlu0 %v3215_v11, %s6590_s30  ;;  %s6596_s30 = smov 111  }
 0x3be   : > { %v3335_v13 = vpop.permute.xlu1 %844  ;;  %v3337_v16 = vpop.permute.xlu0 %842 }
 0x3c0   : > { %1701 = vrot.lane.b32.xlu1 %v3217_v12, %s6592_s8  ;;  %1699 = vrot.lane.b32.xlu0 %v3215_v11, %s6592_s8  ;;  %s6674_s8 = smov 110  }
 0x3c2   : > { %v3343_v17 = vpop.permute.xlu1 %873  ;;  %v3345_v20 = vpop.permute.xlu0 %871 }
 0x3c4   : > { %1730 = vrot.lane.b32.xlu1 %v3217_v12, %s6594_s12  ;;  %1728 = vrot.lane.b32.xlu0 %v3215_v11, %s6594_s12  ;;  %s6598_s12 = smov 109  }
 0x3c6   : > { %v3351_v21 = vpop.permute.xlu1 %902  ;;  %v3353_v24 = vpop.permute.xlu0 %900 }
 0x3c8   : > { %1759 = vrot.lane.b32.xlu1 %v3217_v12, %s6596_s30  ;;  %1757 = vrot.lane.b32.xlu0 %v3215_v11, %s6596_s30  ;;  %s6600_s30 = smov 99  }
 0x3ca   : > { %v3359_v25 = vpop.permute.xlu1 %931  ;;  %v3361_v28 = vpop.permute.xlu0 %929 }
 0x3cc   : > { %1788 = vrot.lane.b32.xlu1 %v3217_v12, %s6674_s8  ;;  %1786 = vrot.lane.b32.xlu0 %v3215_v11, %s6674_s8  ;;  %s3726_s8 = sld [smem:[#allocation7 + $0x3b]] }
 0x3ce   : > { %v3367_v29 = vpop.permute.xlu1 %960  ;;  %v3369_v30 = vpop.permute.xlu0 %958 }
 0x3d0   : > { %1817 = vrot.lane.b32.xlu1 %v3217_v12, %s6598_s12  ;;  %1815 = vrot.lane.b32.xlu0 %v3215_v11, %s6598_s12  ;;  %s6602_s12 = smov 98  }
 0x3d2   : > { %v3375_v32 = vpop.permute.xlu1 %989  ;;  %v3377_v33 = vpop.permute.xlu0 %987 }
 0x3d4   : > { %1846 = vrot.lane.b32.xlu1 %v3217_v12, %s6600_s30  ;;  %1844 = vrot.lane.b32.xlu0 %v3215_v11, %s6600_s30  ;;  %s6604_s30 = smov 97  }
 0x3d6   : > { %v3387_v36 = vpop.permute.xlu1 %1018  ;;  %v3389_v38 = vpop.permute.xlu0 %1016 }
 0x3d8   : > { %1875 = vrot.lane.b32.xlu1 %v3217_v12, %s6602_s12  ;;  %1873 = vrot.lane.b32.xlu0 %v3215_v11, %s6602_s12  ;;  %s6606_s12 = smov 96  }
 0x3da   : > { %v3399_v45 = vpop.permute.xlu1 %1047  ;;  %v3401_v14 = vpop.permute.xlu0 %1045 }
 0x3dc   : > { %1904 = vrot.lane.b32.xlu1 %v3217_v12, %s6604_s30  ;;  %1902 = vrot.lane.b32.xlu0 %v3215_v11, %s6604_s30  ;;  %s6608_s30 = smov 95  }
 0x3de   : > { %v3409_v8 = vpop.permute.xlu1 %1076  ;;  %v3411_v18 = vpop.permute.xlu0 %1074 }
 0x3e0   : > { %1933 = vrot.lane.b32.xlu1 %v3217_v12, %s6606_s12  ;;  %1931 = vrot.lane.b32.xlu0 %v3215_v11, %s6606_s12  ;;  %s6610_s12 = smov 94  }
 0x3e2   : > { %v3419_v55 = vpop.permute.xlu1 %1105  ;;  %v3421_v56 = vpop.permute.xlu0 %1103 }
 0x3e4   : > { %1962 = vrot.lane.b32.xlu1 %v3217_v12, %s6608_s30  ;;  %1960 = vrot.lane.b32.xlu0 %v3215_v11, %s6608_s30  ;;  %s6612_s30 = smov 93  }
 0x3e6   : > { %v3429_v57 = vpop.permute.xlu1 %1134  ;;  %v3431_v58 = vpop.permute.xlu0 %1132 }
 0x3e8   : > { %1991 = vrot.lane.b32.xlu1 %v3217_v12, %s6610_s12  ;;  %1989 = vrot.lane.b32.xlu0 %v3215_v11, %s6610_s12  ;;  %s6614_s12 = smov 83  }
 0x3ea   : > { %v3439_v61 = vpop.permute.xlu1 %1163  ;;  %v3441_v62 = vpop.permute.xlu0 %1161 }
 0x3ec   : > { %2020 = vrot.lane.b32.xlu1 %v3217_v12, %s6612_s30  ;;  %2018 = vrot.lane.b32.xlu0 %v3215_v11, %s6612_s30  ;;  %s6616_s30 = smov 82  }
 0x3ee   : > { %v3447_v3 = vpop.permute.xlu1 %1192  ;;  %v3449_v7 = vpop.permute.xlu0 %1190 }
 0x3f0   : > { %2049 = vrot.lane.b32.xlu1 %v3217_v12, %s6614_s12  ;;  %2047 = vrot.lane.b32.xlu0 %v3215_v11, %s6614_s12  ;;  %s6618_s12 = smov 81  }
 0x3f2   : > { %v3455_v34 = vpop.permute.xlu1 %1221  ;;  %v3457_v35 = vpop.permute.xlu0 %1219 }
 0x3f4   : > { %2078 = vrot.lane.b32.xlu1 %v3217_v12, %s6616_s30  ;;  %2076 = vrot.lane.b32.xlu0 %v3215_v11, %s6616_s30  ;;  %s6620_s30 = smov 80  }
 0x3f6   : > { %v3463_v43 = vpop.permute.xlu1 %1250  ;;  %v3465_v4 = vpop.permute.xlu0 %1248 }
 0x3f8   : > { %2107 = vrot.lane.b32.xlu1 %v3217_v12, %s6618_s12  ;;  %2105 = vrot.lane.b32.xlu0 %v3215_v11, %s6618_s12  ;;  %s6669_s12 = smov 79  }
 0x3fa   : > { %v3471_v19 = vpop.permute.xlu1 %1279  ;;  %v3473_v52 = vpop.permute.xlu0 %1277 }
 0x3fc   : > { %2136 = vrot.lane.b32.xlu1 %v3217_v12, %s6620_s30  ;;  %2134 = vrot.lane.b32.xlu0 %v3215_v11, %s6620_s30  ;;  %s6667_s30 = smov 78  }
 0x3fe   : > { %v3479_v59 = vpop.permute.xlu1 %1308  ;;  %v3481_v60 = vpop.permute.xlu0 %1306 }
 0x3ff   : > { %6824 = vst [vmem:[#allocation41_spill] sm:$0xff] %v3481_v60 }
 0x400   : > { %2165 = vrot.lane.b32.xlu1 %v3217_v12, %s6669_s12  ;;  %2163 = vrot.lane.b32.xlu0 %v3215_v11, %s6669_s12  ;;  %s6889_s12 = smov 127  }
 0x402   : > { %v3487_v27 = vpop.permute.xlu1 %1337  ;;  %v3489_v10 = vpop.permute.xlu0 %1335 }
 0x403   : > { %6825 = vst [vmem:[#allocation42_spill] sm:$0xff] %v3487_v27  ;;  %6826 = vst [vmem:[#allocation43_spill] sm:$0xff] %v3489_v10 }
 0x404   : > { %2194 = vrot.lane.b32.xlu1 %v3217_v12, %s6667_s30  ;;  %2192 = vrot.lane.b32.xlu0 %v3215_v11, %s6667_s30  ;;  %s3715_s30 = sld [smem:[#allocation7 + $0x39]] }
 0x406   : > { %v3499_v54 = vpop.permute.xlu1 %1366  ;;  %v3501_v53 = vpop.permute.xlu0 %1364 }
 0x407   : > { %6827 = vst [vmem:[#allocation44_spill] sm:$0xff] %v3499_v54  ;;  %6828 = vst [vmem:[#allocation45_spill] sm:$0xff] %v3501_v53 }
 0x408   : > { %837 = vrot.lane.b32.xlu1 %v3497_v42, %s2795_s24  ;;  %835 = vrot.lane.b32.xlu0 %v3495_v41, %s2795_s24  ;;  %s6853_s24 = smov 30  }
 0x40a   : > { %v3507_v49 = vpop.permute.xlu1 %1395  ;;  %v3509_v15 = vpop.permute.xlu0 %1393 }
 0x40b   : > { %6829 = vst [vmem:[#allocation46_spill] sm:$0xff] %v3507_v49  ;;  %6830 = vst [vmem:[#allocation47_spill] sm:$0xff] %v3509_v15 }
 0x40c   : > { %866 = vrot.lane.b32.xlu1 %v3497_v42, %s2796_s29  ;;  %864 = vrot.lane.b32.xlu0 %v3495_v41, %s2796_s29  ;;  %s6856_s29 = smov 29  }
 0x40e   : > { %v3515_v22 = vpop.permute.xlu1 %1424  ;;  %v3517_v23 = vpop.permute.xlu0 %1422 }
 0x40f   : > { %6831 = vst [vmem:[#allocation48_spill] sm:$0xff] %v3515_v22  ;;  %6832 = vst [vmem:[#allocation49_spill] sm:$0xff] %v3517_v23  ;;  %v876_v22 = vsel %vm868_vm13, %v3343_v17, %v3345_v20 }
 0x410   : > { %895 = vrot.lane.b32.xlu1 %v3497_v42, %s2797_s9  ;;  %893 = vrot.lane.b32.xlu0 %v3495_v41, %s2797_s9  ;;  %s6859_s9 = smov 19  }
 0x412   : > { %v3523_v63 = vpop.permute.xlu1 %1453  ;;  %v3525_v26 = vpop.permute.xlu0 %1451 }
 0x413   : > { %6833 = vst [vmem:[#allocation50_spill] sm:$0xff] %v3523_v63  ;;  %6834 = vst [vmem:[#allocation51_spill] sm:$0xff] %v3525_v26 }
 0x414   : > { %924 = vrot.lane.b32.xlu1 %v3497_v42, %s2798_s17  ;;  %922 = vrot.lane.b32.xlu0 %v3495_v41, %s2798_s17  ;;  %s6862_s17 = smov 18  }
 0x416   : > { %v3531_v9 = vpop.permute.xlu1 %1482  ;;  %v3533_v50 = vpop.permute.xlu0 %1480 }
 0x417   : > { %6835 = vst [vmem:[#allocation52_spill] sm:$0xff] %v3531_v9  ;;  %6836 = vst [vmem:[#allocation53_spill] sm:$0xff] %v3533_v50  ;;  %v846_v9 = vsel %vm839_vm12, %v3337_v16, %v3335_v13 }
 0x418   : > { %953 = vrot.lane.b32.xlu1 %v3497_v42, %s2799_s13  ;;  %951 = vrot.lane.b32.xlu0 %v3495_v41, %s2799_s13  ;;  %s6865_s13 = smov 17  }
 0x41a   : > { %v3539_v6 = vpop.permute.xlu1 %1511  ;;  %v3541_v5 = vpop.permute.xlu0 %1509 }
 0x41b   : > { %6837 = vst [vmem:[#allocation54_spill] sm:$0xff] %v3539_v6  ;;  %6838 = vst [vmem:[#allocation55_spill] sm:$0xff] %v3541_v5 }
 0x41c   : > { %982 = vrot.lane.b32.xlu1 %v3497_v42, %s2800_s18  ;;  %980 = vrot.lane.b32.xlu0 %v3495_v41, %s2800_s18  ;;  %s6868_s18 = smov 16  }
 0x41e   : > { %v3547_v2 = vpop.permute.xlu1 %1556  ;;  %v3549_v44 = vpop.permute.xlu0 %1554 }
 0x41f   : > { %6839 = vst [vmem:[#allocation56_spill] sm:$0xff] %v3547_v2  ;;  %6840 = vst [vmem:[#allocation57_spill] sm:$0xff] %v3549_v44 }
 0x420   : > { %1011 = vrot.lane.b32.xlu1 %v3497_v42, %s2801_s19  ;;  %1009 = vrot.lane.b32.xlu0 %v3495_v41, %s2801_s19  ;;  %s6871_s19 = smov 15  }
 0x422   : > { %v3555_v1 = vpop.permute.xlu1 %1585  ;;  %v3557_v51 = vpop.permute.xlu0 %1583 }
 0x423   : > { %6841 = vst [vmem:[#allocation58_spill] sm:$0xff] %v3555_v1  ;;  %6842 = vst [vmem:[#allocation59_spill] sm:$0xff] %v3557_v51  ;;  %v3748_v51 = vshra.s32 %v3118_v47, 4 }
 0x424   : > { %1040 = vrot.lane.b32.xlu1 %v3497_v42, %s2802_s26  ;;  %1038 = vrot.lane.b32.xlu0 %v3495_v41, %s2802_s26  ;;  %s6874_s26 = smov 14  }
 0x426   : > { %v3563_v48 = vpop.permute.xlu1 %1614  ;;  %v3565_v40 = vpop.permute.xlu0 %1612 }
 0x427   : > { %6843 = vst [vmem:[#allocation60_spill] sm:$0xff] %v3563_v48  ;;  %6844 = vst [vmem:[#allocation61_spill] sm:$0xff] %v3565_v40 }
 0x428   : > { %1069 = vrot.lane.b32.xlu1 %v3497_v42, %s2803_s27  ;;  %1067 = vrot.lane.b32.xlu0 %v3495_v41, %s2803_s27  ;;  %s6877_s27 = smov 13  }
 0x42a   : > { %v3571_v0 = vpop.permute.xlu1 %1643  ;;  %v3573_v37 = vpop.permute.xlu0 %1641 }
 0x42b   : > { %6845 = vst [vmem:[#allocation62_spill] sm:$0xff] %v3571_v0  ;;  %6846 = vst [vmem:[#allocation63_spill] sm:$0xff] %v3573_v37 }
 0x42c   : > { %1098 = vrot.lane.b32.xlu1 %v3497_v42, %s2804_s10  ;;  %1096 = vrot.lane.b32.xlu0 %v3495_v41, %s2804_s10  ;;  %s6880_s10 = smov 3  }
 0x42e   : > { %v3579_v46 = vpop.permute.xlu1 %1672  ;;  %v3581_v39 = vpop.permute.xlu0 %1670 }
 0x42f   : > { %6847 = vst [vmem:[#allocation64_spill] sm:$0xff] %v3579_v46  ;;  %6848 = vst [vmem:[#allocation65_spill] sm:$0xff] %v3581_v39 }
 0x430   : > { %1127 = vrot.lane.b32.xlu1 %v3497_v42, %s2805_s15  ;;  %1125 = vrot.lane.b32.xlu0 %v3495_v41, %s2805_s15  ;;  %s3679_s15 = sld [smem:[#allocation7 + $0x18]] }
 0x432   : > { %v3587_v31 = vpop.permute.xlu1 %1701  ;;  %v3589_v0 = vpop.permute.xlu0 %1699 }
 0x433   : > { %6849 = vst [vmem:[#allocation66_spill] sm:$0xff] %v3587_v31  ;;  %6850 = vst [vmem:[#allocation67_spill] sm:$0xff] %v3589_v0 }
 0x434   : > { %1156 = vrot.lane.b32.xlu1 %v3497_v42, %s2806_s16  ;;  %1154 = vrot.lane.b32.xlu0 %v3495_v41, %s2806_s16  ;;  %s3681_s16 = sld [smem:[#allocation7 + $0x49]] }
 0x436   : > { %v3595_v37 = vpop.permute.xlu1 %1730  ;;  %v3597_v46 = vpop.permute.xlu0 %1728 }
 0x437   : > { %6851 = vst [vmem:[#allocation68_spill] sm:$0xff] %v3595_v37  ;;  %6852 = vst [vmem:[#allocation69_spill] sm:$0xff] %v3597_v46 }
 0x438   : > { %1185 = vrot.lane.b32.xlu1 %v3497_v42, %s6853_s24  ;;  %1183 = vrot.lane.b32.xlu0 %v3495_v41, %s6853_s24  ;;  %s3683_s24 = sld [smem:[#allocation7 + $0x31]] }
 0x43a   : > { %v3603_v39 = vpop.permute.xlu1 %1759  ;;  %v3605_v31 = vpop.permute.xlu0 %1757 }
 0x43b   : > { %6854 = vst [vmem:[#allocation70_spill] sm:$0xff] %v3603_v39  ;;  %6855 = vst [vmem:[#allocation71_spill] sm:$0xff] %v3605_v31 }
 0x43c   : > { %1214 = vrot.lane.b32.xlu1 %v3497_v42, %s6856_s29  ;;  %1212 = vrot.lane.b32.xlu0 %v3495_v41, %s6856_s29  ;;  %s6883_s29 = smov 2  }
 0x43e   : > { %v3611_v0 = vpop.permute.xlu1 %1788  ;;  %v3613_v37 = vpop.permute.xlu0 %1786  ;;  %v853_v44 = vstv %s3683_s24  ;;  %s3779_s24 = sld [smem:[#allocation7]] }
 0x43f   : > { %6857 = vst [vmem:[#allocation72_spill] sm:$0xff] %v3611_v0  ;;  %6858 = vst [vmem:[#allocation73_spill] sm:$0xff] %v3613_v37 }
 0x440   : > { %1243 = vrot.lane.b32.xlu1 %v3497_v42, %s6859_s9  ;;  %1241 = vrot.lane.b32.xlu0 %v3495_v41, %s6859_s9  ;;  %s3689_s9 = sld [smem:[#allocation7 + $0x32]] }
 0x442   : > { %v3619_v46 = vpop.permute.xlu1 %1817  ;;  %v3621_v39 = vpop.permute.xlu0 %1815 }
 0x443   : > { %6860 = vst [vmem:[#allocation74_spill] sm:$0xff] %v3619_v46  ;;  %6861 = vst [vmem:[#allocation75_spill] sm:$0xff] %v3621_v39 }
 0x444   : > { %1272 = vrot.lane.b32.xlu1 %v3497_v42, %s6862_s17  ;;  %1270 = vrot.lane.b32.xlu0 %v3495_v41, %s6862_s17  ;;  %s3691_s17 = sld [smem:[#allocation7 + $0x33]] }
 0x446   : > { %v3627_v31 = vpop.permute.xlu1 %1846  ;;  %v3629_v0 = vpop.permute.xlu0 %1844  ;;  %v882_v2 = vstv %s3689_s9  ;;  %s6900_s9 = smov 115  }
 0x447   : > { %6863 = vst [vmem:[#allocation76_spill] sm:$0xff] %v3627_v31  ;;  %6864 = vst [vmem:[#allocation77_spill] sm:$0xff] %v3629_v0 }
 0x448   : > { %1301 = vrot.lane.b32.xlu1 %v3497_v42, %s6865_s13  ;;  %1299 = vrot.lane.b32.xlu0 %v3495_v41, %s6865_s13  ;;  %s3697_s13 = sld [smem:[#allocation7 + $0x34]] }
 0x44a   : > { %v3635_v37 = vpop.permute.xlu1 %1875  ;;  %v3637_v46 = vpop.permute.xlu0 %1873  ;;  %v911_v5 = vstv %s3691_s17  ;;  %s3825_s17 = sld [smem:[#allocation7 + $0x1]] }
 0x44b   : > { %6866 = vst [vmem:[#allocation78_spill] sm:$0xff] %v3635_v37  ;;  %6867 = vst [vmem:[#allocation79_spill] sm:$0xff] %v3637_v46 }
 0x44c   : > { %1330 = vrot.lane.b32.xlu1 %v3497_v42, %s6868_s18  ;;  %1328 = vrot.lane.b32.xlu0 %v3495_v41, %s6868_s18  ;;  %s4700_s18 = sld [smem:[#allocation7 + $0x5c]] }
 0x44e   : > { %v3643_v39 = vpop.permute.xlu1 %1904  ;;  %v3645_v31 = vpop.permute.xlu0 %1902  ;;  %v940_v6 = vstv %s3697_s13  ;;  %s3858_s13 = sld [smem:[#allocation7 + $0x3f]] }
 0x44f   : > { %6869 = vst [vmem:[#allocation80_spill] sm:$0xff] %v3643_v39  ;;  %6870 = vst [vmem:[#allocation81_spill] sm:$0xff] %v3645_v31 }
 0x450   : > { %1359 = vrot.lane.b32.xlu1 %v3497_v42, %s6871_s19  ;;  %1357 = vrot.lane.b32.xlu0 %v3495_v41, %s6871_s19  ;;  %s3699_s19 = sld [smem:[#allocation7 + $0x35]] }
 0x452   : > { %v3651_v0 = vpop.permute.xlu1 %1933  ;;  %v3653_v37 = vpop.permute.xlu0 %1931 }
 0x453   : > { %6872 = vst [vmem:[#allocation82_spill] sm:$0xff] %v3651_v0  ;;  %6873 = vst [vmem:[#allocation83_spill] sm:$0xff] %v3653_v37 }
 0x454   : > { %1388 = vrot.lane.b32.xlu1 %v3497_v42, %s6874_s26  ;;  %1386 = vrot.lane.b32.xlu0 %v3495_v41, %s6874_s26  ;;  %s6886_s26 = smov 1  }
 0x456   : > { %v3659_v46 = vpop.permute.xlu1 %1962  ;;  %v3661_v39 = vpop.permute.xlu0 %1960  ;;  %v969_v50 = vstv %s3699_s19  ;;  %s6903_s19 = smov 114  }
 0x457   : > { %6875 = vst [vmem:[#allocation84_spill] sm:$0xff] %v3659_v46  ;;  %6876 = vst [vmem:[#allocation85_spill] sm:$0xff] %v3661_v39  ;;  %v1536_v39 = vstv %s3681_s16  ;;  %s6895_s16 = smov 125  }
 0x458   : > { %1417 = vrot.lane.b32.xlu1 %v3497_v42, %s6877_s27  ;;  %1415 = vrot.lane.b32.xlu0 %v3495_v41, %s6877_s27  ;;  %s3705_s27 = sld [smem:[#allocation7 + $0x36]]  ;;  %v1537_v48 = vmul.f32 %v1536_v39, %v3215_v11  ;;  %v3827_v11 = vmul.f32 %v882_v2, %v876_v22  ;;  %v962_v22 = vsel %vm955_vm0, %v3369_v30, %v3367_v29 }
 0x45a   : > { %v3667_v31 = vpop.permute.xlu1 %1991  ;;  %v3669_v0 = vpop.permute.xlu0 %1989 }
 0x45b   : > { %6878 = vst [vmem:[#allocation86_spill] sm:$0xff] %v3667_v31  ;;  %6879 = vst [vmem:[#allocation87_spill] sm:$0xff] %v3669_v0  ;;  %v722_v31 = vadd.s32 128, %v3118_v47 }
 0x45c   : > { %1446 = vrot.lane.b32.xlu1 %v3497_v42, %s6880_s10  ;;  %1444 = vrot.lane.b32.xlu0 %v3495_v41, %s6880_s10  ;;  %s3707_s10 = sld [smem:[#allocation7 + $0x37]] }
 0x45d   : > { %v3750_v1 = vshra.s32 %v722_v31, 4 }
 0x45e   : > { %v3675_v37 = vpop.permute.xlu1 %2020  ;;  %v3677_v46 = vpop.permute.xlu0 %2018  ;;  %v6915_v10 = vstv %s3705_s27  ;;  %s4006_s27 = sld [smem:[#allocation7 + $0x5]] }
 0x45f   : > { %6881 = vst [vmem:[#allocation88_spill] sm:$0xff] %v3675_v37  ;;  %6882 = vst [vmem:[#allocation89_spill] sm:$0xff] %v3677_v46 }
 0x460   : > { %1475 = vrot.lane.b32.xlu1 %v3497_v42, %s6883_s29  ;;  %1473 = vrot.lane.b32.xlu0 %v3495_v41, %s6883_s29  ;;  %s3713_s29 = sld [smem:[#allocation7 + $0x38]] }
 0x462   : > { %v3693_v37 = vpop.permute.xlu1 %2049  ;;  %v3695_v46 = vpop.permute.xlu0 %2047 }
 0x463   : > { %6884 = vst [vmem:[#allocation90_spill] sm:$0xff] %v3693_v37  ;;  %6885 = vst [vmem:[#allocation91_spill] sm:$0xff] %v3695_v46  ;;  %v1533_v46 = vstv %s3679_s15  ;;  %s3745_s15 = sld [smem:[#allocation7 + $0x3e]] }
 0x464   : > { %1504 = vrot.lane.b32.xlu1 %v3497_v42, %s6886_s26  ;;  %1502 = vrot.lane.b32.xlu0 %v3495_v41, %s6886_s26  ;;  %s3722_s26 = sld [smem:[#allocation7 + $0x3a]]  ;;  %v1535_v40 = vmul.f32 %v1533_v46, %v3497_v42 }
 0x466   : > { %v3709_v0 = vpop.permute.xlu1 %2078  ;;  %v3711_v37 = vpop.permute.xlu0 %2076 }
 0x467   : > { %6887 = vst [vmem:[#allocation92_spill] sm:$0xff] %v3709_v0  ;;  %6888 = vst [vmem:[#allocation93_spill] sm:$0xff] %v3711_v37 }
 0x468   : > { %1549 = vrot.lane.b32.xlu1 %v3497_v42, %s6889_s12  ;;  %1547 = vrot.lane.b32.xlu0 %v3495_v41, %s6889_s12  ;;  %s6892_s12 = smov 126  }
 0x46a   : > { %v3728_v37 = vpop.permute.xlu1 %2107  ;;  %v3730_v0 = vpop.permute.xlu0 %2105 }
 0x46b   : > { %6890 = vst [vmem:[#allocation94_spill] sm:$0xff] %v3728_v37  ;;  %6891 = vst [vmem:[#allocation95_spill] sm:$0xff] %v3730_v0  ;;  %v1538_v37 = vmul.f32 %v1536_v39, %v3217_v12  ;;  %v1534_v0 = vmul.f32 %v1533_v46, %v3495_v41 }
 0x46c   : > { %1578 = vrot.lane.b32.xlu1 %v3497_v42, %s6892_s12  ;;  %1576 = vrot.lane.b32.xlu0 %v3495_v41, %s6892_s12  ;;  %s3871_s12 = sld [smem:[#allocation7 + $0x2]] }
 0x46d   : > { %v3770_v63 = vadd.f32 %v1538_v37, %v1535_v40  ;;  %v847_v37 = vsel %vm839_vm12, %v3335_v13, %v3337_v16  ;;  %v875_v40 = vsel %vm868_vm13, %v3345_v20, %v3343_v17  ;;  %v904_v13 = vsel %vm897_vm14, %v3353_v24, %v3351_v21 }
 0x46e   : > { %v3756_v39 = vpop.permute.xlu1 %2136  ;;  %v3758_v46 = vpop.permute.xlu0 %2134  ;;  %v905_v16 = vsel %vm897_vm14, %v3351_v21, %v3353_v24  ;;  %v3820_v17 = vand.u32 15, %v722_v31  ;;  %v727_v20 = vadd.s32 4294967293, %v3748_v51  ;;  %v728_v24 = vadd.s32 4294967293, %v3750_v1 }
 0x46f   : > { %6893 = vst [vmem:[#allocation96_spill] sm:$0xff] %v3756_v39  ;;  %6894 = vst [vmem:[#allocation97_spill] sm:$0xff] %v3758_v46  ;;  %v3772_v39 = vadd.f32 %v1537_v48, %v1534_v0  ;;  %v3812_v0 = vand.u32 15, %v3118_v47  ;;  %v3829_v46 = vmul.f32 %v882_v2, %v875_v40  ;;  %v3831_v26 = vmul.f32 %v911_v5, %v905_v16 }
 0x470   : > { %1607 = vrot.lane.b32.xlu1 %v3497_v42, %s6895_s16  ;;  %1605 = vrot.lane.b32.xlu0 %v3495_v41, %s6895_s16  ;;  %6896 = vst [vmem:[#allocation98_spill] sm:$0xff] %v3770_v63  ;;  %v3833_v12 = vmul.f32 %v911_v5, %v904_v13  ;;  %v934_v2 = vsel %vm926_vm15, %v3359_v25, %v3361_v28  ;;  %vm729_vm3 = vcmp.ge.s32.totalorder %v727_v20, 0  ;;  %vm731_vm4 = vcmp.lt.s32.totalorder %v727_v20, 16  ;;  %s6908_s16 = smov 113  }
 0x471   : > { %6897 = vst [vmem:[#allocation99_spill] sm:$0xff] %v3772_v39  ;;  %v963_v5 = vsel %vm955_vm0, %v3367_v29, %v3369_v30  ;;  %vm730_vm5 = vcmp.ge.s32.totalorder %v728_v24, 0  ;;  %vm732_vm6 = vcmp.lt.s32.totalorder %v728_v24, 16  ;;  %v3873_v29 = vmul.f32 %v940_v6, %v934_v2  ;;  %vm3887_vm8 = vmand %vm729_vm3, %vm731_vm4 }
 0x472   : > { %v3794_v48 = vpop.permute.xlu1 %2165  ;;  %v3796_v23 = vpop.permute.xlu0 %2163  ;;  %v3877_v40 = vmul.f32 %v969_v50, %v963_v5  ;;  %v3880_v21 = vadd.s32 4294967294, %v3820_v17  ;;  %vm3902_vm10 = vmand %vm730_vm5, %vm732_vm6  ;;  %v879_v24 = vstv %s3825_s17  ;;  %s6918_s17 = smov 112  }
 0x473   : > { %6898 = vst [vmem:[#allocation100_spill] sm:$0xff] %v3794_v48  ;;  %6899 = vst [vmem:[#allocation101_spill] sm:$0xff] %v3796_v23  ;;  %v854_v23 = vmul.f32 %v853_v44, %v847_v37  ;;  %v855_v48 = vmul.f32 %v853_v44, %v846_v9  ;;  %v933_v44 = vsel %vm926_vm15, %v3361_v28, %v3359_v25  ;;  %v3852_v9 = vadd.s32 4294967293, %v3812_v0 }
 0x474   : > { %1636 = vrot.lane.b32.xlu1 %v3497_v42, %s6900_s9  ;;  %1634 = vrot.lane.b32.xlu0 %v3495_v41, %s6900_s9  ;;  %v3865_v25 = vadd.s32 4294967293, %v3820_v17  ;;  %v850_v28 = vstv %s3779_s24  ;;  %v3869_v37 = vadd.s32 4294967294, %v3812_v0  ;;  %v3875_v30 = vmul.f32 %v940_v6, %v933_v44  ;;  %s3920_s24 = sld [smem:[#allocation7 + $0x3]] }
 0x475   : > { %vm6736_vm9 = vcmp.ge.s32.totalorder %v3852_v9, 0  ;;  %vm6721_vm4 = vcmp.ge.s32.totalorder %v3880_v21, 0  ;;  %s3954_s9 = sld [smem:[#allocation7 + $0x4]] }
 0x476   : > { %v3835_v31 = vpop.permute.xlu1 %2194  ;;  %v3837_v49 = vpop.permute.xlu0 %2192  ;;  %vm6712_vm11 = vcmp.ge.s32.totalorder %v3865_v25, 0  ;;  %vm3934_vm3 = vmand %vm3887_vm8, %vm6736_vm9 }
 0x477   : > { %6901 = vst [vmem:[#allocation102_spill] sm:$0xff] %v3835_v31  ;;  %6902 = vst [vmem:[#allocation103_spill] sm:$0xff] %v3837_v49  ;;  %v3882_v49 = vmul.f32 %v969_v50, %v962_v22  ;;  %v991_v50 = vsel %vm984_vm1, %v3377_v33, %v3375_v32  ;;  %v992_v22 = vsel %vm984_vm1, %v3375_v32, %v3377_v33 }
 0x478   : > { %1665 = vrot.lane.b32.xlu1 %v3497_v42, %s6903_s19  ;;  %1663 = vrot.lane.b32.xlu0 %v3495_v41, %s6903_s19  ;;  %v1021_v32 = vsel %vm1013_vm2, %v3387_v36, %v3389_v38  ;;  %vm3946_vm5 = vmand %vm3902_vm10, %vm6712_vm11  ;;  %v3958_v27 = vmul.f32 %v6915_v10, %v992_v22  ;;  %v6920_v22 = vstv %s3707_s10  ;;  %s6926_s10 = smov 111   ;;  %s6929_s19 = smov 110  }
 0x47a   : > { %v838_v13 = vpop.permute.xlu1 %837  ;;  %v836_v16 = vpop.permute.xlu0 %835 }
 0x47b   : > { %v840_v6 = vsel %vm839_vm12, %v836_v16, %v838_v13  ;;  %v841_v44 = vsel %vm839_vm12, %v838_v13, %v836_v16  ;;  %vm6711_vm12 = vcmp.ge.s32.totalorder %v3869_v37, 0  ;;  %v3918_v13 = vadd.s32 4294967295, %v3812_v0 }
 0x47c   : > { %v851_v2 = vmul.f32 %v850_v28, %v841_v44  ;;  %v852_v5 = vmul.f32 %v850_v28, %v840_v6  ;;  %1694 = vrot.lane.b32.xlu1 %v3497_v42, %s6908_s16  ;;  %1692 = vrot.lane.b32.xlu0 %v3495_v41, %s6908_s16  ;;  %v1020_v28 = vsel %vm1013_vm2, %v3389_v38, %v3387_v36  ;;  %v3940_v44 = vadd.s32 4294967295, %v3820_v17  ;;  %vm3965_vm6 = vmand %vm3887_vm8, %vm6711_vm12  ;;  %s4087_s16 = sld [smem:[#allocation7 + $0x40]] }
 0x47d   : > { %6909 = vst [vmem:[#allocation104_spill] sm:$0xff] %v3918_v13  ;;  %vm6718_vm12 = vcmp.ge.s32.totalorder %v3918_v13, 0 }
 0x47e   : > { %v867_v16 = vpop.permute.xlu1 %866  ;;  %v865_v6 = vpop.permute.xlu0 %864  ;;  %6912 = vst [vmem:[#allocation105_spill] sm:$0xff] %v3940_v44  ;;  %v856_v38 = vadd.f32 %v854_v23, %v851_v2  ;;  %v857_v15 = vadd.f32 %v855_v48, %v852_v5  ;;  %v6919_v5 = vmov %v6915_v10  ;;  %vm6717_vm11 = vcmp.ge.s32.totalorder %v3940_v44, 0 }
 0x47f   : > { %v869_v53 = vsel %vm868_vm13, %v865_v6, %v867_v16  ;;  %v870_v54 = vsel %vm868_vm13, %v867_v16, %v865_v6  ;;  %v3975_v10 = vmul.f32 %v6919_v5, %v991_v50  ;;  %v3979_v16 = vmul.f32 %v6920_v22, %v1021_v32  ;;  %vm3985_vm13 = vmand %vm3902_vm10, %vm6721_vm4 }
 0x480   : > { %v880_v48 = vmul.f32 %v879_v24, %v870_v54  ;;  %v881_v2 = vmul.f32 %v879_v24, %v869_v53  ;;  %1723 = vrot.lane.b32.xlu1 %v3497_v42, %s6918_s17  ;;  %1721 = vrot.lane.b32.xlu0 %v3495_v41, %s6918_s17  ;;  %v908_v53 = vstv %s3871_s12  ;;  %v6923_v54 = vmov %v6920_v22  ;;  %s4070_s12 = sld [smem:[#allocation7 + $0x6]]  ;;  %s6937_s17 = smov 99  }
 0x481   : > { %v3993_v24 = vmul.f32 %v6923_v54, %v1020_v28  ;;  %v860_v39 = vsel %vm3934_vm3, %v856_v38, 0.0  ;;  %v861_v63 = vsel %vm3946_vm5, %v857_v15, 0.0  ;;  %vm4016_vm3 = vmand %vm3887_vm8, %vm6718_vm12  ;;  %v4040_v6 = vsel %vm1042_vm7, %v3401_v14, %v3399_v45 }
 0x482   : > { %v885_v50 = vadd.f32 %v3827_v11, %v880_v48  ;;  %v886_v5 = vadd.f32 %v3829_v46, %v881_v2  ;;  %v896_v32 = vpop.permute.xlu1 %895  ;;  %v894_v22 = vpop.permute.xlu0 %893  ;;  %v937_v2 = vstv %s3920_s24  ;;  %s6932_s24 = smov 109  }
 0x483   : > { %v898_v60 = vsel %vm897_vm14, %v894_v22, %v896_v32  ;;  %v899_v28 = vsel %vm897_vm14, %v896_v32, %v894_v22  ;;  %vm4028_vm14 = vmand %vm3902_vm10, %vm6717_vm11 }
 0x484   : > { %v889_v11 = vsel %vm3965_vm6, %v885_v50, 0.0  ;;  %v890_v46 = vsel %vm3985_vm13, %v886_v5, 0.0  ;;  %v909_v33 = vmul.f32 %v908_v53, %v899_v28  ;;  %v910_v36 = vmul.f32 %v908_v53, %v898_v60  ;;  %1752 = vrot.lane.b32.xlu1 %v3497_v42, %s6926_s10  ;;  %1750 = vrot.lane.b32.xlu0 %v3495_v41, %s6926_s10  ;;  %s6944_s10 = smov 98  }
 0x485   : > { %v891_v38 = vadd.f32 %v889_v11, %v860_v39  ;;  %v892_v23 = vadd.f32 %v890_v46, %v861_v63  ;;  %v4034_v60 = vadd.s32 1, %v3812_v0  ;;  %v4045_v50 = vadd.s32 1, %v3820_v17 }
 0x486   : > { %v914_v63 = vadd.f32 %v3831_v26, %v909_v33  ;;  %v915_v39 = vadd.f32 %v3833_v12, %v910_v36  ;;  %v925_v53 = vpop.permute.xlu1 %924  ;;  %v923_v54 = vpop.permute.xlu0 %922  ;;  %v4051_v5 = vsel %vm1042_vm7, %v3399_v45, %v3401_v14  ;;  %v966_v26 = vstv %s3954_s9  ;;  %s4117_s9 = sld [smem:[#allocation7 + $0x7]] }
 0x487   : > { %v927_v32 = vsel %vm926_vm15, %v923_v54, %v925_v53  ;;  %v928_v22 = vsel %vm926_vm15, %v925_v53, %v923_v54  ;;  %vm6716_vm15 = vcmp.lt.s32.totalorder %v4034_v60, 16  ;;  %v4068_v33 = vadd.s32 2, %v3812_v0 }
 0x488   : > { %v918_v12 = vsel %vm4016_vm3, %v914_v63, 0.0  ;;  %v919_v28 = vsel %vm4028_vm14, %v915_v39, 0.0  ;;  %v938_v11 = vmul.f32 %v937_v2, %v928_v22  ;;  %v939_v46 = vmul.f32 %v937_v2, %v927_v32  ;;  %1781 = vrot.lane.b32.xlu1 %v3497_v42, %s6929_s19  ;;  %1779 = vrot.lane.b32.xlu0 %v3495_v41, %s6929_s19  ;;  %vm4097_vm13 = vmand %vm3887_vm8, %vm6716_vm15  ;;  %s4198_s19 = sld [smem:[#allocation7 + $0x9]] }
 0x489   : > { %v920_v45 = vadd.f32 %v918_v12, %v891_v38  ;;  %v921_v14 = vadd.f32 %v919_v28, %v892_v23  ;;  %vm6715_vm5 = vcmp.lt.s32.totalorder %v4045_v50, 16  ;;  %v4076_v63 = vadd.s32 2, %v3820_v17 }
 0x48a   : > { %v943_v15 = vadd.f32 %v3873_v29, %v938_v11  ;;  %v944_v36 = vadd.f32 %v3875_v30, %v939_v46  ;;  %v954_v48 = vpop.permute.xlu1 %953  ;;  %v952_v2 = vpop.permute.xlu0 %951  ;;  %vm1071_vm6 = vcmp.lt.s32.totalorder %v3118_v47, 34  ;;  %v995_v39 = vstv %s4006_s27  ;;  %s4157_s27 = sld [smem:[#allocation7 + $0x8]] }
 0x48b   : > { %v956_v38 = vsel %vm955_vm0, %v952_v2, %v954_v48  ;;  %v957_v23 = vsel %vm955_vm0, %v954_v48, %v952_v2  ;;  %v4085_v29 = vadd.s32 3, %v3812_v0  ;;  %vm4109_vm0 = vmand %vm3902_vm10, %vm6715_vm5  ;;  %vm6719_vm3 = vcmp.lt.s32.totalorder %v4068_v33, 16 }
 0x48c   : > { %v947_v30 = vsel %vm3887_vm8, %v943_v15, 0.0  ;;  %v948_v53 = vsel %vm3902_vm10, %v944_v36, 0.0  ;;  %v967_v32 = vmul.f32 %v966_v26, %v957_v23  ;;  %v968_v22 = vmul.f32 %v966_v26, %v956_v38  ;;  %1810 = vrot.lane.b32.xlu1 %v3497_v42, %s6932_s24  ;;  %1808 = vrot.lane.b32.xlu0 %v3495_v41, %s6932_s24  ;;  %vm4139_vm12 = vmand %vm3887_vm8, %vm6719_vm3  ;;  %s4302_s24 = sld [smem:[#allocation7 + $0xb]] }
 0x48d   : > { %v949_v0 = vadd.f32 %v947_v30, %v920_v45  ;;  %v950_v12 = vadd.f32 %v948_v53, %v921_v14  ;;  %v4115_v26 = vadd.s32 3, %v3820_v17  ;;  %vm6720_vm14 = vcmp.lt.s32.totalorder %v4076_v63, 16 }
 0x48e   : > { %v972_v11 = vadd.f32 %v3877_v40, %v967_v32  ;;  %v973_v46 = vadd.f32 %v3882_v49, %v968_v22  ;;  %v983_v45 = vpop.permute.xlu1 %982  ;;  %v981_v14 = vpop.permute.xlu0 %980  ;;  %v735_v15 = vadd.s32 4294967294, %v3748_v51  ;;  %vm6738_vm15 = vcmp.lt.s32.totalorder %v4085_v29, 16 }
 0x48f   : > { %v985_v36 = vsel %vm984_vm1, %v981_v14, %v983_v45  ;;  %v986_v17 = vsel %vm984_vm1, %v983_v45, %v981_v14  ;;  %v736_v40 = vadd.s32 4294967294, %v3750_v1  ;;  %vm4151_vm1 = vmand %vm3902_vm10, %vm6720_vm14  ;;  %v1024_v32 = vstv %s4070_s12  ;;  %s4254_s12 = sld [smem:[#allocation7 + $0xa]] }
 0x490   : > { %v976_v49 = vsel %vm4097_vm13, %v972_v11, 0.0  ;;  %v977_v48 = vsel %vm4109_vm0, %v973_v46, 0.0  ;;  %v996_v38 = vmul.f32 %v995_v39, %v986_v17  ;;  %v997_v23 = vmul.f32 %v995_v39, %v985_v36  ;;  %1839 = vrot.lane.b32.xlu1 %v3497_v42, %s6937_s17  ;;  %1837 = vrot.lane.b32.xlu0 %v3495_v41, %s6937_s17  ;;  %vm4165_vm14 = vmand %vm3887_vm8, %vm6738_vm15  ;;  %s4325_s17 = sld [smem:[#allocation7 + $0x43]] }
 0x491   : > { %v978_v30 = vadd.f32 %v976_v49, %v949_v0  ;;  %v979_v53 = vadd.f32 %v977_v48, %v950_v12  ;;  %vm6737_vm13 = vcmp.lt.s32.totalorder %v4115_v26, 16  ;;  %vm737_vm0 = vcmp.ge.s32.totalorder %v735_v15, 0 }
 0x492   : > { %v1001_v39 = vadd.f32 %v3958_v27, %v996_v38  ;;  %v1002_v22 = vadd.f32 %v3975_v10, %v997_v23  ;;  %v1012_v28 = vpop.permute.xlu1 %1011  ;;  %v1010_v0 = vpop.permute.xlu0 %1009  ;;  %vm739_vm3 = vcmp.lt.s32.totalorder %v735_v15, 16  ;;  %vm738_vm4 = vcmp.ge.s32.totalorder %v736_v40, 0  ;;  %vm4182_vm8 = vmand %vm3902_vm10, %vm6737_vm13 }
 0x493   : > { %v1014_v11 = vsel %vm1013_vm2, %v1010_v0, %v1012_v28  ;;  %v1015_v27 = vsel %vm1013_vm2, %v1012_v28, %v1010_v0  ;;  %vm740_vm11 = vcmp.lt.s32.totalorder %v736_v40, 16  ;;  %vm1158_vm5 = vcmp.lt.s32.totalorder %v3118_v47, 31  ;;  %vm4193_vm2 = vmand %vm737_vm0, %vm739_vm3 }
 0x494   : > { %v1005_v10 = vsel %vm4139_vm12, %v1001_v39, 0.0  ;;  %v1006_v31 = vsel %vm4151_vm1, %v1002_v22, 0.0  ;;  %v1025_v45 = vmul.f32 %v1024_v32, %v1015_v27  ;;  %v1026_v14 = vmul.f32 %v1024_v32, %v1014_v11  ;;  %1868 = vrot.lane.b32.xlu1 %v3497_v42, %s6944_s10  ;;  %1866 = vrot.lane.b32.xlu0 %v3495_v41, %s6944_s10  ;;  %vm4211_vm10 = vmand %vm738_vm4, %vm740_vm11  ;;  %s4354_s10 = sld [smem:[#allocation7 + $0xc]] }
 0x495   : > { %v1288_v36 = vstv %s4087_s16  ;;  %v1007_v17 = vadd.f32 %v1005_v10, %v978_v30  ;;  %v1008_v49 = vadd.f32 %v1006_v31, %v979_v53  ;;  %v1053_v48 = vstv %s4117_s9  ;;  %vm4235_vm12 = vmand %vm4193_vm2, %vm6736_vm9  ;;  %s4310_s9 = sld [smem:[#allocation7 + $0x41]] }
 0x496   : > { %v6947_v2 = vstv %s3713_s29  ;;  %v1079_v23 = vsel %vm1071_vm6, %v3409_v8, %v3411_v18  ;;  %v1030_v30 = vadd.f32 %v3979_v16, %v1025_v45  ;;  %v1031_v53 = vadd.f32 %v3993_v24, %v1026_v14  ;;  %v1041_v15 = vpop.permute.xlu1 %1040  ;;  %v1039_v32 = vpop.permute.xlu0 %1038  ;;  %s6953_s29 = smov 97   ;;  %s4623_s16 = sld [smem:[#allocation7 + $0x56]] }
 0x497   : > { %v1057_v38 = vmul.f32 %v6947_v2, %v4051_v5  ;;  %v6950_v5 = vmov %v6947_v2  ;;  %v1078_v16 = vsel %vm1071_vm6, %v3411_v18, %v3409_v8  ;;  %v1043_v24 = vsel %vm1042_vm7, %v1039_v32, %v1041_v15 }
 0x498   : > { %v1058_v39 = vmul.f32 %v6950_v5, %v4040_v6  ;;  %v1044_v40 = vsel %vm1042_vm7, %v1041_v15, %v1039_v32  ;;  %vm1187_vm11 = vcmp.lt.s32.totalorder %v3118_v47, 30  ;;  %v1034_v22 = vsel %vm4165_vm14, %v1030_v30, 0.0  ;;  %1897 = vrot.lane.b32.xlu1 %v3497_v42, %s6953_s29  ;;  %1895 = vrot.lane.b32.xlu0 %v3495_v41, %s6953_s29  ;;  %s4378_s29 = sld [smem:[#allocation7 + $0x46]] }
 0x499   : > { %v1035_v6 = vsel %vm4182_vm8, %v1031_v53, 0.0  ;;  %v1054_v18 = vmul.f32 %v1053_v48, %v1044_v40  ;;  %v1055_v28 = vmul.f32 %v1053_v48, %v1043_v24  ;;  %v6954_v0 = vstv %s3715_s30  ;;  %s6965_s30 = smov 96  }
 0x49a   : > { %v1086_v12 = vmul.f32 %v6954_v0, %v1079_v23  ;;  %v1036_v11 = vadd.f32 %v1034_v22, %v1007_v17  ;;  %v1037_v27 = vadd.f32 %v1035_v6, %v1008_v49  ;;  %vm6955_vm7 = vcmp.ge.s32.totalorder %v3865_v25, 0  ;;  %v1070_v48 = vpop.permute.xlu1 %1069  ;;  %v1068_v2 = vpop.permute.xlu0 %1067 }
 0x49b   : > { %vm4249_vm4 = vmand %vm4211_vm10, %vm6955_vm7  ;;  %v1082_v31 = vstv %s4157_s27  ;;  %v6958_v46 = vmov %v6954_v0  ;;  %vm6959_vm3 = vcmp.lt.s32.totalorder %v3118_v47, 33  ;;  %v1059_v17 = vadd.f32 %v1057_v38, %v1054_v18  ;;  %s6977_s27 = smov 95  }
 0x49c   : > { %v1087_v45 = vmul.f32 %v6958_v46, %v1078_v16  ;;  %v1108_v14 = vsel %vm6959_vm3, %v3419_v55, %v3421_v56  ;;  %v1060_v49 = vadd.f32 %v1058_v39, %v1055_v28  ;;  %vm6960_vm14 = vmmov %vm6959_vm3  ;;  %vm6961_vm1 = vcmp.lt.s32.totalorder %v3118_v47, 32  ;;  %1926 = vrot.lane.b32.xlu1 %v3497_v42, %s6965_s30  ;;  %1924 = vrot.lane.b32.xlu0 %v3495_v41, %s6965_s30  ;;  %s4391_s30 = sld [smem:[#allocation7 + $0xd]] }
 0x49d   : > { %v1107_v23 = vsel %vm6960_vm14, %v3421_v56, %v3419_v55  ;;  %v1137_v30 = vsel %vm6961_vm1, %v3429_v57, %v3431_v58  ;;  %vm1216_vm0 = vcmp.lt.s32.totalorder %v3118_v47, 29  ;;  %v1072_v38 = vsel %vm1071_vm6, %v1068_v2, %v1070_v48  ;;  %vm6973_vm14 = vmmov %vm6959_vm3 }
 0x49e   : > { %v1073_v53 = vsel %vm1071_vm6, %v1070_v48, %v1068_v2  ;;  %v1063_v15 = vsel %vm4235_vm12, %v1059_v17, 0.0  ;;  %v1064_v55 = vsel %vm4249_vm4, %v1060_v49, 0.0  ;;  %vm6962_vm8 = vcmp.ge.s32.totalorder %v3869_v37, 0  ;;  %vm6971_vm4 = vmmov %vm6961_vm1  ;;  %v1097_v10 = vpop.permute.xlu0 %1096 }
 0x49f   : > { %vm4283_vm7 = vmand %vm4193_vm2, %vm6962_vm8  ;;  %v1083_v32 = vmul.f32 %v1082_v31, %v1073_v53  ;;  %v1084_v5 = vmul.f32 %v1082_v31, %v1072_v38  ;;  %v6966_v39 = vstv %s3722_s26  ;;  %v1065_v24 = vadd.f32 %v1063_v15, %v1036_v11  ;;  %s4318_s26 = sld [smem:[#allocation7 + $0x42]] }
 0x4a0   : > { %v1115_v16 = vmul.f32 %v6966_v39, %v1108_v14  ;;  %v1066_v40 = vadd.f32 %v1064_v55, %v1037_v27  ;;  %vm6967_vm6 = vcmp.ge.s32.totalorder %v3880_v21, 0  ;;  %v1111_v6 = vstv %s4198_s19  ;;  %v1099_v27 = vpop.permute.xlu1 %1098  ;;  %1955 = vrot.lane.b32.xlu1 %v3497_v42, %s6977_s27  ;;  %1953 = vrot.lane.b32.xlu0 %v3495_v41, %s6977_s27  ;;  %s4372_s19 = sld [smem:[#allocation7 + $0x45]] }
 0x4a1   : > { %vm4297_vm12 = vmand %vm4211_vm10, %vm6967_vm6  ;;  %v6970_v8 = vmov %v6966_v39  ;;  %v1136_v28 = vsel %vm6971_vm4, %v3431_v58, %v3429_v57  ;;  %v1088_v0 = vadd.f32 %v1086_v12, %v1083_v32  ;;  %v1089_v11 = vadd.f32 %v1087_v45, %v1084_v5  ;;  %s4399_s27 = sld [smem:[#allocation7 + $0x47]] }
 0x4a2   : > { %v1116_v18 = vmul.f32 %v6970_v8, %v1107_v23  ;;  %v6972_v31 = vstv %s3726_s8  ;;  %v1166_v14 = vsel %vm1158_vm5, %v3439_v61, %v3441_v62  ;;  %v1101_v57 = vsel %vm6959_vm3, %v1097_v10, %v1099_v27  ;;  %s4362_s8 = sld [smem:[#allocation7 + $0x44]]  ;;  %vm6983_vm3 = vmmov %vm6971_vm4 }
 0x4a3   : > { %v1144_v46 = vmul.f32 %v6972_v31, %v1137_v30  ;;  %v1102_v58 = vsel %vm6973_vm14, %v1099_v27, %v1097_v10  ;;  %vm1245_vm1 = vcmp.lt.s32.totalorder %v3118_v47, 19  ;;  %v1092_v12 = vsel %vm4283_vm7, %v1088_v0, 0.0 }
 0x4a4   : > { %v1093_v45 = vsel %vm4297_vm12, %v1089_v11, 0.0  ;;  %vm6974_vm8 = vcmp.ge.s32.totalorder %v3918_v13, 0  ;;  %v1112_v49 = vmul.f32 %v1111_v6, %v1102_v58  ;;  %v1113_v48 = vmul.f32 %v1111_v6, %v1101_v57 }
 0x4a5   : > { %vm4335_vm6 = vmand %vm4193_vm2, %vm6974_vm8  ;;  %v6978_v2 = vmov %v6972_v31  ;;  %v1094_v30 = vadd.f32 %v1092_v12, %v1065_v24  ;;  %v1095_v38 = vadd.f32 %v1093_v45, %v1066_v40  ;;  %vm6979_vm7 = vcmp.ge.s32.totalorder %v3940_v44, 0  ;;  %v1128_v24 = vpop.permute.xlu1 %1127  ;;  %v1126_v40 = vpop.permute.xlu0 %1125 }
 0x4a6   : > { %v1145_v23 = vmul.f32 %v6978_v2, %v1136_v28  ;;  %vm4349_vm12 = vmand %vm4211_vm10, %vm6979_vm7  ;;  %v1140_v15 = vstv %s4254_s12  ;;  %v1165_v55 = vsel %vm1158_vm5, %v3441_v62, %v3439_v61  ;;  %v6982_v56 = vstv %s3732_s14  ;;  %s6984_s12 = smov 94   ;;  %s4407_s14 = sld [smem:[#allocation7 + $0x48]] }
 0x4a7   : > { %v1173_v32 = vmul.f32 %v6982_v56, %v1166_v14  ;;  %v1117_v5 = vadd.f32 %v1115_v16, %v1112_v49  ;;  %v1118_v39 = vadd.f32 %v1116_v18, %v1113_v48  ;;  %v1194_v22 = vsel %vm1187_vm11, %v3449_v7, %v3447_v3  ;;  %1984 = vrot.lane.b32.xlu1 %v3497_v42, %s6984_s12 }
 0x4a8   : > { %v1195_v61 = vsel %vm1187_vm11, %v3447_v3, %v3449_v7  ;;  %v1130_v62 = vsel %vm6971_vm4, %v1126_v40, %v1128_v24  ;;  %v1131_v16 = vsel %vm6983_vm3, %v1128_v24, %v1126_v40  ;;  %1982 = vrot.lane.b32.xlu0 %v3495_v41, %s6984_s12  ;;  %v6985_v7 = vmov %v6982_v56  ;;  %s4445_s12 = sld [smem:[#allocation7 + $0xe]] }
 0x4a9   : > { %v1121_v6 = vsel %vm4335_vm6, %v1117_v5, 0.0  ;;  %v1122_v8 = vsel %vm4349_vm12, %v1118_v39, 0.0  ;;  %v1141_v18 = vmul.f32 %v1140_v15, %v1131_v16  ;;  %v1142_v3 = vmul.f32 %v1140_v15, %v1130_v62  ;;  %v1157_v12 = vpop.permute.xlu1 %1156  ;;  %v1155_v45 = vpop.permute.xlu0 %1154 }
 0x4aa   : > { %v1174_v28 = vmul.f32 %v6985_v7, %v1165_v55  ;;  %v1123_v0 = vadd.f32 %v1121_v6, %v1094_v30  ;;  %v1124_v11 = vadd.f32 %v1122_v8, %v1095_v38  ;;  %v1169_v27 = vstv %s4302_s24  ;;  %s4414_s24 = sld [smem:[#allocation7 + $0x4a]] }
 0x4ab   : > { %v6986_v10 = vstv %s3735_s0  ;;  %v1224_v14 = vsel %vm1216_vm0, %v3455_v34, %v3457_v35  ;;  %v1146_v57 = vadd.f32 %v1144_v46, %v1141_v18  ;;  %v1147_v58 = vadd.f32 %v1145_v23, %v1142_v3  ;;  %s6991_s0 = smov 93  }
 0x4ac   : > { %v1202_v31 = vmul.f32 %v6986_v10, %v1195_v61  ;;  %v6987_v17 = vmov %v6986_v10  ;;  %v1223_v48 = vsel %vm1216_vm0, %v3457_v35, %v3455_v34  ;;  %v1159_v2 = vsel %vm1158_vm5, %v1155_v45, %v1157_v12  ;;  %2013 = vrot.lane.b32.xlu1 %v3497_v42, %s6991_s0  ;;  %2011 = vrot.lane.b32.xlu0 %v3495_v41, %s6991_s0  ;;  %s4456_s0 = sld [smem:[#allocation7 + $0x4c]] }
 0x4ad   : > { %v1203_v49 = vmul.f32 %v6987_v17, %v1194_v22  ;;  %v1160_v46 = vsel %vm1158_vm5, %v1157_v12, %v1155_v45  ;;  %vm1274_vm14 = vcmp.lt.s32.totalorder %v3118_v47, 18  ;;  %v1150_v23 = vsel %vm4193_vm2, %v1146_v57, 0.0  ;;  %v1186_v62 = vpop.permute.xlu1 %1185  ;;  %v1184_v16 = vpop.permute.xlu0 %1183 }
 0x4ae   : > { %v1151_v34 = vsel %vm4211_vm10, %v1147_v58, 0.0  ;;  %vm6988_vm8 = vcmp.lt.s32.totalorder %v4034_v60, 16  ;;  %v1170_v30 = vmul.f32 %v1169_v27, %v1160_v46  ;;  %v1171_v38 = vmul.f32 %v1169_v27, %v1159_v2 }
 0x4af   : > { %vm4424_vm6 = vmand %vm4193_vm2, %vm6988_vm8  ;;  %v6992_v53 = vstv %s3745_s15  ;;  %v1152_v55 = vadd.f32 %v1150_v23, %v1123_v0  ;;  %v1153_v56 = vadd.f32 %v1151_v34, %v1124_v11  ;;  %vm6993_vm5 = vcmp.lt.s32.totalorder %v4045_v50, 16  ;;  %s4465_s15 = sld [smem:[#allocation7 + $0x4d]] }
 0x4b0   : > { %v4434_v15 = vmul.f32 %v6992_v53, %v1224_v14  ;;  %vm4440_vm7 = vmand %vm4211_vm10, %vm6993_vm5  ;;  %v1198_v39 = vstv %s4354_s10  ;;  %v6996_v24 = vmov %v6992_v53  ;;  %v1175_v22 = vadd.f32 %v1173_v32, %v1170_v30  ;;  %s7000_s10 = smov 83  }
 0x4b1   : > { %v1232_v40 = vmul.f32 %v6996_v24, %v1223_v48  ;;  %v1176_v61 = vadd.f32 %v1174_v28, %v1171_v38  ;;  %v743_v6 = vadd.s32 4294967295, %v3748_v51  ;;  %v1252_v8 = vsel %vm1245_vm1, %v3465_v4, %v3463_v43  ;;  %2042 = vrot.lane.b32.xlu1 %v3497_v42, %s7000_s10  ;;  %2040 = vrot.lane.b32.xlu0 %v3495_v41, %s7000_s10  ;;  %s4498_s10 = sld [smem:[#allocation7 + $0xf]]  ;;  %v1215_v48 = vpop.permute.xlu1 %1214  ;;  %v1213_v2 = vpop.permute.xlu0 %1212 }
 0x4b2   : > { %v1188_v18 = vsel %vm1187_vm11, %v1184_v16, %v1186_v62  ;;  %v1189_v3 = vsel %vm1187_vm11, %v1186_v62, %v1184_v16  ;;  %v744_v32 = vadd.s32 4294967295, %v3750_v1  ;;  %vm753_vm4 = vcmp.lt.s32.totalorder %v3748_v51, 16 }
 0x4b3   : > { %v1179_v7 = vsel %vm4424_vm6, %v1175_v22, 0.0  ;;  %v1180_v28 = vsel %vm4440_vm7, %v1176_v61, 0.0  ;;  %vm6997_vm3 = vcmp.lt.s32.totalorder %v4068_v33, 16  ;;  %v1199_v11 = vmul.f32 %v1198_v39, %v1189_v3 }
 0x4b4   : > { %vm4475_vm11 = vmand %vm4193_vm2, %vm6997_vm3  ;;  %v1200_v27 = vmul.f32 %v1198_v39, %v1188_v18  ;;  %v1253_v10 = vsel %vm1245_vm1, %v3463_v43, %v3465_v4  ;;  %v1181_v14 = vadd.f32 %v1179_v7, %v1152_v55  ;;  %v1182_v57 = vadd.f32 %v1180_v28, %v1153_v56 }
 0x4b5   : > { %vm7001_vm5 = vcmp.lt.s32.totalorder %v4076_v63, 16  ;;  %v1227_v12 = vstv %s4391_s30  ;;  %v1204_v45 = vadd.f32 %v1202_v31, %v1199_v11  ;;  %vm745_vm3 = vcmp.ge.s32.totalorder %v743_v6, 0  ;;  %s4516_s30 = sld [smem:[#allocation7 + $0x50]]  ;;  %2071 = vrot.lane.b32.xlu1 %v3497_v42, %s7008_s28  ;;  %2069 = vrot.lane.b32.xlu0 %v3495_v41, %s7008_s28  ;;  %v1244_v22 = vpop.permute.xlu1 %1243  ;;  %v1242_v62 = vpop.permute.xlu0 %1241 }
 0x4b6   : > { %vm4493_vm7 = vmand %vm4211_vm10, %vm7001_vm5  ;;  %v1205_v17 = vadd.f32 %v1203_v49, %v1200_v27  ;;  %vm747_vm8 = vcmp.lt.s32.totalorder %v743_v6, 16  ;;  %v1217_v4 = vsel %vm1216_vm0, %v1213_v2, %v1215_v48  ;;  %v1218_v31 = vsel %vm1216_vm0, %v1215_v48, %v1213_v2  ;;  %s4565_s28 = sld [smem:[#allocation7 + $0x52]] }
 0x4b7   : > { %vm4508_vm5 = vmand %vm4193_vm2, %vm6738_vm15  ;;  %vm746_vm6 = vcmp.ge.s32.totalorder %v744_v32, 0  ;;  %vm748_vm12 = vcmp.lt.s32.totalorder %v744_v32, 16  ;;  %v1208_v20 = vsel %vm4475_vm11, %v1204_v45, 0.0  ;;  %v1228_v23 = vmul.f32 %v1227_v12, %v1218_v31 }
 0x4b8   : > { %v1209_v49 = vsel %vm4493_vm7, %v1205_v17, 0.0  ;;  %vm4526_vm2 = vmand %vm4211_vm10, %vm6737_vm13  ;;  %v1229_v34 = vmul.f32 %v1227_v12, %v1217_v4  ;;  %vm1303_vm0 = vcmp.lt.s32.totalorder %v3118_v47, 17  ;;  %v1210_v35 = vadd.f32 %v1208_v20, %v1181_v14  ;;  %v7024_v17 = vld [vmem:[#allocation41_spill] sm:$0xff] }
 0x4b9   : > { %v1211_v30 = vadd.f32 %v1209_v49, %v1182_v57  ;;  %vm4537_vm11 = vmand %vm745_vm3, %vm747_vm8  ;;  %v1256_v38 = vstv %s4445_s12  ;;  %v7011_v53 = vstv %s3858_s13  ;;  %v1233_v39 = vadd.f32 %v4434_v15, %v1228_v23  ;;  %s4571_s13 = sld [smem:[#allocation7 + $0x53]]  ;;  %s7017_s12 = smov 81   ;;  %v1273_v58 = vpop.permute.xlu1 %1272  ;;  %v1271_v12 = vpop.permute.xlu0 %1270 }
 0x4ba   : > { %v1260_v55 = vmul.f32 %v7011_v53, %v1253_v10  ;;  %v7012_v56 = vmov %v7011_v53  ;;  %v1234_v24 = vadd.f32 %v1232_v40, %v1229_v34  ;;  %vm4553_vm10 = vmand %vm746_vm6, %vm748_vm12  ;;  %v1281_v16 = vsel %vm1274_vm14, %v3473_v52, %v3471_v19  ;;  %2100 = vrot.lane.b32.xlu1 %v3497_v42, %s7017_s12  ;;  %2098 = vrot.lane.b32.xlu0 %v3495_v41, %s7017_s12  ;;  %s4655_s12 = sld [smem:[#allocation7 + $0x58]] }
 0x4bb   : > { %v1261_v5 = vmul.f32 %v7012_v56, %v1252_v8  ;;  %v1282_v15 = vsel %vm1274_vm14, %v3471_v19, %v3473_v52  ;;  %v1246_v40 = vsel %vm1245_vm1, %v1242_v62, %v1244_v22  ;;  %v1247_v6 = vsel %vm1245_vm1, %v1244_v22, %v1242_v62  ;;  %vm4581_vm12 = vmand %vm4537_vm11, %vm6736_vm9 }
 0x4bc   : > { %v1237_v8 = vsel %vm4508_vm5, %v1233_v39, 0.0  ;;  %v1238_v18 = vsel %vm4526_vm2, %v1234_v24, 0.0  ;;  %v1257_v52 = vmul.f32 %v1256_v38, %v1247_v6  ;;  %v1258_v3 = vmul.f32 %v1256_v38, %v1246_v40 }
 0x4bd   : > { %v1317_v32 = vstv %s4310_s9  ;;  %v1239_v7 = vadd.f32 %v1237_v8, %v1210_v35  ;;  %v1240_v28 = vadd.f32 %v1238_v18, %v1211_v30  ;;  %vm7018_vm1 = vcmp.ge.s32.totalorder %v3865_v25, 0  ;;  %s4637_s9 = sld [smem:[#allocation7 + $0x57]]  ;;  %v1300_v56 = vpop.permute.xlu0 %1299  ;;  %v7051_v18 = vld [vmem:[#allocation46_spill] sm:$0xff] }
 0x4be   : > { %vm4596_vm8 = vmand %vm4553_vm10, %vm7018_vm1  ;;  %v1285_v11 = vstv %s4498_s10  ;;  %v1289_v27 = vmul.f32 %v1288_v36, %v1282_v15  ;;  %v1290_v10 = vmul.f32 %v1288_v36, %v1281_v16  ;;  %v1262_v14 = vadd.f32 %v1260_v55, %v1257_v52  ;;  %s7032_s10 = smov 80   ;;  %v1302_v55 = vpop.permute.xlu1 %1301 }
 0x4bf   : > { %v1263_v57 = vadd.f32 %v1261_v5, %v1258_v3  ;;  %vm7021_vm6 = vcmp.ge.s32.totalorder %v3748_v51, 0  ;;  %v1310_v48 = vsel %vm1303_vm0, %v7024_v17, %v3479_v59  ;;  %v1311_v36 = vsel %vm1303_vm0, %v3479_v59, %v7024_v17  ;;  %2129 = vrot.lane.b32.xlu1 %v3497_v42, %s7032_s10  ;;  %2127 = vrot.lane.b32.xlu0 %v3495_v41, %s7032_s10  ;;  %s4674_s10 = sld [smem:[#allocation7 + $0x5a]] }
 0x4c0   : > { %vm4611_vm7 = vmand %vm7021_vm6, %vm753_vm4  ;;  %v1275_v2 = vsel %vm1274_vm14, %v1271_v12, %v1273_v58  ;;  %v1276_v43 = vsel %vm1274_vm14, %v1273_v58, %v1271_v12  ;;  %vm7025_vm4 = vcmp.lt.s32.totalorder %v3750_v1, 16  ;;  %vm7026_vm3 = vcmp.ge.s32.totalorder %v3750_v1, 0 }
 0x4c1   : > { %vm4633_vm5 = vmand %vm7026_vm3, %vm7025_vm4  ;;  %v1266_v59 = vsel %vm4581_vm12, %v1262_v14, 0.0  ;;  %v1267_v31 = vsel %vm4596_vm8, %v1263_v57, 0.0  ;;  %vm7029_vm2 = vcmp.ge.s32.totalorder %v3869_v37, 0  ;;  %v1286_v49 = vmul.f32 %v1285_v11, %v1276_v43  ;;  %v4716_v14 = vpop.permute.xlu0 %1328 }
 0x4c2   : > { %vm4647_vm14 = vmand %vm4537_vm11, %vm7029_vm2  ;;  %v1287_v46 = vmul.f32 %v1285_v11, %v1275_v2  ;;  %v1268_v23 = vadd.f32 %v1266_v59, %v1239_v7  ;;  %v1269_v34 = vadd.f32 %v1267_v31, %v1240_v28  ;;  %vm7033_vm12 = vcmp.ge.s32.totalorder %v3880_v21, 0 }
 0x4c3   : > { %vm4661_vm1 = vmand %vm4553_vm10, %vm7033_vm12  ;;  %v1314_v30 = vstv %s4542_s22  ;;  %v1291_v38 = vadd.f32 %v1289_v27, %v1286_v49  ;;  %v1318_v62 = vmul.f32 %v1317_v32, %v1311_v36  ;;  %v1319_v16 = vmul.f32 %v1317_v32, %v1310_v48  ;;  %s4680_s22 = sld [smem:[#allocation7 + $0x5b]]  ;;  %2158 = vrot.lane.b32.xlu1 %v3497_v42, %s7041_s20  ;;  %2156 = vrot.lane.b32.xlu0 %v3495_v41, %s7041_s20 }
 0x4c4   : > { %v1292_v53 = vadd.f32 %v1290_v10, %v1287_v46  ;;  %v1304_v15 = vsel %vm1303_vm0, %v1300_v56, %v1302_v55  ;;  %v1305_v40 = vsel %vm1303_vm0, %v1302_v55, %v1300_v56  ;;  %vm7038_vm8 = vcmp.ge.s32.totalorder %v3918_v13, 0  ;;  %s4712_s20 = sld [smem:[#allocation7 + $0x5d]]  ;;  %v4714_v10 = vpop.permute.xlu1 %1330  ;;  %v7064_v55 = vld [vmem:[#allocation58_spill] sm:$0xff] }
 0x4c5   : > { %v1295_v6 = vsel %vm4647_vm14, %v1291_v38, 0.0  ;;  %vm4690_vm6 = vmand %vm4537_vm11, %vm7038_vm8  ;;  %v1315_v19 = vmul.f32 %v1314_v30, %v1305_v40  ;;  %v1316_v52 = vmul.f32 %v1314_v30, %v1304_v15  ;;  %vm6739_vm0 = vcmp.lt.s32.totalorder %v3118_v47, 16  ;;  %v7057_v15 = vld [vmem:[#allocation50_spill] sm:$0xff]  ;;  %v7069_v30 = vld [vmem:[#allocation61_spill] sm:$0xff] }
 0x4c6   : > { %v1296_v8 = vsel %vm4661_vm1, %v1292_v53, 0.0  ;;  %v1346_v3 = vstv %s4318_s26  ;;  %v1297_v32 = vadd.f32 %v1295_v6, %v1268_v23  ;;  %vm7042_vm4 = vcmp.ge.s32.totalorder %v3940_v44, 0  ;;  %v7065_v53 = vld [vmem:[#allocation59_spill] sm:$0xff]  ;;  %s4960_s26 = sld [smem:[#allocation7 + $0x11]]  ;;  %v7138_v13 = vld [vmem:[#allocation82_spill] sm:$0xff] }
 0x4c7   : > { %v1298_v7 = vadd.f32 %v1296_v8, %v1269_v34  ;;  %vm4706_vm3 = vmand %vm4553_vm10, %vm7042_vm4  ;;  %vm6740_vm2 = vcmp.lt.s32.totalorder %v3118_v47, 15  ;;  %v1375_v0 = vstv %s4325_s17  ;;  %v1320_v11 = vadd.f32 %v1318_v62, %v1315_v19  ;;  %2187 = vrot.lane.b32.xlu1 %v3497_v42, %s7045_s11  ;;  %2185 = vrot.lane.b32.xlu0 %v3495_v41, %s7045_s11  ;;  %v4752_v34 = vpop.permute.xlu0 %1357  ;;  %s2842_s11 = smov 77   ;;  %v7050_v19 = vld [vmem:[#allocation47_spill] sm:$0xff]  ;;  %v7055_v8 = vld [vmem:[#allocation48_spill] sm:$0xff]  ;;  %s4978_s17 = sld [smem:[#allocation7 + $0x12]] }
 0x4c8   : > { %v1321_v27 = vadd.f32 %v1319_v16, %v1316_v52  ;;  %vm6741_vm14 = vcmp.lt.s32.totalorder %v3118_v47, 14  ;;  %v1404_v57 = vstv %s4362_s8  ;;  %vm6742_vm12 = vcmp.lt.s32.totalorder %v3118_v47, 13  ;;  %v4750_v23 = vpop.permute.xlu1 %1359  ;;  %v7058_v62 = vld [vmem:[#allocation52_spill] sm:$0xff]  ;;  %s5035_s8 = sld [smem:[#allocation7 + $0x14]] }
 0x4c9   : > { %v1433_v58 = vstv %s4372_s19  ;;  %vm6750_vm1 = vcmp.lt.s32.totalorder %v3118_v47, 3  ;;  %v1462_v12 = vstv %s4378_s29  ;;  %v1324_v17 = vsel %vm4690_vm6, %v1320_v11, 0.0  ;;  %v7052_v11 = vld [vmem:[#allocation40_spill] sm:$0xff]  ;;  %s5096_s19 = sld [smem:[#allocation7 + $0x17]] }
 0x4ca   : > { %v1325_v48 = vsel %vm4706_vm3, %v1321_v27, 0.0  ;;  %vm6743_vm8 = vcmp.lt.s32.totalorder %v3118_v47, 2  ;;  %v1491_v36 = vstv %s4399_s27  ;;  %v1520_v2 = vstv %s4407_s14  ;;  %v7053_v27 = vld [vmem:[#allocation39_spill] sm:$0xff]  ;;  %s5236_s29 = sld [smem:[#allocation7 + $0x1c]] }
 0x4cb   : > { %v4741_v43 = vadd.f32 %v1324_v17, %v1297_v32  ;;  %v4743_v59 = vadd.f32 %v1325_v48, %v1298_v7  ;;  %vm6744_vm6 = vcmp.lt.s32.totalorder %v3118_v47, 1  ;;  %v1565_v31 = vstv %s4414_s24  ;;  %2216 = vrot.lane.b32.xlu1 %v3497_v42, %s2842_s11  ;;  %2214 = vrot.lane.b32.xlu0 %v3495_v41, %s2842_s11  ;;  %v4776_v32 = vpop.permute.xlu0 %1386  ;;  %v7046_v42 = vld [vmem:[#allocation42_spill] sm:$0xff]  ;;  %v7047_v7 = vld [vmem:[#allocation43_spill] sm:$0xff]  ;;  %v7048_v17 = vld [vmem:[#allocation44_spill] sm:$0xff]  ;;  %s5520_s27 = sld [smem:[#allocation7 + $0x1f]] }
 0x4cc   : > { %v1594_v20 = vstv %s4449_s1  ;;  %vm6745_vm4 = vcmp.lt.s32.totalorder %v3118_v47, 127  ;;  %vm6747_vm3 = vcmp.lt.s32.totalorder %v3118_v47, 126  ;;  %vm6746_vm9 = vcmp.lt.s32.totalorder %v3118_v47, 125  ;;  %v4774_v52 = vpop.permute.xlu1 %1388  ;;  %v7049_v48 = vld [vmem:[#allocation45_spill] sm:$0xff]  ;;  %s5001_s1 = sld [smem:[#allocation7 + $0x13]] }
 0x4cd   : > { %vm6748_vm13 = vcmp.lt.s32.totalorder %v3118_v47, 115  ;;  %v1339_v41 = vsel %vm6739_vm0, %v7047_v7, %v7046_v42  ;;  %v1340_v28 = vsel %vm6739_vm0, %v7046_v42, %v7047_v7  ;;  %vm6749_vm15 = vcmp.lt.s32.totalorder %v3118_v47, 114  ;;  %s5542_s14 = sld [smem:[#allocation7 + $0x20]] }
 0x4ce   : > { %v1368_v22 = vsel %vm6740_vm2, %v7049_v48, %v7048_v17  ;;  %v1369_v39 = vsel %vm6740_vm2, %v7048_v17, %v7049_v48  ;;  %v1398_v42 = vsel %vm6741_vm14, %v7051_v18, %v7050_v19  ;;  %v1397_v17 = vsel %vm6741_vm14, %v7050_v19, %v7051_v18  ;;  %v7054_v48 = vld [vmem:[#allocation49_spill] sm:$0xff]  ;;  %v7056_v19 = vld [vmem:[#allocation51_spill] sm:$0xff]  ;;  %s5556_s24 = sld [smem:[#allocation7 + $0x21]] }
 0x4cf   : > { %2223 = vrot.lane.b32.xlu1 %v7052_v11, %s2842_s11  ;;  %2221 = vrot.lane.b32.xlu0 %v7053_v27, %s2842_s11  ;;  %v1427_v6 = vsel %vm6742_vm12, %v7055_v8, %v7054_v48  ;;  %vm1725_vm2 = vcmp.lt.s32.totalorder %v3118_v47, 112  ;;  %vm1754_vm0 = vcmp.lt.s32.totalorder %v3118_v47, 111  ;;  %v4819_v27 = vmul.f32 %v1346_v3, %v1340_v28  ;;  %v4836_v28 = vpop.permute.xlu0 %1415  ;;  %s6255_s11 = sld [smem:[#allocation7 + $0x2f]] }
 0x4d0   : > { %v4823_v40 = vmul.f32 %v1346_v3, %v1339_v41  ;;  %v1426_v18 = vsel %vm6742_vm12, %v7054_v48, %v7055_v8  ;;  %v1456_v16 = vsel %vm6750_vm1, %v7057_v15, %v7056_v19  ;;  %vm6753_vm14 = vcmp.lt.s32.totalorder %v3118_v47, 110  ;;  %v4834_v7 = vpop.permute.xlu1 %1417 }
 0x4d1   : > { %v4840_v3 = vmul.f32 %v1375_v0, %v1369_v39  ;;  %v4844_v41 = vmul.f32 %v1375_v0, %v1368_v22  ;;  %v4848_v8 = vmul.f32 %v1404_v57, %v1398_v42  ;;  %v1455_v48 = vsel %vm6750_vm1, %v7056_v19, %v7057_v15  ;;  %v7059_v22 = vld [vmem:[#allocation53_spill] sm:$0xff] }
 0x4d2   : > { %vm1812_vm12 = vcmp.lt.s32.totalorder %v3118_v47, 109  ;;  %v4857_v11 = vmul.f32 %v1404_v57, %v1397_v17  ;;  %v4861_v39 = vmul.f32 %v1433_v58, %v1427_v6  ;;  %v1484_v0 = vsel %vm6743_vm8, %v7059_v22, %v7058_v62  ;;  %v7060_v17 = vld [vmem:[#allocation54_spill] sm:$0xff]  ;;  %v7061_v6 = vld [vmem:[#allocation55_spill] sm:$0xff] }
 0x4d3   : > { %v1485_v15 = vsel %vm6743_vm8, %v7058_v62, %v7059_v22  ;;  %v4873_v42 = vmul.f32 %v1433_v58, %v1426_v18  ;;  %v4877_v57 = vmul.f32 %v1462_v12, %v1456_v16  ;;  %v1513_v19 = vsel %vm6744_vm6, %v7061_v6, %v7060_v17  ;;  %v7062_v62 = vld [vmem:[#allocation56_spill] sm:$0xff]  ;;  %v7063_v16 = vld [vmem:[#allocation57_spill] sm:$0xff] }
 0x4d4   : > { %v1514_v56 = vsel %vm6744_vm6, %v7060_v17, %v7061_v6  ;;  %vm6771_vm8 = vcmp.lt.s32.totalorder %v3118_v47, 99  ;;  %v4890_v58 = vmul.f32 %v1462_v12, %v1455_v48  ;;  %v1558_v18 = vsel %vm6745_vm4, %v7063_v16, %v7062_v62  ;;  %v4905_v12 = vpop.permute.xlu1 %1446  ;;  %v4907_v48 = vpop.permute.xlu0 %1444 }
 0x4d5   : > { %v1559_v22 = vsel %vm6745_vm4, %v7062_v62, %v7063_v16  ;;  %v1587_v17 = vsel %vm6747_vm3, %v7065_v53, %v7064_v55  ;;  %vm6770_vm6 = vcmp.lt.s32.totalorder %v3118_v47, 98  ;;  %v4911_v6 = vmul.f32 %v1491_v36, %v1485_v15  ;;  %v7068_v16 = vld [vmem:[#allocation60_spill] sm:$0xff] }
 0x4d6   : > { %v4915_v38 = vmul.f32 %v1491_v36, %v1484_v0  ;;  %v1588_v62 = vsel %vm6747_vm3, %v7064_v55, %v7065_v53  ;;  %v1616_v35 = vsel %vm6746_vm9, %v7069_v30, %v7068_v16  ;;  %vm6769_vm4 = vcmp.lt.s32.totalorder %v3118_v47, 97  ;;  %v7072_v0 = vld [vmem:[#allocation62_spill] sm:$0xff]  ;;  %v7073_v53 = vld [vmem:[#allocation63_spill] sm:$0xff] }
 0x4d7   : > { %7066 = vst [vmem:[#allocation41_spill] sm:$0xff] %v4911_v6  ;;  %v4928_v15 = vmul.f32 %v1520_v2, %v1514_v56  ;;  %v4932_v46 = vmul.f32 %v1520_v2, %v1513_v19  ;;  %v1617_v36 = vsel %vm6746_vm9, %v7068_v16, %v7069_v30  ;;  %v1645_v55 = vsel %vm6748_vm13, %v7073_v53, %v7072_v0  ;;  %v7149_v6 = vld [vmem:[#allocation87_spill] sm:$0xff] }
 0x4d8   : > { %7067 = vst [vmem:[#allocation42_spill] sm:$0xff] %v4915_v38  ;;  %v4944_v49 = vmul.f32 %v1565_v31, %v1558_v18  ;;  %v4948_v56 = vmul.f32 %v1565_v31, %v1559_v22  ;;  %v4952_v2 = vmul.f32 %v1594_v20, %v1587_v17  ;;  %v1646_v30 = vsel %vm6748_vm13, %v7072_v0, %v7073_v53  ;;  %v7080_v22 = vld [vmem:[#allocation64_spill] sm:$0xff]  ;;  %v7081_v17 = vld [vmem:[#allocation65_spill] sm:$0xff]  ;;  %v4980_v53 = vpop.permute.xlu1 %1475  ;;  %v7139_v38 = vld [vmem:[#allocation83_spill] sm:$0xff] }
 0x4d9   : > { %7070 = vst [vmem:[#allocation43_spill] sm:$0xff] %v4928_v15  ;;  %7071 = vst [vmem:[#allocation44_spill] sm:$0xff] %v4932_v46  ;;  %vm6758_vm9 = vcmp.lt.s32.totalorder %v3118_v47, 96  ;;  %vm6760_vm3 = vcmp.lt.s32.totalorder %v3118_v47, 95  ;;  %v4964_v19 = vmul.f32 %v1594_v20, %v1588_v62  ;;  %v7078_v31 = vstv %s4456_s0  ;;  %v4982_v20 = vpop.permute.xlu0 %1473  ;;  %s5570_s0 = sld [smem:[#allocation7 + $0x22]] }
 0x4da   : > { %7074 = vst [vmem:[#allocation45_spill] sm:$0xff] %v4944_v49  ;;  %7075 = vst [vmem:[#allocation47_spill] sm:$0xff] %v4948_v56  ;;  %v4968_v18 = vmul.f32 %v7078_v31, %v1616_v35  ;;  %v1674_v16 = vsel %vm6749_vm15, %v7081_v17, %v7080_v22  ;;  %v1675_v0 = vsel %vm6749_vm15, %v7080_v22, %v7081_v17  ;;  %v7082_v35 = vmov %v7078_v31  ;;  %v7100_v49 = vld [vmem:[#allocation72_spill] sm:$0xff] }
 0x4db   : > { %7076 = vst [vmem:[#allocation46_spill] sm:$0xff] %v4952_v2  ;;  %7077 = vst [vmem:[#allocation40_spill] sm:$0xff] %v4964_v19  ;;  %v4986_v62 = vmul.f32 %v7082_v35, %v1617_v36  ;;  %v7084_v31 = vstv %s4465_s15  ;;  %v7086_v19 = vld [vmem:[#allocation66_spill] sm:$0xff]  ;;  %v7087_v2 = vld [vmem:[#allocation67_spill] sm:$0xff]  ;;  %vm7088_vm13 = vcmp.lt.s32.totalorder %v3118_v47, 113  ;;  %vm6759_vm1 = vcmp.lt.s32.totalorder %v3118_v47, 94 }
 0x4dc   : > { %7079 = vst [vmem:[#allocation39_spill] sm:$0xff] %v4968_v18  ;;  %v4990_v18 = vmul.f32 %v7084_v31, %v1645_v55  ;;  %v1703_v24 = vsel %vm7088_vm13, %v7087_v2, %v7086_v19  ;;  %vm7089_vm15 = vmmov %vm7088_vm13  ;;  %v7090_v36 = vmov %v7084_v31  ;;  %v7092_v35 = vld [vmem:[#allocation68_spill] sm:$0xff]  ;;  %v7093_v55 = vld [vmem:[#allocation69_spill] sm:$0xff]  ;;  %v7096_v5 = vstv %s4500_s2  ;;  %s5054_s2 = sld [smem:[#allocation7 + $0x15]] }
 0x4dd   : > { %7083 = vst [vmem:[#allocation49_spill] sm:$0xff] %v4986_v62  ;;  %v1704_v22 = vsel %vm7089_vm15, %v7086_v19, %v7087_v2  ;;  %v5005_v17 = vmul.f32 %v7090_v36, %v1646_v30  ;;  %v1732_v31 = vsel %vm1725_vm2, %v7093_v55, %v7092_v35  ;;  %v7094_v62 = vld [vmem:[#allocation70_spill] sm:$0xff]  ;;  %v7095_v2 = vld [vmem:[#allocation71_spill] sm:$0xff]  ;;  %v5021_v30 = vmul.f32 %v7096_v5, %v1674_v16  ;;  %s5592_s15 = sld [smem:[#allocation7 + $0x23]] }
 0x4de   : > { %7085 = vst [vmem:[#allocation48_spill] sm:$0xff] %v4990_v18  ;;  %v1733_v18 = vsel %vm1725_vm2, %v7092_v35, %v7093_v55  ;;  %v1761_v19 = vsel %vm1754_vm0, %v7095_v2, %v7094_v62  ;;  %v7098_v36 = vmov %v7096_v5  ;;  %v1762_v56 = vsel %vm1754_vm0, %v7094_v62, %v7095_v2  ;;  %v7101_v35 = vld [vmem:[#allocation73_spill] sm:$0xff]  ;;  %v7106_v62 = vld [vmem:[#allocation74_spill] sm:$0xff]  ;;  %v7107_v2 = vld [vmem:[#allocation75_spill] sm:$0xff] }
 0x4df   : > { %7091 = vst [vmem:[#allocation51_spill] sm:$0xff] %v5005_v17  ;;  %7097 = vst [vmem:[#allocation50_spill] sm:$0xff] %v5021_v30  ;;  %v5025_v17 = vmul.f32 %v7098_v36, %v1675_v0  ;;  %v1790_v55 = vsel %vm6753_vm14, %v7101_v35, %v7100_v49  ;;  %v7102_v44 = vstv %s4502_s3  ;;  %v1791_v0 = vsel %vm6753_vm14, %v7100_v49, %v7101_v35  ;;  %s5078_s3 = sld [smem:[#allocation7 + $0x16]] }
 0x4e0   : > { %v5039_v46 = vmul.f32 %v7102_v44, %v1703_v24  ;;  %v7104_v5 = vmov %v7102_v44  ;;  %v1819_v36 = vsel %vm1812_vm12, %v7107_v2, %v7106_v62  ;;  %vm6768_vm15 = vcmp.lt.s32.totalorder %v3118_v47, 93  ;;  %v5056_v44 = vpop.permute.xlu1 %1504  ;;  %v5058_v24 = vpop.permute.xlu0 %1502 }
 0x4e1   : > { %7099 = vst [vmem:[#allocation52_spill] sm:$0xff] %v5025_v17  ;;  %v5043_v16 = vmul.f32 %v7104_v5, %v1704_v22  ;;  %v7108_v22 = vstv %s4516_s30  ;;  %v1820_v17 = vsel %vm1812_vm12, %v7106_v62, %v7107_v2  ;;  %vm6767_vm13 = vcmp.lt.s32.totalorder %v3118_v47, 83  ;;  %s5606_s30 = sld [smem:[#allocation7 + $0x24]] }
 0x4e2   : > { %7103 = vst [vmem:[#allocation53_spill] sm:$0xff] %v5039_v46  ;;  %v5062_v5 = vmul.f32 %v7108_v22, %v1732_v31  ;;  %v7110_v49 = vmov %v7108_v22  ;;  %vm6765_vm14 = vcmp.lt.s32.totalorder %v3118_v47, 82  ;;  %v7136_v15 = vstv %s4605_s23  ;;  %s5192_s23 = sld [smem:[#allocation7 + $0x1b]] }
 0x4e3   : > { %7105 = vst [vmem:[#allocation54_spill] sm:$0xff] %v5043_v16  ;;  %v5066_v35 = vmul.f32 %v7110_v49, %v1733_v18  ;;  %v7112_v16 = vstv %s4548_s21  ;;  %v7116_v18 = vstv %s4565_s28  ;;  %s5126_s21 = sld [smem:[#allocation7 + $0x19]] }
 0x4e4   : > { %7109 = vst [vmem:[#allocation55_spill] sm:$0xff] %v5062_v5  ;;  %v5070_v46 = vmul.f32 %v7112_v16, %v1761_v19  ;;  %v7114_v31 = vmov %v7112_v16  ;;  %v5086_v49 = vmul.f32 %v7116_v18, %v1790_v55  ;;  %v7118_v19 = vld [vmem:[#allocation76_spill] sm:$0xff]  ;;  %v7119_v16 = vld [vmem:[#allocation77_spill] sm:$0xff]  ;;  %v7122_v55 = vstv %s4571_s13  ;;  %s5621_s28 = sld [smem:[#allocation7 + $0x25]] }
 0x4e5   : > { %7111 = vst [vmem:[#allocation56_spill] sm:$0xff] %v5066_v35  ;;  %v5082_v22 = vmul.f32 %v7114_v31, %v1762_v56  ;;  %v1848_v62 = vsel %vm6771_vm8, %v7119_v16, %v7118_v19  ;;  %v1849_v2 = vsel %vm6771_vm8, %v7118_v19, %v7119_v16  ;;  %v7120_v56 = vmov %v7116_v18  ;;  %v7129_v16 = vld [vmem:[#allocation81_spill] sm:$0xff]  ;;  %s5707_s13 = sld [smem:[#allocation7 + $0x28]] }
 0x4e6   : > { %7113 = vst [vmem:[#allocation57_spill] sm:$0xff] %v5070_v46  ;;  %7117 = vst [vmem:[#allocation59_spill] sm:$0xff] %v5086_v49  ;;  %v5100_v31 = vmul.f32 %v7120_v56, %v1791_v0  ;;  %v5104_v18 = vmul.f32 %v7122_v55, %v1819_v36  ;;  %v7124_v49 = vld [vmem:[#allocation78_spill] sm:$0xff]  ;;  %v1343_v35 = vstv %s4960_s26  ;;  %v7126_v5 = vmov %v7122_v55  ;;  %v7128_v0 = vld [vmem:[#allocation80_spill] sm:$0xff]  ;;  %v5124_v55 = vpop.permute.xlu1 %1549  ;;  %s6345_s26 = sld [smem:[#allocation7 + $0x30]] }
 0x4e7   : > { %7115 = vst [vmem:[#allocation58_spill] sm:$0xff] %v5082_v22  ;;  %v7125_v22 = vld [vmem:[#allocation79_spill] sm:$0xff]  ;;  %v5113_v30 = vmul.f32 %v7126_v5, %v1820_v17  ;;  %v1906_v36 = vsel %vm6769_vm4, %v7129_v16, %v7128_v0  ;;  %v1372_v56 = vstv %s4978_s17  ;;  %7130 = vst [vmem:[#allocation63_spill] sm:$0xff] %v5124_v55  ;;  %v5128_v17 = vpop.permute.xlu0 %1547  ;;  %v7132_v5 = vstv %s4590_s25  ;;  %s5159_s25 = sld [smem:[#allocation7 + $0x1a]] }
 0x4e8   : > { %7121 = vst [vmem:[#allocation60_spill] sm:$0xff] %v5100_v31  ;;  %7123 = vst [vmem:[#allocation61_spill] sm:$0xff] %v5104_v18  ;;  %v1877_v46 = vsel %vm6770_vm6, %v7125_v22, %v7124_v49  ;;  %v1878_v19 = vsel %vm6770_vm6, %v7124_v49, %v7125_v22  ;;  %v7134_v18 = vmov %v7132_v5  ;;  %v1907_v49 = vsel %vm6769_vm4, %v7128_v0, %v7129_v16  ;;  %s6361_s17 = sld [smem:[#allocation7 + $0x61]] }
 0x4e9   : > { %7127 = vst [vmem:[#allocation62_spill] sm:$0xff] %v5113_v30  ;;  %7131 = vst [vmem:[#allocation64_spill] sm:$0xff] %v5128_v17  ;;  %v5132_v30 = vmul.f32 %v7132_v5, %v1848_v62  ;;  %v5136_v22 = vmul.f32 %v7134_v18, %v1849_v2  ;;  %v1401_v31 = vstv %s5001_s1  ;;  %v5145_v55 = vmul.f32 %v7136_v15, %v1877_v46  ;;  %v7140_v2 = vld [vmem:[#allocation84_spill] sm:$0xff]  ;;  %v7141_v18 = vld [vmem:[#allocation85_spill] sm:$0xff]  ;;  %s7530_s1 = sld [smem:[#allocation16_spill]] }
 0x4ea   : > { %v1935_v17 = vsel %vm6758_vm9, %v7139_v38, %v7138_v13  ;;  %v1936_v62 = vsel %vm6758_vm9, %v7138_v13, %v7139_v38  ;;  %v1964_v0 = vsel %vm6760_vm3, %v7141_v18, %v7140_v2  ;;  %v7142_v46 = vmov %v7136_v15 }
 0x4eb   : > { %7133 = vst [vmem:[#allocation65_spill] sm:$0xff] %v5132_v30  ;;  %7135 = vst [vmem:[#allocation66_spill] sm:$0xff] %v5136_v22  ;;  %v5163_v15 = vmul.f32 %v7142_v46, %v1878_v19  ;;  %v7144_v16 = vstv %s4623_s16  ;;  %v1965_v13 = vsel %vm6760_vm3, %v7140_v2, %v7141_v18  ;;  %v7148_v30 = vld [vmem:[#allocation86_spill] sm:$0xff]  ;;  %vm6766_vm9 = vcmp.lt.s32.totalorder %v3118_v47, 81  ;;  %v5188_v18 = vpop.permute.xlu1 %1578  ;;  %v5190_v46 = vpop.permute.xlu0 %1576  ;;  %s5763_s16 = sld [smem:[#allocation7 + $0x29]] }
 0x4ec   : > { %7137 = vst [vmem:[#allocation67_spill] sm:$0xff] %v5145_v55  ;;  %v5167_v5 = vmul.f32 %v7144_v16, %v1906_v36  ;;  %v7146_v55 = vmov %v7144_v16  ;;  %v1993_v19 = vsel %vm6759_vm1, %v7149_v6, %v7148_v30  ;;  %v1994_v36 = vsel %vm6759_vm1, %v7148_v30, %v7149_v6  ;;  %7150 = vst [vmem:[#allocation71_spill] sm:$0xff] %v5188_v18 }
 0x4ed   : > { %7143 = vst [vmem:[#allocation68_spill] sm:$0xff] %v5163_v15  ;;  %v5176_v22 = vmul.f32 %v7146_v55, %v1907_v49  ;;  %7151 = vst [vmem:[#allocation72_spill] sm:$0xff] %v5190_v46  ;;  %v7152_v55 = vstv %s4637_s9  ;;  %vm7160_vm1 = vcmp.lt.s32.totalorder %v3118_v47, 16  ;;  %vm7204_vm8 = vcmp.lt.s32.totalorder %v4076_v63, 16  ;;  %s5779_s9 = sld [smem:[#allocation7 + $0x2a]] }
 0x4ee   : > { %7145 = vst [vmem:[#allocation69_spill] sm:$0xff] %v5167_v5  ;;  %v5196_v49 = vmul.f32 %v7152_v55, %v1935_v17  ;;  %v7154_v16 = vmov %v7152_v55  ;;  %v1333_v2 = vsel %vm7160_vm1, %v4716_v14, %v4714_v10  ;;  %vm7161_vm3 = vmmov %vm7160_vm1  ;;  %v7171_v55 = vld [vmem:[#allocation93_spill] sm:$0xff]  ;;  %vm7174_vm1 = vcmp.lt.s32.totalorder %v3118_v47, 15 }
 0x4ef   : > { %7147 = vst [vmem:[#allocation70_spill] sm:$0xff] %v5176_v22  ;;  %v5200_v38 = vmul.f32 %v7154_v16, %v1936_v62  ;;  %v7156_v22 = vstv %s4655_s12  ;;  %v1334_v17 = vsel %vm7161_vm3, %v4714_v10, %v4716_v14  ;;  %v7162_v62 = vstv %s4666_s7  ;;  %v7168_v14 = vld [vmem:[#allocation90_spill] sm:$0xff]  ;;  %vm7175_vm3 = vmmov %vm7174_vm1  ;;  %s5351_s7 = sld [smem:[#allocation7 + $0x1d]] }
 0x4f0   : > { %7153 = vst [vmem:[#allocation73_spill] sm:$0xff] %v5196_v49  ;;  %v5204_v5 = vmul.f32 %v7156_v22, %v1964_v0  ;;  %v7158_v30 = vmov %v7156_v22  ;;  %v5222_v16 = vmul.f32 %v7162_v62, %v1993_v19  ;;  %v7164_v22 = vmov %v7162_v62  ;;  %v7169_v19 = vld [vmem:[#allocation91_spill] sm:$0xff]  ;;  %s5819_s12 = sld [smem:[#allocation7 + $0x2b]] }
 0x4f1   : > { %7155 = vst [vmem:[#allocation74_spill] sm:$0xff] %v5200_v38  ;;  %v5209_v15 = vmul.f32 %v7158_v30, %v1965_v13  ;;  %v5226_v0 = vmul.f32 %v7164_v22, %v1994_v36  ;;  %v7166_v13 = vld [vmem:[#allocation88_spill] sm:$0xff]  ;;  %v7167_v30 = vld [vmem:[#allocation89_spill] sm:$0xff]  ;;  %v2051_v36 = vsel %vm6767_vm13, %v7169_v19, %v7168_v14  ;;  %v2052_v62 = vsel %vm6767_vm13, %v7168_v14, %v7169_v19 }
 0x4f2   : > { %7157 = vst [vmem:[#allocation75_spill] sm:$0xff] %v5204_v5  ;;  %7163 = vst [vmem:[#allocation77_spill] sm:$0xff] %v5222_v16  ;;  %v2022_v6 = vsel %vm6768_vm15, %v7167_v30, %v7166_v13  ;;  %v2023_v10 = vsel %vm6768_vm15, %v7166_v13, %v7167_v30  ;;  %v7170_v22 = vld [vmem:[#allocation92_spill] sm:$0xff]  ;;  %v5251_v30 = vpop.permute.xlu1 %1607  ;;  %v5253_v16 = vpop.permute.xlu0 %1605  ;;  %v1345_v5 = vmul.f32 %v1343_v35, %v1333_v2  ;;  %v7176_v19 = vstv %s4674_s10  ;;  %s5831_s10 = sld [smem:[#allocation7 + $0x2c]] }
 0x4f3   : > { %7159 = vst [vmem:[#allocation76_spill] sm:$0xff] %v5209_v15  ;;  %7165 = vst [vmem:[#allocation78_spill] sm:$0xff] %v5226_v0  ;;  %v2080_v0 = vsel %vm6765_vm14, %v7171_v55, %v7170_v22  ;;  %v1344_v15 = vmul.f32 %v1343_v35, %v1334_v17  ;;  %v1362_v38 = vsel %vm7174_vm1, %v4752_v34, %v4750_v23  ;;  %v7177_v49 = vmov %v7176_v19 }
 0x4f4   : > { %7172 = vst [vmem:[#allocation79_spill] sm:$0xff] %v5251_v30  ;;  %7173 = vst [vmem:[#allocation80_spill] sm:$0xff] %v5253_v16  ;;  %v1363_v14 = vsel %vm7175_vm3, %v4750_v23, %v4752_v34  ;;  %v5265_v13 = vmul.f32 %v7176_v19, %v2022_v6  ;;  %v5269_v30 = vmul.f32 %v7177_v49, %v2023_v10  ;;  %v7178_v17 = vstv %s4680_s22  ;;  %s6115_s22 = sld [smem:[#allocation7 + $0x2d]] }
 0x4f5   : > { %v2081_v35 = vsel %vm6765_vm14, %v7170_v22, %v7171_v55  ;;  %v5278_v16 = vmul.f32 %v7178_v17, %v2051_v36  ;;  %v7179_v46 = vmov %v7178_v17  ;;  %vm7180_vm1 = vcmp.lt.s32.totalorder %v3118_v47, 14 }
 0x4f6   : > { %v5282_v18 = vmul.f32 %v7179_v46, %v2052_v62  ;;  %v1391_v23 = vsel %vm7180_vm1, %v4776_v32, %v4774_v52  ;;  %vm7181_vm3 = vmmov %vm7180_vm1  ;;  %v7182_v49 = vstv %s4700_s18  ;;  %v1373_v55 = vmul.f32 %v1372_v56, %v1363_v14  ;;  %v5297_v22 = vpop.permute.xlu1 %1636  ;;  %v5299_v46 = vpop.permute.xlu0 %1634  ;;  %s5508_s18 = sld [smem:[#allocation7 + $0x1e]] }
 0x4f7   : > { %v1392_v34 = vsel %vm7181_vm3, %v4774_v52, %v4776_v32  ;;  %v5294_v6 = vmul.f32 %v7182_v49, %v2080_v0  ;;  %v1374_v10 = vmul.f32 %v1372_v56, %v1362_v38  ;;  %v7183_v62 = vmov %v7182_v49  ;;  %v7188_v49 = vld [vmem:[#allocation95_spill] sm:$0xff] }
 0x4f8   : > { %v5303_v19 = vmul.f32 %v7183_v62, %v2081_v35  ;;  %vm6774_vm1 = vcmp.lt.s32.totalorder %v3118_v47, 80  ;;  %v1349_v17 = vadd.f32 %v4819_v27, %v1344_v15  ;;  %v1350_v52 = vadd.f32 %v4823_v40, %v1345_v5  ;;  %v7187_v35 = vld [vmem:[#allocation94_spill] sm:$0xff] }
 0x4f9   : > { %v5309_v32 = vadd.s32 1, %v3748_v51  ;;  %v1402_v0 = vmul.f32 %v1401_v31, %v1392_v34  ;;  %v1403_v56 = vmul.f32 %v1401_v31, %v1391_v23  ;;  %vm7185_vm3 = vcmp.lt.s32.totalorder %v3118_v47, 13 }
 0x4fa   : > { %7184 = vst [vmem:[#allocation81_spill] sm:$0xff] %v5303_v19  ;;  %v1420_v38 = vsel %vm7185_vm3, %v4836_v28, %v4834_v7  ;;  %vm7186_vm14 = vmmov %vm7185_vm3  ;;  %v2109_v40 = vsel %vm6766_vm9, %v7188_v49, %v7187_v35  ;;  %v2110_v27 = vsel %vm6766_vm9, %v7187_v35, %v7188_v49  ;;  %v5328_v31 = vadd.s32 1, %v3750_v1  ;;  %v5349_v62 = vpop.permute.xlu1 %1665  ;;  %v5353_v35 = vpop.permute.xlu0 %1663 }
 0x4fb   : > { %v1421_v14 = vsel %vm7186_vm14, %v4834_v7, %v4836_v28  ;;  %vm7189_vm3 = vcmp.lt.s32.totalorder %v4034_v60, 16  ;;  %v1378_v28 = vadd.f32 %v4840_v3, %v1373_v55  ;;  %v1379_v5 = vadd.f32 %v4844_v41, %v1374_v10 }
 0x4fc   : > { %vm5335_vm14 = vmand %vm4537_vm11, %vm7189_vm3  ;;  %vm7192_vm9 = vcmp.lt.s32.totalorder %v3118_v47, 3  ;;  %v1353_v3 = vsel %vm4537_vm11, %v1349_v17, 0.0  ;;  %v1354_v41 = vsel %vm4553_vm10, %v1350_v52, 0.0  ;;  %vm6773_vm3 = vcmp.lt.s32.totalorder %v3118_v47, 79 }
 0x4fd   : > { %v1449_v23 = vsel %vm7192_vm9, %v4907_v48, %v4905_v12  ;;  %vm7193_vm13 = vmmov %vm7192_vm9  ;;  %vm7194_vm9 = vcmp.lt.s32.totalorder %v4045_v50, 16  ;;  %vm7199_vm15 = vcmp.lt.s32.totalorder %v4068_v33, 16  ;;  %v1407_v52 = vadd.f32 %v4848_v8, %v1402_v0 }
 0x4fe   : > { %v1450_v34 = vsel %vm7193_vm13, %v4905_v12, %v4907_v48  ;;  %vm5363_vm13 = vmand %vm4553_vm10, %vm7194_vm9  ;;  %v7197_v48 = vstv %s5035_s8  ;;  %v1408_v15 = vadd.f32 %v4857_v11, %v1403_v56  ;;  %vm7202_vm9 = vcmp.lt.s32.totalorder %v3118_v47, 2  ;;  %s7531_s8 = sld [smem:[#allocation21_spill]] }
 0x4ff   : > { %v1431_v55 = vmul.f32 %v7197_v48, %v1421_v14  ;;  %v7198_v10 = vmov %v7197_v48  ;;  %vm5376_vm4 = vmand %vm4537_vm11, %vm7199_vm15  ;;  %v1478_v14 = vsel %vm7202_vm9, %v4982_v20, %v4980_v53  ;;  %v7207_v11 = vstv %s5054_s2  ;;  %s2518_s2 = sshll.u32 %s7530_s1, 11 }
 0x500   : > { %v1432_v49 = vmul.f32 %v7198_v10, %v1420_v38  ;;  %vm7203_vm6 = vmmov %vm7202_vm9  ;;  %v1460_v8 = vmul.f32 %v7207_v11, %v1450_v34  ;;  %v7208_v0 = vmov %v7207_v11  ;;  %vm7209_vm9 = vcmp.lt.s32.totalorder %v3118_v47, 1 }
 0x501   : > { %v1479_v38 = vsel %vm7203_vm6, %v4980_v53, %v4982_v20  ;;  %vm5394_vm15 = vmand %vm4553_vm10, %vm7204_vm8  ;;  %v1461_v56 = vmul.f32 %v7208_v0, %v1449_v23  ;;  %v1507_v10 = vsel %vm7209_vm9, %v5058_v24, %v5056_v44  ;;  %v7211_v20 = vstv %s4712_s20  ;;  %s6125_s20 = sld [smem:[#allocation7 + $0x2e]] }
 0x502   : > { %vm7210_vm6 = vmmov %vm7209_vm9  ;;  %v5412_v36 = vmul.f32 %v7211_v20, %v2109_v40  ;;  %v7213_v2 = vmov %v7211_v20  ;;  %v1382_v23 = vsel %vm5335_vm14, %v1378_v28, 0.0  ;;  %v1383_v34 = vsel %vm5363_vm13, %v1379_v5, 0.0  ;;  %v5432_v40 = vpop.permute.xlu0 %1692 }
 0x503   : > { %v1508_v53 = vsel %vm7210_vm6, %v5056_v44, %v5058_v24  ;;  %v5416_v19 = vmul.f32 %v7213_v2, %v2110_v27  ;;  %vm7215_vm8 = vcmp.lt.s32.totalorder %v4085_v29, 16  ;;  %v5430_v24 = vpop.permute.xlu1 %1694  ;;  %vm7218_vm6 = vcmp.lt.s32.totalorder %v4115_v26, 16 }
 0x504   : > { %7212 = vst [vmem:[#allocation82_spill] sm:$0xff] %v5412_v36  ;;  %vm5426_vm9 = vmand %vm4537_vm11, %vm7215_vm8  ;;  %v1436_v27 = vadd.f32 %v4861_v39, %v1431_v55  ;;  %v1437_v54 = vadd.f32 %v4873_v42, %v1432_v49  ;;  %v7221_v7 = vstv %s5078_s3  ;;  %v1355_v11 = vadd.f32 %v1353_v3, %v4741_v43  ;;  %s7537_s3 = sshll.u32 %s7531_s8, 7 }
 0x505   : > { %7214 = vst [vmem:[#allocation83_spill] sm:$0xff] %v5416_v19  ;;  %vm5438_vm14 = vmand %vm4553_vm10, %vm7218_vm6  ;;  %v1489_v28 = vmul.f32 %v7221_v7, %v1479_v38  ;;  %v7222_v5 = vmov %v7221_v7  ;;  %v1356_v0 = vadd.f32 %v1354_v41, %v4743_v59  ;;  %vm7223_vm11 = vcmp.ge.s32.totalorder %v3852_v9, 0  ;;  %v7240_v7 = vld [vmem:[#allocation42_spill] sm:$0xff] }
 0x506   : > { %v1490_v12 = vmul.f32 %v7222_v5, %v1478_v14  ;;  %vm5454_vm10 = vmand %vm4611_vm7, %vm7223_vm11  ;;  %v7226_v39 = vstv %s5096_s19  ;;  %v1411_v38 = vsel %vm5376_vm4, %v1407_v52, 0.0  ;;  %v1412_v43 = vsel %vm5394_vm15, %v1408_v15, 0.0  ;;  %v7231_v14 = vld [vmem:[#allocation96_spill] sm:$0xff]  ;;  %s6469_s19 = scalar_lea.vmem [#allocation8], %s7537_s3 }
 0x507   : > { %v1518_v55 = vmul.f32 %v7226_v39, %v1508_v53  ;;  %v7227_v42 = vmov %v7226_v39  ;;  %vm7228_vm13 = vcmp.ge.s32.totalorder %v3865_v25, 0  ;;  %v1465_v3 = vadd.f32 %v4877_v57, %v1460_v8  ;;  %v5489_v20 = vpop.permute.xlu1 %1723  ;;  %v5491_v57 = vpop.permute.xlu0 %1721  ;;  %v7246_v39 = vld [vmem:[#allocation44_spill] sm:$0xff] }
 0x508   : > { %v1519_v49 = vmul.f32 %v7227_v42, %v1507_v10  ;;  %vm5470_vm8 = vmand %vm4633_vm5, %vm7228_vm13  ;;  %v1466_v41 = vadd.f32 %v4890_v58, %v1461_v56  ;;  %v7232_v10 = vld [vmem:[#allocation97_spill] sm:$0xff]  ;;  %v1384_v52 = vadd.f32 %v1382_v23, %v1355_v11  ;;  %v1385_v48 = vadd.f32 %v1383_v34, %v1356_v0 }
 0x509   : > { %v2138_v17 = vsel %vm6774_vm1, %v7232_v10, %v7231_v14  ;;  %vm7233_vm4 = vcmp.ge.s32.totalorder %v3869_v37, 0  ;;  %vm6772_vm6 = vcmp.lt.s32.totalorder %v3118_v47, 78  ;;  %v1440_v58 = vsel %vm5426_vm9, %v1436_v27, 0.0  ;;  %v7239_v23 = vld [vmem:[#allocation41_spill] sm:$0xff]  ;;  %v7241_v27 = vld [vmem:[#allocation104_spill] sm:$0xff] }
 0x50a   : > { %vm5484_vm15 = vmand %vm4611_vm7, %vm7233_vm4  ;;  %v1441_v8 = vsel %vm5438_vm14, %v1437_v54, 0.0  ;;  %vm7236_vm11 = vcmp.ge.s32.totalorder %v3880_v21, 0  ;;  %v1494_v34 = vadd.f32 %v7239_v23, %v1489_v28  ;;  %v1495_v5 = vadd.f32 %v7240_v7, %v1490_v12  ;;  %v7245_v54 = vld [vmem:[#allocation43_spill] sm:$0xff] }
 0x50b   : > { %vm5502_vm13 = vmand %vm4633_vm5, %vm7236_vm11  ;;  %v1413_v11 = vadd.f32 %v1411_v38, %v1384_v52  ;;  %v1414_v44 = vadd.f32 %v1412_v43, %v1385_v48  ;;  %vm7242_vm9 = vcmp.ge.s32.totalorder %v7241_v27, 0  ;;  %v1523_v0 = vadd.f32 %v7245_v54, %v1518_v55  ;;  %v7249_v48 = vld [vmem:[#allocation105_spill] sm:$0xff]  ;;  %v7265_v55 = vld [vmem:[#allocation79_spill] sm:$0xff] }
 0x50c   : > { %vm5514_vm14 = vmand %vm4611_vm7, %vm7242_vm9  ;;  %v1524_v42 = vadd.f32 %v7246_v39, %v1519_v49  ;;  %v2139_v28 = vsel %vm6774_vm1, %v7231_v14, %v7232_v10  ;;  %v7247_v12 = vstv %s4722_s6  ;;  %v1469_v43 = vsel %vm5454_vm10, %v1465_v3, 0.0  ;;  %v7253_v10 = vld [vmem:[#allocation63_spill] sm:$0xff]  ;;  %v5552_v3 = vpop.permute.xlu1 %1752 }
 0x50d   : > { %v5528_v38 = vmul.f32 %v7247_v12, %v2138_v17  ;;  %v1470_v52 = vsel %vm5470_vm8, %v1466_v41, 0.0  ;;  %vm7250_vm4 = vcmp.ge.s32.totalorder %v7249_v48, 0  ;;  %v1442_v49 = vadd.f32 %v1440_v58, %v1413_v11  ;;  %v7254_v17 = vld [vmem:[#allocation64_spill] sm:$0xff]  ;;  %v5554_v41 = vpop.permute.xlu0 %1750 }
 0x50e   : > { %vm5538_vm11 = vmand %vm4633_vm5, %vm7250_vm4  ;;  %v1443_v14 = vadd.f32 %v1441_v8, %v1414_v44  ;;  %vm7255_vm9 = vcmp.lt.s32.totalorder %v3118_v47, 127  ;;  %v7257_v58 = vld [vmem:[#allocation100_spill] sm:$0xff]  ;;  %v7258_v8 = vld [vmem:[#allocation101_spill] sm:$0xff]  ;;  %v1498_v11 = vsel %vm5484_vm15, %v1494_v34, 0.0  ;;  %v1499_v44 = vsel %vm5502_vm13, %v1495_v5, 0.0 }
 0x50f   : > { %7248 = vst [vmem:[#allocation84_spill] sm:$0xff] %v5528_v38  ;;  %v1552_v61 = vsel %vm7255_vm9, %v7254_v17, %v7253_v10  ;;  %vm7256_vm10 = vmmov %vm7255_vm9  ;;  %v2167_v23 = vsel %vm6773_vm3, %v7258_v8, %v7257_v58  ;;  %v2168_v7 = vsel %vm6773_vm3, %v7257_v58, %v7258_v8  ;;  %v1471_v54 = vadd.f32 %v1469_v43, %v1442_v49  ;;  %v7262_v43 = vld [vmem:[#allocation72_spill] sm:$0xff] }
 0x510   : > { %v1553_v59 = vsel %vm7256_vm10, %v7253_v10, %v7254_v17  ;;  %v1472_v39 = vadd.f32 %v1470_v52, %v1443_v14  ;;  %v1527_v12 = vsel %vm5514_vm14, %v1523_v0, 0.0  ;;  %v1528_v10 = vsel %vm5538_vm11, %v1524_v42, 0.0  ;;  %v7261_v17 = vld [vmem:[#allocation71_spill] sm:$0xff]  ;;  %v7266_v49 = vld [vmem:[#allocation80_spill] sm:$0xff] }
 0x511   : > { %vm759_vm8 = vcmp.ge.s32.totalorder %v5309_v32, 0  ;;  %vm761_vm4 = vcmp.lt.s32.totalorder %v5309_v32, 16  ;;  %v7259_v15 = vstv %s5126_s21  ;;  %vm7263_vm15 = vcmp.lt.s32.totalorder %v3118_v47, 126  ;;  %v5604_v58 = vpop.permute.xlu0 %1779  ;;  %s2313_s21 = sshll.u32 %s6469_s19, 4  ;;  %s6497_s21 = int_to_ptr.vmem [resolvable:$true] %s2313_s21 }
 0x512   : > { %v1563_v34 = vmul.f32 %v7259_v15, %v1552_v61  ;;  %v7260_v56 = vmov %v7259_v15  ;;  %v1581_v2 = vsel %vm7263_vm15, %v7262_v43, %v7261_v17  ;;  %vm7264_vm13 = vmmov %vm7263_vm15  ;;  %vm760_vm14 = vcmp.ge.s32.totalorder %v5328_v31, 0 }
 0x513   : > { %v1564_v5 = vmul.f32 %v7260_v56, %v1553_v59  ;;  %v1582_v0 = vsel %vm7264_vm13, %v7261_v17, %v7262_v43  ;;  %vm762_vm11 = vcmp.lt.s32.totalorder %v5328_v31, 16  ;;  %v1500_v42 = vadd.f32 %v1498_v11, %v1471_v54  ;;  %v5602_v59 = vpop.permute.xlu1 %1781  ;;  %v7297_v56 = vld [vmem:[#allocation99_spill] sm:$0xff] }
 0x514   : > { %v1501_v52 = vadd.f32 %v1499_v44, %v1472_v39  ;;  %vm7267_vm9 = vcmp.lt.s32.totalorder %v3118_v47, 125  ;;  %v7269_v8 = vstv %s4722_s6  ;;  %v7271_v44 = vstv %s4726_s5  ;;  %s5627_s6 = sld [smem:[#allocation7 + $0x26]] }
 0x515   : > { %v1610_v14 = vsel %vm7267_vm9, %v7266_v49, %v7265_v55  ;;  %vm7268_vm10 = vmmov %vm7267_vm9  ;;  %v5610_v11 = vmul.f32 %v7269_v8, %v2139_v28  ;;  %v5614_v54 = vmul.f32 %v7271_v44, %v2167_v23  ;;  %v7273_v39 = vmov %v7271_v44  ;;  %v7280_v23 = vld [vmem:[#allocation45_spill] sm:$0xff]  ;;  %v7285_v8 = vld [vmem:[#allocation103_spill] sm:$0xff]  ;;  %s5687_s5 = sld [smem:[#allocation7 + $0x27]] }
 0x516   : > { %v1611_v61 = vsel %vm7268_vm10, %v7265_v55, %v7266_v49  ;;  %v5618_v15 = vmul.f32 %v7273_v39, %v2168_v7  ;;  %v1529_v17 = vadd.f32 %v1527_v12, %v1500_v42  ;;  %v1530_v43 = vadd.f32 %v1528_v10, %v1501_v52  ;;  %v7281_v12 = vld [vmem:[#allocation47_spill] sm:$0xff] }
 0x517   : > { %7270 = vst [vmem:[#allocation85_spill] sm:$0xff] %v5610_v11  ;;  %7272 = vst [vmem:[#allocation86_spill] sm:$0xff] %v5614_v54  ;;  %v7275_v55 = vstv %s5159_s25  ;;  %vm7277_vm15 = vcmp.lt.s32.totalorder %v4034_v60, 16  ;;  %v1568_v7 = vadd.f32 %v7280_v23, %v1563_v34  ;;  %v1569_v10 = vadd.f32 %v7281_v12, %v1564_v5 }
 0x518   : > { %7274 = vst [vmem:[#allocation87_spill] sm:$0xff] %v5618_v15  ;;  %v1592_v49 = vmul.f32 %v7275_v55, %v1581_v2  ;;  %v7276_v53 = vmov %v7275_v55  ;;  %vm5633_vm13 = vmand %vm4611_vm7, %vm7277_vm15  ;;  %v7282_v42 = vstv %s5192_s23  ;;  %vm7287_vm9 = vcmp.lt.s32.totalorder %v4045_v50, 16  ;;  %v5667_v55 = vpop.permute.xlu0 %1808 }
 0x519   : > { %v1593_v38 = vmul.f32 %v7276_v53, %v1582_v0  ;;  %v1621_v2 = vmul.f32 %v7282_v42, %v1610_v14  ;;  %v7283_v52 = vmov %v7282_v42  ;;  %v7284_v0 = vld [vmem:[#allocation102_spill] sm:$0xff]  ;;  %vm5659_vm10 = vmand %vm4633_vm5, %vm7287_vm9  ;;  %vm7290_vm15 = vcmp.lt.s32.totalorder %v4068_v33, 16 }
 0x51a   : > { %v1622_v53 = vmul.f32 %v7283_v52, %v1611_v61  ;;  %v5647_v44 = vsel %vm6772_vm6, %v7285_v8, %v7284_v0  ;;  %v5653_v39 = vsel %vm6772_vm6, %v7284_v0, %v7285_v8  ;;  %v5665_v61 = vpop.permute.xlu1 %1810  ;;  %vm5673_vm6 = vmand %vm4611_vm7, %vm7290_vm15  ;;  %vm7293_vm9 = vcmp.lt.s32.totalorder %v3118_v47, 115  ;;  %v7295_v8 = vld [vmem:[#allocation98_spill] sm:$0xff]  ;;  %v7303_v52 = vld [vmem:[#allocation40_spill] sm:$0xff] }
 0x51b   : > { %7286 = vst [vmem:[#allocation88_spill] sm:$0xff] %v5653_v39  ;;  %v1639_v12 = vsel %vm7293_vm9, %v5299_v46, %v5297_v22  ;;  %vm7294_vm3 = vmmov %vm7293_vm9  ;;  %v7296_v14 = vsel %vm4633_vm5, %v7295_v8, 0.0  ;;  %v7298_v15 = vsel %vm4611_vm7, %v7297_v56, 0.0  ;;  %vm7299_vm15 = vcmp.lt.s32.totalorder %v4076_v63, 16 }
 0x51c   : > { %v1640_v42 = vsel %vm7294_vm3, %v5297_v22, %v5299_v46  ;;  %v1546_v5 = vadd.f32 %v7296_v14, %v1530_v43  ;;  %v1545_v54 = vadd.f32 %v7298_v15, %v1529_v17  ;;  %vm5701_vm3 = vmand %vm4633_vm5, %vm7299_vm15  ;;  %v7302_v46 = vld [vmem:[#allocation46_spill] sm:$0xff]  ;;  %v1598_v39 = vadd.f32 %v7303_v52, %v1593_v38  ;;  %v7307_v17 = vld [vmem:[#allocation39_spill] sm:$0xff]  ;;  %v5745_v52 = vpop.permute.xlu0 %1837 }
 0x51d   : > { %v1597_v0 = vadd.f32 %v7302_v46, %v1592_v49  ;;  %v1572_v43 = vsel %vm5633_vm13, %v1568_v7, 0.0  ;;  %v1573_v15 = vsel %vm5659_vm10, %v1569_v10, 0.0  ;;  %vm7304_vm9 = vcmp.lt.s32.totalorder %v4085_v29, 16  ;;  %v7308_v49 = vld [vmem:[#allocation49_spill] sm:$0xff] }
 0x51e   : > { %vm5717_vm15 = vmand %vm4611_vm7, %vm7304_vm9  ;;  %v1626_v38 = vadd.f32 %v7307_v17, %v1621_v2  ;;  %v1627_v14 = vadd.f32 %v7308_v49, %v1622_v53  ;;  %vm7309_vm1 = vcmp.lt.s32.totalorder %v4115_v26, 16  ;;  %v7312_v7 = vstv %s5236_s29  ;;  %v5743_v53 = vpop.permute.xlu1 %1839  ;;  %s7546_s29 = sld [smem:[#allocation110_spill]] }
 0x51f   : > { %vm5727_vm13 = vmand %vm4633_vm5, %vm7309_vm1  ;;  %v1650_v10 = vmul.f32 %v7312_v7, %v1639_v12  ;;  %v7313_v45 = vmov %v7312_v7  ;;  %vm7314_vm7 = vcmp.lt.s32.totalorder %v3118_v47, 114  ;;  %v5759_v8 = vadd.s32 2, %v3750_v1  ;;  %v7381_v7 = vld [vmem:[#allocation60_spill] sm:$0xff] }
 0x520   : > { %v1651_v34 = vmul.f32 %v7313_v45, %v1640_v42  ;;  %v1668_v2 = vsel %vm7314_vm7, %v5353_v35, %v5349_v62  ;;  %vm7315_vm10 = vmmov %vm7314_vm7  ;;  %v5756_v42 = vadd.s32 2, %v3748_v51  ;;  %v1601_v46 = vsel %vm5673_vm6, %v1597_v0, 0.0  ;;  %v5801_v56 = vpop.permute.xlu0 %1866 }
 0x521   : > { %v1669_v4 = vsel %vm7315_vm10, %v5349_v62, %v5353_v35  ;;  %vm5751_vm5 = vmand %vm759_vm8, %vm761_vm4  ;;  %v1602_v32 = vsel %vm5701_vm3, %v1598_v39, 0.0  ;;  %v1574_v45 = vadd.f32 %v1572_v43, %v1545_v54  ;;  %v1575_v35 = vadd.f32 %v1573_v15, %v1546_v5  ;;  %v7325_v54 = vld [vmem:[#allocation48_spill] sm:$0xff]  ;;  %v7326_v43 = vld [vmem:[#allocation51_spill] sm:$0xff] }
 0x522   : > { %vm5773_vm1 = vmand %vm760_vm14, %vm762_vm11  ;;  %v7320_v62 = vstv %s5351_s7  ;;  %v1630_v39 = vsel %vm5717_vm15, %v1626_v38, 0.0  ;;  %v1631_v31 = vsel %vm5727_vm13, %v1627_v14, 0.0  ;;  %vm7322_vm6 = vcmp.ge.s32.totalorder %v3852_v9, 0 }
 0x523   : > { %v1679_v23 = vmul.f32 %v7320_v62, %v1668_v2  ;;  %v7321_v0 = vmov %v7320_v62  ;;  %vm5793_vm8 = vmand %vm5751_vm5, %vm7322_vm6  ;;  %v1655_v5 = vadd.f32 %v7325_v54, %v1650_v10  ;;  %v1656_v15 = vadd.f32 %v7326_v43, %v1651_v34  ;;  %v5799_v2 = vpop.permute.xlu1 %1868  ;;  %v7336_v54 = vld [vmem:[#allocation52_spill] sm:$0xff] }
 0x524   : > { %v1680_v11 = vmul.f32 %v7321_v0, %v1669_v4  ;;  %v1603_v38 = vadd.f32 %v1601_v46, %v1574_v45  ;;  %v1604_v28 = vadd.f32 %v1602_v32, %v1575_v35  ;;  %vm7327_vm4 = vcmp.ge.s32.totalorder %v3865_v25, 0  ;;  %v7335_v45 = vld [vmem:[#allocation50_spill] sm:$0xff]  ;;  %v5861_v22 = vpop.permute.xlu0 %1895  ;;  %s6487_s7 = scalar_lea.hbm %s7546_s29, %s2518_s2 }
 0x525   : > { %vm5807_vm14 = vmand %vm5773_vm1, %vm7327_vm4  ;;  %vm7330_vm11 = vcmp.lt.s32.totalorder %v3118_v47, 113  ;;  %v1726_v4 = vsel %vm1725_vm2, %v5491_v57, %v5489_v20  ;;  %v1727_v62 = vsel %vm1725_vm2, %v5489_v20, %v5491_v57  ;;  %vm7332_vm9 = vcmp.ge.s32.totalorder %v3869_v37, 0 }
 0x526   : > { %v1697_v10 = vsel %vm7330_vm11, %v5432_v40, %v5430_v24  ;;  %vm7331_vm3 = vmmov %vm7330_vm11  ;;  %v1684_v0 = vadd.f32 %v7335_v45, %v1679_v23  ;;  %v1685_v20 = vadd.f32 %v7336_v54, %v1680_v11  ;;  %v1659_v57 = vsel %vm5793_vm8, %v1655_v5, 0.0 }
 0x527   : > { %v1698_v34 = vsel %vm7331_vm3, %v5430_v24, %v5432_v40  ;;  %v1632_v24 = vadd.f32 %v1630_v39, %v1603_v38  ;;  %v1633_v40 = vadd.f32 %v1631_v31, %v1604_v28  ;;  %vm5837_vm15 = vmand %vm5751_vm5, %vm7332_vm9  ;;  %v1660_v39 = vsel %vm5807_vm14, %v1656_v15, 0.0  ;;  %v5859_v28 = vpop.permute.xlu1 %1897  ;;  %v7353_v31 = vld [vmem:[#allocation55_spill] sm:$0xff] }
 0x528   : > { %vm7337_vm2 = vcmp.ge.s32.totalorder %v3880_v21, 0  ;;  %v7340_v43 = vstv %s5508_s18  ;;  %v7342_v5 = vstv %s5520_s27  ;;  %v1755_v54 = vsel %vm1754_vm0, %v5554_v41, %v5552_v3  ;;  %s7551_s18 = sld [smem:[#allocation19_spill]]  ;;  %s2300_s27 = scalar_lea.sflag [#allocation5], %s7531_s8 }
 0x529   : > { %vm5851_vm13 = vmand %vm5773_vm1, %vm7337_vm2  ;;  %v1708_v23 = vmul.f32 %v7340_v43, %v1697_v10  ;;  %v7341_v38 = vmov %v7340_v43  ;;  %v1737_v14 = vmul.f32 %v7342_v5, %v1726_v4  ;;  %v7343_v15 = vmov %v7342_v5 }
 0x52a   : > { %v1709_v11 = vmul.f32 %v7341_v38, %v1698_v34  ;;  %v1738_v45 = vmul.f32 %v7343_v15, %v1727_v62  ;;  %v1756_v10 = vsel %vm1754_vm0, %v5552_v3, %v5554_v41  ;;  %vm767_vm7 = vcmp.ge.s32.totalorder %v5756_v42, 0 }
 0x52b   : > { %vm769_vm10 = vcmp.lt.s32.totalorder %v5756_v42, 16  ;;  %vm768_vm6 = vcmp.ge.s32.totalorder %v5759_v8, 0  ;;  %vm770_vm8 = vcmp.lt.s32.totalorder %v5759_v8, 16  ;;  %v5881_v4 = vadd.s32 3, %v3748_v51 }
 0x52c   : > { %v5884_v62 = vadd.s32 3, %v3750_v1  ;;  %v1661_v38 = vadd.f32 %v1659_v57, %v1632_v24  ;;  %v1662_v5 = vadd.f32 %v1660_v39, %v1633_v40  ;;  %v1688_v3 = vsel %vm5837_vm15, %v1684_v0, 0.0  ;;  %v5903_v24 = vpop.permute.xlu1 %1926  ;;  %v5905_v40 = vpop.permute.xlu0 %1924  ;;  %v7351_v0 = vld [vmem:[#allocation53_spill] sm:$0xff]  ;;  %v7352_v57 = vld [vmem:[#allocation54_spill] sm:$0xff] }
 0x52d   : > { %v1689_v41 = vsel %vm5851_vm13, %v1685_v20, 0.0  ;;  %v7344_v15 = vstv %s5542_s14  ;;  %vm7346_vm0 = vcmp.lt.s32.totalorder %v3118_v47, 110  ;;  %vm7348_vm14 = vcmp.ge.s32.totalorder %v7241_v27, 0  ;;  %s2719_s14 = scalar_lea.vmem %s6497_s21, 2048 }
 0x52e   : > { %v1766_v46 = vmul.f32 %v7344_v15, %v1755_v54  ;;  %v7345_v34 = vmov %v7344_v15  ;;  %v1784_v51 = vsel %vm7346_vm0, %v5604_v58, %v5602_v59  ;;  %vm7347_vm4 = vmmov %vm7346_vm0  ;;  %v1713_v20 = vadd.f32 %v7351_v0, %v1708_v23  ;;  %v7367_v0 = vld [vmem:[#allocation58_spill] sm:$0xff]  ;;  %p2720_p12 = scmp.ne.s32.totalorder %s6497_s21, %s2719_s14  ;;  %p7552_p0 = scmp.ne.s32.totalorder %s7551_s18, 0 }
 0x52f   : > { %v1767_v35 = vmul.f32 %v7345_v34, %v1756_v10  ;;  %v1785_v1 = vsel %vm7347_vm4, %v5602_v59, %v5604_v58  ;;  %vm5911_vm11 = vmand %vm5751_vm5, %vm7348_vm14  ;;  %v1714_v39 = vadd.f32 %v7352_v57, %v1709_v11  ;;  %v1742_v54 = vadd.f32 %v7353_v31, %v1737_v14  ;;  %v7354_v10 = vld [vmem:[#allocation56_spill] sm:$0xff] }
 0x530   : > { %v1743_v59 = vadd.f32 %v7354_v10, %v1738_v45  ;;  %v1690_v58 = vadd.f32 %v1688_v3, %v1661_v38  ;;  %v1691_v34 = vadd.f32 %v1689_v41, %v1662_v5  ;;  %vm7355_vm3 = vcmp.ge.s32.totalorder %v7249_v48, 0  ;;  %v1954_v10 = vpop.permute.xlu0 %1953  ;;  %p2721_p2 = pnand %p2720_p12, %p7552_p0 }
 0x531   : > { %vm5923_vm9 = vmand %vm5773_vm1, %vm7355_vm3  ;;  %vm7358_vm15 = vcmp.lt.s32.totalorder %v4034_v60, 16  ;;  %v7361_v11 = vstv %s5556_s24  ;;  %v1813_v5 = vsel %vm1812_vm12, %v5667_v55, %v5665_v61  ;;  %v1814_v3 = vsel %vm1812_vm12, %v5665_v61, %v5667_v55  ;;  %v1956_v55 = vpop.permute.xlu1 %1955  ;;  %s2843_s24 = smov [#allocation8]  }
 0x532   : > { %vm5933_vm2 = vmand %vm5751_vm5, %vm7358_vm15  ;;  %v1795_v14 = vmul.f32 %v7361_v11, %v1784_v51  ;;  %v7362_v45 = vmov %v7361_v11  ;;  %vm7363_vm13 = vcmp.lt.s32.totalorder %v4045_v50, 16  ;;  %v7366_v51 = vld [vmem:[#allocation57_spill] sm:$0xff]  ;;  %v1772_v57 = vadd.f32 %v7367_v0, %v1767_v35  ;;  %p2722_p7 = pneg %p2721_p2 }
 0x533   : > { %v1796_v38 = vmul.f32 %v7362_v45, %v1785_v1  ;;  %vm5953_vm0 = vmand %vm5773_vm1, %vm7363_vm13  ;;  %v1771_v1 = vadd.f32 %v7366_v51, %v1766_v46  ;;  %vm7368_vm4 = vcmp.lt.s32.totalorder %v3118_v47, 99  ;;  %v1717_v11 = vsel %vm5911_vm11, %v1713_v20, 0.0  ;;  %v7380_v51 = vld [vmem:[#allocation59_spill] sm:$0xff] }
 0x534   : > { %v1842_v31 = vsel %vm7368_vm4, %v5745_v52, %v5743_v53  ;;  %vm7369_vm12 = vmmov %vm7368_vm4  ;;  %v1718_v35 = vsel %vm5923_vm9, %v1714_v39, 0.0  ;;  %v1746_v46 = vsel %vm5751_vm5, %v1742_v54, 0.0  ;;  %v1747_v45 = vsel %vm5773_vm1, %v1743_v59, 0.0 }
 0x535   : > { %v1843_v61 = vsel %vm7369_vm12, %v5743_v53, %v5745_v52  ;;  %vm7370_vm14 = vcmp.lt.s32.totalorder %v4068_v33, 16  ;;  %vm7373_vm15 = vcmp.lt.s32.totalorder %v4076_v63, 16  ;;  %v7376_v32 = vstv %s5570_s0  ;;  %s2723_s0 = sshll.u32 %s2843_s24, 4  ;;  %s2724_s0 = int_to_ptr.vmem [resolvable:$false] %s2723_s0 }
 0x536   : > { %vm5979_vm3 = vmand %vm5751_vm5, %vm7370_vm14  ;;  %v1824_v20 = vmul.f32 %v7376_v32, %v1813_v5  ;;  %v7377_v39 = vmov %v7376_v32  ;;  %vm7378_vm9 = vcmp.lt.s32.totalorder %v3118_v47, 98  ;;  %v1800_v0 = vadd.f32 %v7380_v51, %v1795_v14  ;;  %v1983_v14 = vpop.permute.xlu0 %1982  ;;  %p2726_p8 = scmp.lt.s32.totalorder %s6497_s21, %s2724_s0 }
 0x537   : > { %vm5987_vm11 = vmand %vm5773_vm1, %vm7373_vm15  ;;  %v1825_v54 = vmul.f32 %v7377_v39, %v1814_v3  ;;  %v1871_v59 = vsel %vm7378_vm9, %v5801_v56, %v5799_v2  ;;  %v1801_v43 = vadd.f32 %v7381_v7, %v1796_v38  ;;  %vm7382_vm4 = vcmp.lt.s32.totalorder %v4085_v29, 16 }
 0x538   : > { %vm7379_vm13 = vmmov %vm7378_vm9  ;;  %v7385_v3 = vstv %s5592_s15  ;;  %v1719_v19 = vadd.f32 %v1717_v11, %v1690_v58  ;;  %v1720_v36 = vadd.f32 %v1718_v35, %v1691_v34  ;;  %v1776_v7 = vsel %vm5953_vm0, %v1772_v57, 0.0  ;;  %v7399_v35 = vld [vmem:[#allocation62_spill] sm:$0xff]  ;;  %s2725_s15 = scalar_lea.vmem %s2724_s0, 4096 }
 0x539   : > { %v1872_v15 = vsel %vm7379_vm13, %v5799_v2, %v5801_v56  ;;  %vm6009_vm12 = vmand %vm5751_vm5, %vm7382_vm4  ;;  %v1853_v32 = vmul.f32 %v7385_v3, %v1842_v31  ;;  %v7386_v39 = vmov %v7385_v3  ;;  %v1775_v2 = vsel %vm5933_vm2, %v1771_v1, 0.0  ;;  %v1985_v56 = vpop.permute.xlu1 %1984  ;;  %p2727_p9 = scmp.lt.s32.totalorder %s2725_s15, %s2719_s14 }
 0x53a   : > { %v1854_v49 = vmul.f32 %v7386_v39, %v1843_v61  ;;  %vm6025_vm5 = vmand %vm767_vm7, %vm769_vm10  ;;  %v7391_v34 = vstv %s5606_s30  ;;  %vm7393_vm7 = vcmp.lt.s32.totalorder %v3118_v47, 97  ;;  %v1748_v1 = vadd.f32 %v1746_v46, %v1719_v19  ;;  %v7398_v61 = vld [vmem:[#allocation61_spill] sm:$0xff]  ;;  %v2012_v3 = vpop.permute.xlu0 %2011 }
 0x53b   : > { %vm6033_vm14 = vmand %vm768_vm6, %vm770_vm8  ;;  %v1882_v23 = vmul.f32 %v7391_v34, %v1871_v59  ;;  %v7392_v38 = vmov %v7391_v34  ;;  %v1900_v42 = vsel %vm7393_vm7, %v5861_v22, %v5859_v28  ;;  %v1749_v57 = vadd.f32 %v1747_v45, %v1720_v36  ;;  %v7403_v19 = vld [vmem:[#allocation65_spill] sm:$0xff]  ;;  %p2728_p10 = por %p2727_p9, %p2726_p8 }
 0x53c   : > { %v1883_v41 = vmul.f32 %v7392_v38, %v1872_v15  ;;  %vm7394_vm10 = vmmov %vm7393_vm7  ;;  %vm7395_vm6 = vcmp.lt.s32.totalorder %v4115_v26, 16  ;;  %v1829_v11 = vadd.f32 %v7398_v61, %v1824_v20  ;;  %v1830_v59 = vadd.f32 %v7399_v35, %v1825_v54  ;;  %v7425_v61 = vld [vmem:[#allocation69_spill] sm:$0xff]  ;;  %v7426_v35 = vld [vmem:[#allocation70_spill] sm:$0xff] }
 0x53d   : > { %v1901_v8 = vsel %vm7394_vm10, %v5859_v28, %v5861_v22  ;;  %vm6053_vm8 = vmand %vm5773_vm1, %vm7395_vm6  ;;  %v1804_v15 = vsel %vm5979_vm3, %v1800_v0, 0.0  ;;  %v1805_v28 = vsel %vm5987_vm11, %v1801_v43, 0.0  ;;  %vm7400_vm2 = vcmp.ge.s32.totalorder %v3852_v9, 0  ;;  %v7404_v22 = vld [vmem:[#allocation66_spill] sm:$0xff]  ;;  %v2014_v0 = vpop.permute.xlu1 %2013  ;;  %p2729_p1 = pnand %p2728_p10, %p2722_p7 }
 0x53e   : > { %vm6067_vm0 = vmand %vm6025_vm5, %vm7400_vm2  ;;  %v1858_v17 = vadd.f32 %v7403_v19, %v1853_v32  ;;  %v1859_v46 = vadd.f32 %v7404_v22, %v1854_v49  ;;  %v1777_v45 = vadd.f32 %v1775_v2, %v1748_v1  ;;  %v1778_v20 = vadd.f32 %v1776_v7, %v1749_v57  ;;  %v7413_v32 = vld [vmem:[#allocation67_spill] sm:$0xff]  ;;  %v7414_v2 = vld [vmem:[#allocation68_spill] sm:$0xff]  ;;  %v2041_v19 = vpop.permute.xlu0 %2040 }
 0x53f   : > { %vm7405_vm1 = vcmp.ge.s32.totalorder %v3865_v25, 0  ;;  %v7408_v53 = vstv %s5621_s28  ;;  %vm7410_vm15 = vcmp.ge.s32.totalorder %v3869_v37, 0  ;;  %v1887_v39 = vadd.f32 %v7413_v32, %v1882_v23 }
 0x540   : > { %vm6077_vm3 = vmand %vm6033_vm14, %vm7405_vm1  ;;  %v1911_v52 = vmul.f32 %v7408_v53, %v1900_v42  ;;  %v7409_v54 = vmov %v7408_v53  ;;  %v1888_v7 = vadd.f32 %v7414_v2, %v1883_v41  ;;  %vm7415_vm9 = vcmp.lt.s32.totalorder %v3118_v47, 96 }
 0x541   : > { %v1912_v51 = vmul.f32 %v7409_v54, %v1901_v8  ;;  %vm6089_vm11 = vmand %vm6025_vm5, %vm7410_vm15  ;;  %v1929_v34 = vsel %vm7415_vm9, %v5905_v40, %v5903_v24  ;;  %v1806_v42 = vadd.f32 %v1804_v15, %v1777_v45  ;;  %v1807_v8 = vadd.f32 %v1805_v28, %v1778_v20 }
 0x542   : > { %vm7416_vm13 = vmmov %vm7415_vm9  ;;  %v1833_v1 = vsel %vm6009_vm12, %v1829_v11, 0.0  ;;  %v1834_v23 = vsel %vm6053_vm8, %v1830_v59, 0.0  ;;  %vm7417_vm4 = vcmp.ge.s32.totalorder %v3880_v21, 0  ;;  %vm7420_vm12 = vcmp.lt.s32.totalorder %v3118_v47, 95 }
 0x543   : > { %v1930_v38 = vsel %vm7416_vm13, %v5903_v24, %v5905_v40  ;;  %vm6111_vm7 = vmand %vm6033_vm14, %vm7417_vm4  ;;  %v1862_v24 = vsel %vm6067_vm0, %v1858_v17, 0.0  ;;  %v1863_v40 = vsel %vm6077_vm3, %v1859_v46, 0.0  ;;  %v1958_v5 = vsel %vm7420_vm12, %v1954_v10, %v1956_v55 }
 0x544   : > { %vm7421_vm10 = vmmov %vm7420_vm12  ;;  %vm7422_vm6 = vcmp.ge.s32.totalorder %v7241_v27, 0  ;;  %v1916_v11 = vadd.f32 %v7425_v61, %v1911_v52  ;;  %v1917_v59 = vadd.f32 %v7426_v35, %v1912_v51  ;;  %v7427_v15 = vstv %s5627_s6  ;;  %v7448_v61 = vld [vmem:[#allocation75_spill] sm:$0xff]  ;;  %v7449_v35 = vld [vmem:[#allocation76_spill] sm:$0xff] }
 0x545   : > { %v1959_v57 = vsel %vm7421_vm10, %v1956_v55, %v1954_v10  ;;  %vm6131_vm8 = vmand %vm6025_vm5, %vm7422_vm6  ;;  %v1940_v28 = vmul.f32 %v7427_v15, %v1929_v34  ;;  %v7428_v36 = vmov %v7427_v15  ;;  %v2043_v10 = vpop.permute.xlu1 %2042  ;;  %vm775_vm2 = vcmp.ge.s32.totalorder %v5881_v4, 0 }
 0x546   : > { %v1941_v55 = vmul.f32 %v7428_v36, %v1930_v38  ;;  %vm777_vm0 = vcmp.lt.s32.totalorder %v5881_v4, 16  ;;  %v1835_v17 = vadd.f32 %v1833_v1, %v1806_v42  ;;  %v1836_v22 = vadd.f32 %v1834_v23, %v1807_v8  ;;  %v7438_v42 = vld [vmem:[#allocation73_spill] sm:$0xff]  ;;  %v7439_v1 = vld [vmem:[#allocation74_spill] sm:$0xff]  ;;  %v2070_v23 = vpop.permute.xlu0 %2069 }
 0x547   : > { %v1891_v46 = vsel %vm6089_vm11, %v1887_v39, 0.0  ;;  %v1892_v45 = vsel %vm6111_vm7, %v1888_v7, 0.0  ;;  %vm7429_vm1 = vcmp.ge.s32.totalorder %v7249_v48, 0  ;;  %vm776_vm15 = vcmp.ge.s32.totalorder %v5884_v62, 0 }
 0x548   : > { %vm6151_vm3 = vmand %vm6033_vm14, %vm7429_vm1  ;;  %vm778_vm9 = vcmp.lt.s32.totalorder %v5884_v62, 16  ;;  %v7432_v43 = vstv %s5687_s5  ;;  %vm7434_vm11 = vcmp.lt.s32.totalorder %v3118_v47, 94  ;;  %v1864_v32 = vadd.f32 %v1862_v24, %v1835_v17 }
 0x549   : > { %v1969_v53 = vmul.f32 %v7432_v43, %v1958_v5  ;;  %v7433_v52 = vmov %v7432_v43  ;;  %v1987_v51 = vsel %vm7434_vm11, %v1983_v14, %v1985_v56  ;;  %vm7435_vm13 = vmmov %vm7434_vm11  ;;  %v1865_v39 = vadd.f32 %v1863_v40, %v1836_v22 }
 0x54a   : > { %v1970_v54 = vmul.f32 %v7433_v52, %v1959_v57  ;;  %v1988_v49 = vsel %vm7435_vm13, %v1985_v56, %v1983_v14  ;;  %vm7436_vm4 = vcmp.lt.s32.totalorder %v3118_v47, 93  ;;  %v1920_v34 = vsel %vm6131_vm8, %v1916_v11, 0.0  ;;  %v2072_v14 = vpop.permute.xlu1 %2071 }
 0x54b   : > { %v2016_v2 = vsel %vm7436_vm4, %v2012_v3, %v2014_v0  ;;  %vm7437_vm7 = vmmov %vm7436_vm4  ;;  %v1921_v38 = vsel %vm6151_vm3, %v1917_v59, 0.0  ;;  %v1945_v8 = vadd.f32 %v7438_v42, %v1940_v28  ;;  %v1946_v56 = vadd.f32 %v7439_v1, %v1941_v55 }
 0x54c   : > { %v2017_v7 = vsel %vm7437_vm7, %v2014_v0, %v2012_v3  ;;  %v1893_v41 = vadd.f32 %v1891_v46, %v1864_v32  ;;  %v1894_v24 = vadd.f32 %v1892_v45, %v1865_v39  ;;  %vm7440_vm12 = vcmp.lt.s32.totalorder %v4034_v60, 16  ;;  %v2099_v32 = vpop.permute.xlu0 %2098  ;;  %v7460_v39 = vld [vmem:[#allocation77_spill] sm:$0xff] }
 0x54d   : > { %vm6179_vm10 = vmand %vm6025_vm5, %vm7440_vm12  ;;  %v7443_v3 = vstv %s5707_s13  ;;  %vm7445_vm6 = vcmp.lt.s32.totalorder %v4045_v50, 16  ;;  %v1974_v11 = vadd.f32 %v7448_v61, %v1969_v53  ;;  %v1975_v59 = vadd.f32 %v7449_v35, %v1970_v54 }
 0x54e   : > { %v1998_v40 = vmul.f32 %v7443_v3, %v1987_v51  ;;  %v7444_v5 = vmov %v7443_v3  ;;  %vm6191_vm8 = vmand %vm6033_vm14, %vm7445_vm6  ;;  %v7450_v15 = vstv %s5763_s16  ;;  %v1922_v17 = vadd.f32 %v1920_v34, %v1893_v41 }
 0x54f   : > { %v1999_v57 = vmul.f32 %v7444_v5, %v1988_v49  ;;  %v2027_v28 = vmul.f32 %v7450_v15, %v2016_v2  ;;  %v7451_v36 = vmov %v7450_v15  ;;  %v1923_v22 = vadd.f32 %v1921_v38, %v1894_v24  ;;  %v2101_v49 = vpop.permute.xlu1 %2100 }
 0x550   : > { %v2028_v55 = vmul.f32 %v7451_v36, %v2017_v7  ;;  %vm7452_vm1 = vcmp.lt.s32.totalorder %v4068_v33, 16  ;;  %v2142_v45 = vstv %s6115_s22  ;;  %v2171_v20 = vstv %s6125_s20  ;;  %v7461_v7 = vld [vmem:[#allocation78_spill] sm:$0xff] }
 0x551   : > { %vm6205_vm3 = vmand %vm6025_vm5, %vm7452_vm1  ;;  %v1949_v43 = vsel %vm6025_vm5, %v1945_v8, 0.0  ;;  %v1950_v53 = vsel %vm6033_vm14, %v1946_v56, 0.0  ;;  %vm7455_vm11 = vcmp.lt.s32.totalorder %v4076_v63, 16  ;;  %vm7458_vm4 = vcmp.lt.s32.totalorder %v3118_v47, 83 }
 0x552   : > { %vm6219_vm13 = vmand %vm6033_vm14, %vm7455_vm11  ;;  %v2045_v54 = vsel %vm7458_vm4, %v2041_v19, %v2043_v10  ;;  %v2003_v2 = vadd.f32 %v7460_v39, %v1998_v40  ;;  %v2004_v34 = vadd.f32 %v7461_v7, %v1999_v57  ;;  %vm7462_vm12 = vcmp.lt.s32.totalorder %v4085_v29, 16  ;;  %v7493_v39 = vld [vmem:[#allocation81_spill] sm:$0xff] }
 0x553   : > { %vm7459_vm7 = vmmov %vm7458_vm4  ;;  %vm7465_vm1 = vcmp.lt.s32.totalorder %v3118_v47, 82  ;;  %v1978_v42 = vsel %vm6179_vm10, %v1974_v11, 0.0  ;;  %v1979_v8 = vsel %vm6191_vm8, %v1975_v59, 0.0  ;;  %vm7467_vm4 = vcmp.lt.s32.totalorder %v4115_v26, 16  ;;  %v2130_v61 = vpop.permute.xlu1 %2129  ;;  %v2128_v11 = vpop.permute.xlu0 %2127 }
 0x554   : > { %v2046_v51 = vsel %vm7459_vm7, %v2043_v10, %v2041_v19  ;;  %vm6233_vm6 = vmand %vm6025_vm5, %vm7462_vm12  ;;  %v2074_v10 = vsel %vm7465_vm1, %v2070_v23, %v2072_v14  ;;  %v2032_v1 = vadd.f32 %v5265_v13, %v2027_v28  ;;  %v2033_v56 = vadd.f32 %v5269_v30, %v2028_v55 }
 0x555   : > { %vm7466_vm11 = vmmov %vm7465_vm1  ;;  %v7472_v58 = vstv %s5779_s9  ;;  %v7476_v30 = vstv %s5819_s12  ;;  %v2007_v59 = vsel %vm6205_vm3, %v2003_v2, 0.0  ;;  %v2008_v15 = vsel %vm6219_vm13, %v2004_v34, 0.0 }
 0x556   : > { %v2075_v19 = vsel %vm7466_vm11, %v2072_v14, %v2070_v23  ;;  %vm6249_vm5 = vmand %vm6033_vm14, %vm7467_vm4  ;;  %v1951_v14 = vadd.f32 %v1949_v43, %v1922_v17  ;;  %v1952_v23 = vadd.f32 %v1950_v53, %v1923_v22  ;;  %v2056_v24 = vmul.f32 %v7472_v58, %v2045_v54 }
 0x557   : > { %vm6261_vm10 = vmand %vm775_vm2, %vm777_vm0  ;;  %v7473_v0 = vmov %v7472_v58  ;;  %v2085_v40 = vmul.f32 %v7476_v30, %v2074_v10  ;;  %v7477_v5 = vmov %v7476_v30  ;;  %vm7478_vm2 = vcmp.lt.s32.totalorder %v3118_v47, 81  ;;  %v2157_v7 = vpop.permute.xlu0 %2156 }
 0x558   : > { %v2057_v3 = vmul.f32 %v7473_v0, %v2046_v51  ;;  %vm6273_vm14 = vmand %vm776_vm15, %vm778_vm9  ;;  %v2086_v4 = vmul.f32 %v7477_v5, %v2075_v19  ;;  %v2103_v57 = vsel %vm7478_vm2, %v2099_v32, %v2101_v49  ;;  %v1980_v35 = vadd.f32 %v1978_v42, %v1951_v14 }
 0x559   : > { %vm7479_vm0 = vmmov %vm7478_vm2  ;;  %v1981_v62 = vadd.f32 %v1979_v8, %v1952_v23  ;;  %v2036_v28 = vsel %vm6233_vm6, %v2032_v1, 0.0  ;;  %v2037_v36 = vsel %vm6249_vm5, %v2033_v56, 0.0  ;;  %vm7480_vm15 = vcmp.ge.s32.totalorder %v3852_v9, 0  ;;  %v7504_v23 = vld [vmem:[#allocation83_spill] sm:$0xff] }
 0x55a   : > { %v2104_v31 = vsel %vm7479_vm0, %v2101_v49, %v2099_v32  ;;  %vm6297_vm9 = vmand %vm6261_vm10, %vm7480_vm15  ;;  %vm7483_vm8 = vcmp.lt.s32.totalorder %v3118_v47, 80  ;;  %vm7485_vm13 = vcmp.ge.s32.totalorder %v3865_v25, 0  ;;  %v2061_v9 = vadd.f32 %v5278_v16, %v2056_v24 }
 0x55b   : > { %v2132_v17 = vsel %vm7483_vm8, %v2128_v11, %v2130_v61  ;;  %vm7484_vm3 = vmmov %vm7483_vm8  ;;  %v2062_v43 = vadd.f32 %v5282_v18, %v2057_v3  ;;  %v7488_v53 = vstv %s5831_s10  ;;  %v2009_v49 = vadd.f32 %v2007_v59, %v1980_v35  ;;  %v2159_v18 = vpop.permute.xlu1 %2158  ;;  %v2186_v5 = vpop.permute.xlu0 %2185 }
 0x55c   : > { %v2133_v22 = vsel %vm7484_vm3, %v2130_v61, %v2128_v11  ;;  %vm6309_vm7 = vmand %vm6273_vm14, %vm7485_vm13  ;;  %v2114_v52 = vmul.f32 %v7488_v53, %v2103_v57  ;;  %v7489_v54 = vmov %v7488_v53  ;;  %v2010_v32 = vadd.f32 %v2008_v15, %v1981_v62 }
 0x55d   : > { %v2115_v51 = vmul.f32 %v7489_v54, %v2104_v31  ;;  %vm7490_vm12 = vcmp.ge.s32.totalorder %v3869_v37, 0  ;;  %v2090_v16 = vadd.f32 %v5294_v6, %v2085_v40  ;;  %v2091_v2 = vadd.f32 %v7493_v39, %v2086_v4  ;;  %v7508_v4 = vld [vmem:[#allocation84_spill] sm:$0xff]  ;;  %v7509_v31 = vld [vmem:[#allocation85_spill] sm:$0xff] }
 0x55e   : > { %vm6323_vm6 = vmand %vm6261_vm10, %vm7490_vm12  ;;  %vm7494_vm1 = vcmp.ge.s32.totalorder %v3880_v21, 0  ;;  %v2143_v37 = vmul.f32 %v2142_v45, %v2132_v17  ;;  %v2144_v38 = vmul.f32 %v2142_v45, %v2133_v22  ;;  %vm7497_vm4 = vcmp.lt.s32.totalorder %v3118_v47, 79  ;;  %v7535_v22 = vld [vmem:[#allocation23_spill] sm:$0xff] }
 0x55f   : > { %vm6333_vm11 = vmand %vm6273_vm14, %vm7494_vm1  ;;  %v2161_v10 = vsel %vm7497_vm4, %v2157_v7, %v2159_v18  ;;  %v7499_v19 = vstv %s4739_s4  ;;  %v2038_v21 = vadd.f32 %v2036_v28, %v2009_v49  ;;  %v2039_v8 = vadd.f32 %v2037_v36, %v2010_v32  ;;  %v2188_v40 = vpop.permute.xlu1 %2187  ;;  %v7512_v28 = vld [vmem:[#allocation88_spill] sm:$0xff]  ;;  %v2215_v49 = vpop.permute.xlu0 %2214  ;;  %s6431_s4 = sld [smem:[#allocation2]] }
 0x560   : > { %vm7498_vm5 = vmmov %vm7497_vm4  ;;  %v2204_v42 = vmul.f32 %v7499_v19, %v5647_v44  ;;  %v2200_v12 = vstv %s6255_s11  ;;  %v2065_v1 = vsel %vm6297_vm9, %v2061_v9, 0.0  ;;  %v2066_v45 = vsel %vm6309_vm7, %v2062_v43, 0.0  ;;  %v7503_v44 = vld [vmem:[#allocation82_spill] sm:$0xff] }
 0x561   : > { %v2162_v6 = vsel %vm7498_vm5, %v2159_v18, %v2157_v7  ;;  %vm7500_vm2 = vcmp.ge.s32.totalorder %v7241_v27, 0  ;;  %v2119_v14 = vadd.f32 %v7503_v44, %v2114_v52  ;;  %v2120_v58 = vadd.f32 %v7504_v23, %v2115_v51  ;;  %v7521_v52 = vld [vmem:[#allocation87_spill] sm:$0xff] }
 0x562   : > { %vm6355_vm0 = vmand %vm6261_vm10, %vm7500_vm2  ;;  %v2094_v24 = vsel %vm6323_vm6, %v2090_v16, 0.0  ;;  %v2095_v0 = vsel %vm6333_vm11, %v2091_v2, 0.0  ;;  %vm7505_vm15 = vcmp.ge.s32.totalorder %v7249_v48, 0  ;;  %v2172_v3 = vmul.f32 %v2171_v20, %v2161_v10 }
 0x563   : > { %vm6371_vm9 = vmand %vm6273_vm14, %vm7505_vm15  ;;  %v2173_v30 = vmul.f32 %v2171_v20, %v2162_v6  ;;  %v2148_v57 = vadd.f32 %v7508_v4, %v2143_v37  ;;  %v2149_v61 = vadd.f32 %v7509_v31, %v2144_v38  ;;  %vm7510_vm8 = vcmp.lt.s32.totalorder %v3118_v47, 78  ;;  %v2217_v51 = vpop.permute.xlu1 %2216 }
 0x564   : > { %v2190_v11 = vsel %vm7510_vm8, %v2186_v5, %v2188_v40  ;;  %vm7511_vm3 = vmmov %vm7510_vm8  ;;  %v2067_v35 = vadd.f32 %v2065_v1, %v2038_v21  ;;  %v2068_v62 = vadd.f32 %v2066_v45, %v2039_v8  ;;  %v7513_v36 = vmov %v7499_v19  ;;  %v2222_v21 = vpop.permute.xlu0 %2221 }
 0x565   : > { %v2191_v48 = vsel %vm7511_vm3, %v2188_v40, %v2186_v5  ;;  %v2201_v59 = vmul.f32 %v2200_v12, %v2190_v11  ;;  %v2205_v55 = vmul.f32 %v7513_v36, %v7512_v28  ;;  %v2123_v20 = vsel %vm6355_vm0, %v2119_v14, 0.0  ;;  %v7533_v36 = vld [vmem:[#allocation25_spill] sm:$0xff] }
 0x566   : > { %v2202_v15 = vmul.f32 %v2200_v12, %v2191_v48  ;;  %v2124_v17 = vsel %vm6371_vm9, %v2120_v58, 0.0  ;;  %vm7514_vm13 = vcmp.lt.s32.totalorder %v4034_v60, 16  ;;  %vm2218_vm12 = vcmp.lt.s32.totalorder %v3118_v47, 77  ;;  %v7520_v60 = vld [vmem:[#allocation86_spill] sm:$0xff] }
 0x567   : > { %vm6396_vm7 = vmand %vm6261_vm10, %vm7514_vm13  ;;  %v2096_v46 = vadd.f32 %v2094_v24, %v2067_v35  ;;  %v2097_v9 = vadd.f32 %v2095_v0, %v2068_v62  ;;  %vm7517_vm6 = vcmp.lt.s32.totalorder %v4045_v50, 16  ;;  %v2177_v53 = vadd.f32 %v7520_v60, %v2172_v3  ;;  %v7538_v60 = vld [vmem:[#allocation26_spill] sm:$0xff]  ;;  %v7542_v50 = vld [vmem:[#allocation29_spill] sm:$0xff] }
 0x568   : > { %vm6405_vm1 = vmand %vm6273_vm14, %vm7517_vm6  ;;  %v2178_v54 = vadd.f32 %v7521_v52, %v2173_v30  ;;  %v2152_v32 = vsel %vm6261_vm10, %v2148_v57, 0.0  ;;  %v2153_v25 = vsel %vm6273_vm14, %v2149_v61, 0.0  ;;  %vm7522_vm11 = vcmp.lt.s32.totalorder %v4068_v33, 16  ;;  %v7539_v52 = vld [vmem:[#allocation32_spill] sm:$0xff] }
 0x569   : > { %vm6419_vm4 = vmand %vm6261_vm10, %vm7522_vm11  ;;  %v2206_v16 = vadd.f32 %v2204_v42, %v2201_v59  ;;  %v2207_v39 = vadd.f32 %v2205_v55, %v2202_v15  ;;  %v2125_v2 = vadd.f32 %v2123_v20, %v2096_v46  ;;  %v2126_v18 = vadd.f32 %v2124_v17, %v2097_v9  ;;  %v2224_v42 = vpop.permute.xlu1 %2223  ;;  %v7532_v59 = vld [vmem:[#allocation22_spill] sm:$0xff]  ;;  %v7534_v20 = vld [vmem:[#allocation31_spill] sm:$0xff] }
 0x56a   : > { %vm7525_vm5 = vcmp.lt.s32.totalorder %v4076_v63, 16  ;;  %v2229_v33 = vstv %s6345_s26  ;;  %v2219_v34 = vsel %vm2218_vm12, %v2215_v49, %v2217_v51  ;;  %v2220_v37 = vsel %vm2218_vm12, %v2217_v51, %v2215_v49  ;;  %v7536_v9 = vld [vmem:[#allocation27_spill] sm:$0xff]  ;;  %v7540_v51 = vld [vmem:[#allocation24_spill] sm:$0xff] }
 0x56b   : > { %vm6427_vm2 = vmand %vm6273_vm14, %vm7525_vm5  ;;  %v2232_v38 = vstv %s6361_s17  ;;  %v2154_v10 = vadd.f32 %v2152_v32, %v2125_v2  ;;  %v2155_v6 = vadd.f32 %v2153_v25, %v2126_v18  ;;  %v2181_v63 = vsel %vm6396_vm7, %v2177_v53, 0.0  ;;  %v7541_v32 = vld [vmem:[#allocation28_spill] sm:$0xff]  ;;  %v7544_v18 = vld [vmem:[#allocation33_spill] sm:$0xff] }
 0x56c   : > { %v2182_v19 = vsel %vm6405_vm1, %v2178_v54, 0.0  ;;  %v2210_v8 = vsel %vm6419_vm4, %v2206_v16, 0.0  ;;  %v2211_v12 = vsel %vm6427_vm2, %v2207_v39, 0.0  ;;  %v2225_v1 = vsel %vm2218_vm12, %v2222_v21, %v2224_v42  ;;  %v7543_v39 = vld [vmem:[#allocation30_spill] sm:$0xff] }
 0x56d   : > { %v2226_v45 = vsel %vm2218_vm12, %v2224_v42, %v2222_v21  ;;  %v2230_v56 = vmul.f32 %v2229_v33, %v2219_v34  ;;  %v2231_v44 = vmul.f32 %v2229_v33, %v2220_v37  ;;  %vm7528_vm0 = vcmp.lt.s32.totalorder %v4085_v29, 16  ;;  %v7545_v33 = vld [vmem:[#allocation34_spill] sm:$0xff]  ;;  %v7547_v37 = vld [vmem:[#allocation35_spill] sm:$0xff] }
 0x56e   : > { %vm2237_vm15 = vmand %vm6261_vm10, %vm7528_vm0  ;;  %v2233_v14 = vmul.f32 %v2232_v38, %v2225_v1  ;;  %v2234_v23 = vmul.f32 %v2232_v38, %v2226_v45  ;;  %v2183_v58 = vadd.f32 %v2181_v63, %v2154_v10  ;;  %v2184_v24 = vadd.f32 %v2182_v19, %v2155_v6  ;;  %v7548_v10 = vld [vmem:[#allocation36_spill] sm:$0xff]  ;;  %v7549_v63 = vld [vmem:[#allocation37_spill] sm:$0xff] }
 0x56f   : > { %vm7529_vm9 = vcmp.lt.s32.totalorder %v4115_v26, 16  ;;  %v2244_v30 = vstv %s6431_s4  ;;  %v7550_v42 = vld [vmem:[#allocation38_spill] sm:$0xff] }
 0x570   : > { %vm2238_vm8 = vmand %vm6273_vm14, %vm7529_vm9  ;;  %v2235_v0 = vadd.f32 %v2233_v14, %v2230_v56  ;;  %v2236_v27 = vadd.f32 %v2234_v23, %v2231_v44  ;;  %v2212_v47 = vadd.f32 %v2210_v8, %v2183_v58  ;;  %v2213_v3 = vadd.f32 %v2211_v12, %v2184_v24 }
 0x572   : > { %v2239_v40 = vsel %vm2237_vm15, %v2235_v0, 0.0  ;;  %v2240_v5 = vsel %vm2238_vm8, %v2236_v27, 0.0 }
 0x573   : > { %v2241_v29 = vadd.f32 %v2239_v40, %v2212_v47  ;;  %v2242_v4 = vadd.f32 %v2240_v5, %v2213_v3 }
 0x575   : > { %v2245_v41 = vadd.f32 %v2244_v30, %v2241_v29  ;;  %v2246_v57 = vadd.f32 %v2244_v30, %v2242_v4 }
 0x577   : > { %v2510_v31 = vmul.f32 -1.442695, %v2245_v41  ;;  %v2511_v61 = vmul.f32 -1.442695, %v2246_v57 }
 0x579   : > { %2668 = vpow2.f32 %v2510_v31 }
 0x57a   : > { %2670 = vpow2.f32 %v2511_v61 }
 0x586   : > { %v2669_v26 = vpop.eup %2668 }
 0x587   : > { %v2671_v13 = vpop.eup %2670  ;;  %v2253_v11 = vadd.f32 1.0, %v2669_v26 }
 0x588   : > { %v2254_v48 = vadd.f32 1.0, %v2671_v13 }
 0x589   : > { %2672 = vrcp.f32 %v2253_v11 }
 0x58a   : > { %2674 = vrcp.f32 %v2254_v48 }
 0x596   : > { %v2673_v35 = vpop.eup %2672 }
 0x597   : > { %v2675_v62 = vpop.eup %2674  ;;  %v2262_v15 = vrot.slane %v2673_v35, %v7532_v59 }
 0x598   : > { %v2266_v28 = vrot.slane %v2675_v62, %v7532_v59 }
 0x599   : > { %v2267_v55 = vmul.f32 %v2262_v15, %v7533_v36  ;;  %v2269_v17 = vmul.f32 %v2262_v15, %v7534_v20  ;;  %v2271_v46 = vmul.f32 %v2262_v15, %v7535_v22  ;;  %v2273_v43 = vmul.f32 %v2262_v15, %v7536_v9 }
 0x59a   : > { %v2268_v53 = vmul.f32 %v2266_v28, %v7538_v60  ;;  %v2270_v54 = vmul.f32 %v2266_v28, %v7539_v52  ;;  %v2272_v49 = vmul.f32 %v2266_v28, %v7540_v51  ;;  %v2274_v25 = vmul.f32 %v2266_v28, %v7541_v32 }
 0x59b   : > { %v2275_v16 = vmul.f32 %v2262_v15, %v7542_v50  ;;  %v2276_v2 = vmul.f32 %v2266_v28, %v7543_v39  ;;  %v2277_v7 = vmul.f32 %v2262_v15, %v7544_v18  ;;  %v2278_v34 = vmul.f32 %v2266_v28, %v7545_v33  ;;  %2283 = vst [vmem:[%s6469_s19] sm:$0xff] %v2267_v55 }
 0x59c   : > { %2285 = vst [vmem:[%s6469_s19 + $0x10] sm:$0xff] %v2269_v17  ;;  %2287 = vst [vmem:[%s6469_s19 + $0x20] sm:$0xff] %v2271_v46  ;;  %v2279_v38 = vmul.f32 %v2262_v15, %v7547_v37  ;;  %v2280_v6 = vmul.f32 %v2266_v28, %v7548_v10  ;;  %v2281_v19 = vmul.f32 %v2262_v15, %v7549_v63 }
 0x59d   : > { %2289 = vst [vmem:[%s6469_s19 + $0x30] sm:$0xff] %v2273_v43  ;;  %v2282_v21 = vmul.f32 %v2266_v28, %v7550_v42  ;;  %2284 = vst [vmem:[%s6469_s19 + $0x8] sm:$0xff] %v2268_v53 }
 0x59e   : > { %2286 = vst [vmem:[%s6469_s19 + $0x18] sm:$0xff] %v2270_v54  ;;  %2288 = vst [vmem:[%s6469_s19 + $0x28] sm:$0xff] %v2272_v49 }
 0x59f   : > { %2290 = vst [vmem:[%s6469_s19 + $0x38] sm:$0xff] %v2274_v25  ;;  %2291 = vst [vmem:[%s6469_s19 + $0x40] sm:$0xff] %v2275_v16 }
 0x5a0   : > { %2292 = vst [vmem:[%s6469_s19 + $0x48] sm:$0xff] %v2276_v2  ;;  %2293 = vst [vmem:[%s6469_s19 + $0x50] sm:$0xff] %v2277_v7 }
 0x5a1   : > { %2294 = vst [vmem:[%s6469_s19 + $0x58] sm:$0xff] %v2278_v34  ;;  %2295 = vst [vmem:[%s6469_s19 + $0x60] sm:$0xff] %v2279_v38 }
 0x5a2   : > { %2296 = vst [vmem:[%s6469_s19 + $0x68] sm:$0xff] %v2280_v6  ;;  %2297 = vst [vmem:[%s6469_s19 + $0x70] sm:$0xff] %v2281_v19 }
 0x5a3   : > { %2298 = vst [vmem:[%s6469_s19 + $0x78] sm:$0xff] %v2282_v21 }
 0x5a4   : > { %2732 = shalt.err (!%p2729_p1)
}
 0x5a5   : > { %s2733_s30 = scalar_lea.hbm %s6487_s7, 2048  ;;  %s2737_s5 = scalar_lea.hbm %s7546_s29, 4096 }
 0x5a6   : > { %p2734_p4 = scmp.ne.s32.totalorder %s6487_s7, %s2733_s30  ;;  %p2738_p6 = scmp.lt.s32.totalorder %s6487_s7, %s7546_s29 }
 0x5a7   : > { %p2739_p13 = scmp.lt.s32.totalorder %s2737_s5, %s2733_s30 }
 0x5a8   : > { %p2735_p11 = pnand %p2734_p4, %p7552_p0 }
 0x5a9   : > { %p2740_p3 = por %p2739_p13, %p2738_p6 }
 0x5aa   : > { %p2736_p5 = pneg %p2735_p11 }
 0x5ac   : > { %p2741_p12 = pnand %p2740_p3, %p2736_p5 }
 0x5ae   : > { %2744 = shalt.err (!%p2741_p12)
}
 0x5af   : > { %s2844_s9 = smov 256   ;;  %s7553_s12 = smov 16  }
 0x5b0   : > { %2560 = dma.vmem_to_hbm [thread:$0]  (%p7552_p0), %s6497_s21, 2048, %s6487_s7, %s2300_s27, %s2844_s9, %s2844_s9, %s7553_s12  }
 0x5b1 PF: > { %s7554_s10 = sld [smem:[#allocation12_spill]] }
 0x5b2   : > { %s7555_s22 = sld [smem:[#allocation20_spill]] }
 0x5b3   : > { %s7556_s20 = sld [smem:[#allocation15_spill]] }
 0x5b7   : > { %s2328_s11 = sand.u32 1, %s7554_s10  }
 0x5b8   : > { %p7557_p2 = scmp.ne.s32.totalorder %s7555_s22, 0  ;;  %s2329_s26 = scalar_lea.sflag [#allocation5], %s2328_s11 }
 0x5b9   : > { %p7558_p7 = scmp.ge.s32.totalorder %s7556_s20, 2 }
 0x5bb   : > { %p2571_p8 = pnand %p7558_p7, %p7557_p2 }
 0x5bd   : > { %p2572_p9 = pneg %p2571_p8 }
 0x5bf   : > { %2770 = dma.done.wait (%p2572_p9), %s2329_s26, 2048  }
 0x5c0   : > { %2772 = vsyncadd (%p2572_p9), %s2329_s26, 4294965248  ;;  %s7559_s23 = sld [smem:[#allocation17_spill]] }
 0x5c1   : > { %s7560_s20 = sld [smem:[#allocation13_spill]] }
 0x5c2   : > { %s7561_s21 = sld [smem:[#allocation14_spill]] }
 0x5c3   : > { %s7562_s22 = sld [smem:[#allocation18_spill]] }
 0x5c6   : > { %p20_p10 = scmp.ge.s32.totalorder %s7559_s23, 4  }
 0x5c8   :  { %22 = sbr.rel (!%p20_p10) target bundleno = 13 (0xd), region = 90 }
 0x5cd   :  { %2334 = vsyncpa [#allocation4], 1 }
 0x5ce   :  { %2336 = vsyncpa [#allocation4 + $0x1], 1 }
 0x5cf   :  { %2337 = vsyncpa [#allocation5], 1 }
 0x5d0   :  { %2339 = vsyncpa [#allocation5 + $0x1], 1 }
 0x5d1   :  { %2340 = vsyncpa [#allocation6], 1 }
 0x5d2   :  { %2342 = vsyncpa [#allocation6 + $0x1], 1 }

</bundles_post_ra>
